<compile_context>
chip_gen: v7x
topology: tpu7x:2x2x1
jax: 0.10.0
libtpu: 0.0.40
codegen_flags: <defaults>
</compile_context>

<pallas_src>
import functools

import jax
import jax.numpy as jnp
from jax.experimental import pallas as pl
from jax.experimental.pallas import tpu as pltpu

SELU_ALPHA = 1.6732632423543772848170429916717
SELU_SCALE = 1.0507009873554804934193349852946

# Fixed SVD basis from the PyTorch module (ownBasis=True), shape (3, 9).
BASIS = jnp.array(
    [[-0.21535662, -0.30022025, -0.26041868, -0.314888, -0.45471892,
      -0.3971264, -0.26603645, -0.3896653, -0.33079177],
     [0.34970352, 0.50572443, 0.36894855, 0.07661748, 0.08152138,
      0.02740295, -0.28591475, -0.49375448, -0.38343033],
     [-0.3019736, -0.02775075, 0.29349312, -0.50207216, -0.05312577,
      0.5471206, -0.39858055, -0.09402011, 0.31616086]],
    dtype=jnp.float32)


def _selu(x):
    return SELU_SCALE * jnp.where(x > 0, x, SELU_ALPHA * (jnp.exp(x) - 1.0))


def _svd_weights(params, basis, Cin, Cout):
    # params: (Cout*Cin, 1, 3); basis: (3, 9) -> conv weights (Cout, Cin, 3, 3)
    return (params[:, 0, :] @ basis).reshape(Cout, Cin, 3, 3)


def _conv_selu_upsample_kernel(x_ref, w_ref, b_ref, rep_r_ref, rep_c_ref,
                               o_ref, xp_ref, *, H, W, Cin, Cout):
    """Grid step b: one batch element, ALL output channels.

    x_ref:     (1, Cin, H, W)          NCHW input block (VMEM)
    w_ref:     (Cout*Cin*9,)           conv weights, idx (co*Cin+ci)*9+kh*3+kw (SMEM)
    b_ref:     (Cout,)                 bias (SMEM)
    rep_r_ref: (Cout*2H, Cout*H)       block-diagonal 0/1 row-duplication selector (VMEM)
    rep_c_ref: (W, 2W)                 0/1 column-duplication selector (VMEM)
    o_ref:     (1, Cout, 2H, 2W)       NCHW upsampled output block (VMEM)
    xp_ref:    (Cin, H+2, W+2)         zero-padded input halo scratch (VMEM)
    """
    n_taps = Cin * 9

    # Halo fill: exactly once per batch element (grid is (B,)).  Full zero each
    # step keeps the border correct without any pl.when/program_id gating, so
    # the B axis can stay "parallel" (safe under v7x megacore sharding).
    xp_ref[...] = jnp.zeros_like(xp_ref)
    xp_ref[:, 1:H + 1, 1:W + 1] = x_ref[0]

    # Load the 36 shifted taps once; they are reused by every output channel.
    taps = []
    for ci in range(Cin):
        for kh in range(3):
            for kw in range(3):
                taps.append(xp_ref[ci, kh:kh + H, kw:kw + W])      # (H, W)

    # 3x3 conv + bias + SELU, all channels.  9*Cin scalar-weight VPU FMAs per
    # output channel, split over 4 independent partial accumulators.
    NPAR = 4
    ys = []
    for co in range(Cout):
        base = co * n_taps
        accs = [jnp.zeros((H, W), jnp.float32) for _ in range(NPAR)]
        for t in range(n_taps):
            accs[t % NPAR] = accs[t % NPAR] + w_ref[base + t] * taps[t]
        acc = (accs[0] + accs[1]) + (accs[2] + accs[3])
        ys.append(_selu(acc + b_ref[co]))                          # (H, W)

    # Channels stacked on the sublane axis -> one batched pair of selection
    # matmuls does the exact 2x nearest upsample for every channel at once.
    y_full = jnp.concatenate(ys, axis=0)                           # (Cout*H, W)
    up = jnp.dot(rep_r_ref[...], y_full,
                 preferred_element_type=jnp.float32,
                 precision=jax.lax.Precision.HIGHEST)              # (Cout*2H, W)
    up = jnp.dot(up, rep_c_ref[...],
                 preferred_element_type=jnp.float32,
                 precision=jax.lax.Precision.HIGHEST)              # (Cout*2H, 2W)

    for co in range(Cout):
        o_ref[0, co] = up[co * 2 * H:(co + 1) * 2 * H, :]


def dialated_res_upscale_nn_selu(x_nchw, params, bias, basis=None):
    """Forward pass matching the PyTorch module. Input/output are NCHW float32."""
    if basis is None:
        basis = BASIS
    B, Cin, H, W = x_nchw.shape
    Cout = bias.shape[0]

    # SVD weight reconstruction (tiny): flat layout (co, ci, kh, kw) row-major.
    w_flat = _svd_weights(params, basis, Cin, Cout).reshape(Cout * Cin * 9)

    # Constant exact 0/1 upsample selectors, built once in the wrapper.
    rep_rows = (jnp.arange(2 * H)[:, None] // 2
                == jnp.arange(H)[None, :]).astype(jnp.float32)     # (2H, H)
    rep_rows_blk = jnp.kron(jnp.eye(Cout, dtype=jnp.float32),
                            rep_rows)                              # (Cout*2H, Cout*H)
    rep_cols = (jnp.arange(W)[:, None]
                == jnp.arange(2 * W)[None, :] // 2).astype(jnp.float32)  # (W, 2W)

    kernel = functools.partial(_conv_selu_upsample_kernel,
                               H=H, W=W, Cin=Cin, Cout=Cout)

    return pl.pallas_call(
        kernel,
        out_shape=jax.ShapeDtypeStruct((B, Cout, 2 * H, 2 * W), jnp.float32),
        grid_spec=pltpu.PrefetchScalarGridSpec(
            num_scalar_prefetch=0,
            grid=(B,),
            in_specs=[
                pl.BlockSpec((1, Cin, H, W), lambda b: (b, 0, 0, 0)),
                pl.BlockSpec(memory_space=pltpu.MemorySpace.SMEM),   # weights
                pl.BlockSpec(memory_space=pltpu.MemorySpace.SMEM),   # bias
                pl.BlockSpec((Cout * 2 * H, Cout * H), lambda b: (0, 0)),
                pl.BlockSpec((W, 2 * W), lambda b: (0, 0)),
            ],
            out_specs=pl.BlockSpec((1, Cout, 2 * H, 2 * W),
                                   lambda b: (b, 0, 0, 0)),
            scratch_shapes=[pltpu.VMEM((Cin, H + 2, W + 2), jnp.float32)],
        ),
        compiler_params=pltpu.CompilerParams(
            dimension_semantics=("parallel",)),
    )(x_nchw, w_flat, bias, rep_rows_blk, rep_cols)


def _reference(x_nchw, params, bias, basis=None):
    """Pure-JAX reference of the PyTorch forward (for correctness check)."""
    if basis is None:
        basis = BASIS
    B, Cin, H, W = x_nchw.shape
    Cout = bias.shape[0]
    weights = _svd_weights(params, basis, Cin, Cout)
    y = jax.lax.conv_general_dilated(
        x_nchw, weights, window_strides=(1, 1), padding=((1, 1), (1, 1)),
        dimension_numbers=("NCHW", "OIHW", "NCHW"),
        precision=jax.lax.Precision.HIGHEST)
    y = y + bias[None, :, None, None]
    y = _selu(y)
    return jnp.repeat(jnp.repeat(y, 2, axis=2), 2, axis=3)        # nearest 2x


if __name__ == "__main__":
    B, Cin, Cout, H, W = 2, 4, 4, 16, 16

    key = jax.random.PRNGKey(0)
    kx, kp, kb = jax.random.split(key, 3)
    x = jax.random.normal(kx, (B, Cin, H, W), dtype=jnp.float32)
    # ConvSeluSVD.__init__: params ~ N(0, 0.02), shape (Cout*Cin, 1, 3).
    params = 0.02 * jax.random.normal(kp, (Cout * Cin, 1, 3), dtype=jnp.float32)
    # Bias is a learnable parameter (zeros at init); use nonzero values to
    # exercise the bias path.
    bias = 0.1 * jax.random.normal(kb, (Cout,), dtype=jnp.float32)

    out = jax.block_until_ready(dialated_res_upscale_nn_selu(x, params, bias))

    ref = _reference(x, params, bias)
    assert out.shape == (B, Cout, 2 * H, 2 * W), out.shape
    max_err = float(jnp.max(jnp.abs(out - ref)))
    assert jnp.allclose(out, ref, atol=1e-3, rtol=1e-3), max_err

    print("KERNEL_OK")
</pallas_src>

<mosaic_0001>
module attributes {stable_mosaic.version = 11 : i64} {
  func.func @_conv_selu_upsample_kernel(%arg0: i32, %arg1: memref<1x4x16x16xf32, #tpu.memory_space<vmem>>, %arg2: memref<144xf32, #tpu.memory_space<smem>>, %arg3: memref<4xf32, #tpu.memory_space<smem>>, %arg4: memref<128x64xf32, #tpu.memory_space<vmem>>, %arg5: memref<16x32xf32, #tpu.memory_space<vmem>>, %arg6: memref<1x4x32x32xf32, #tpu.memory_space<vmem>>, %arg7: memref<4x18x18xf32, #tpu.memory_space<vmem>>) attributes {dimension_semantics = [#tpu.dimension_semantics<parallel>], iteration_bounds = array<i64: 2>, scalar_prefetch = 0 : i64, scratch_operands = 1 : i64, tpu.core_type = #tpu.core_type<tc>, window_params = [{transform_indices = @transform_0, window_bounds = array<i64: 1, 4, 16, 16>}, {transform_indices = @transform_1, window_bounds = array<i64: 144>}, {transform_indices = @transform_2, window_bounds = array<i64: 4>}, {pipeline_mode = #tpu.pipeline_mode<synchronous>, transform_indices = @transform_3, window_bounds = array<i64: 128, 64>}, {pipeline_mode = #tpu.pipeline_mode<synchronous>, transform_indices = @transform_4, window_bounds = array<i64: 16, 32>}, {transform_indices = @transform_5, window_bounds = array<i64: 1, 4, 32, 32>}]} {
    %cst = arith.constant 0.000000e+00 : f32
    %0 = vector.broadcast %cst : f32 to vector<4x18x18xf32>
    %c0 = arith.constant 0 : index
    %c0_0 = arith.constant 0 : index
    %c0_1 = arith.constant 0 : index
    %1 = vector.load %arg7[%c0, %c0_0, %c0_1] : memref<4x18x18xf32, #tpu.memory_space<vmem>>, vector<4x18x18xf32>
    tpu.vector_store %arg7[%c0, %c0_0, %c0_1], %0 {strides = array<i32>} : memref<4x18x18xf32, #tpu.memory_space<vmem>>, vector<4x18x18xf32>,
    %c0_2 = arith.constant 0 : index
    %c0_3 = arith.constant 0 : index
    %c0_4 = arith.constant 0 : index
    %c0_5 = arith.constant 0 : index
    %2 = vector.load %arg1[%c0_2, %c0_3, %c0_4, %c0_5] : memref<1x4x16x16xf32, #tpu.memory_space<vmem>>, vector<1x4x16x16xf32>
    %3 = vector.shape_cast %2 : vector<1x4x16x16xf32> to vector<4x16x16xf32>
    %c0_6 = arith.constant 0 : index
    %c1 = arith.constant 1 : index
    %c1_7 = arith.constant 1 : index
    %4 = vector.load %arg7[%c0_6, %c1, %c1_7] : memref<4x18x18xf32, #tpu.memory_space<vmem>>, vector<4x16x16xf32>
    tpu.vector_store %arg7[%c0_6, %c1, %c1_7], %3 {strides = array<i32>} : memref<4x18x18xf32, #tpu.memory_space<vmem>>, vector<4x16x16xf32>,
    %c0_8 = arith.constant 0 : index
    %c0_9 = arith.constant 0 : index
    %c0_10 = arith.constant 0 : index
    %5 = vector.load %arg7[%c0_8, %c0_9, %c0_10] : memref<4x18x18xf32, #tpu.memory_space<vmem>>, vector<1x16x16xf32>
    %6 = vector.shape_cast %5 : vector<1x16x16xf32> to vector<16x16xf32>
    %c0_11 = arith.constant 0 : index
    %c0_12 = arith.constant 0 : index
    %c1_13 = arith.constant 1 : index
    %7 = vector.load %arg7[%c0_11, %c0_12, %c1_13] : memref<4x18x18xf32, #tpu.memory_space<vmem>>, vector<1x16x16xf32>
    %8 = vector.shape_cast %7 : vector<1x16x16xf32> to vector<16x16xf32>
    %c0_14 = arith.constant 0 : index
    %c0_15 = arith.constant 0 : index
    %c2 = arith.constant 2 : index
    %9 = vector.load %arg7[%c0_14, %c0_15, %c2] : memref<4x18x18xf32, #tpu.memory_space<vmem>>, vector<1x16x16xf32>
    %10 = vector.shape_cast %9 : vector<1x16x16xf32> to vector<16x16xf32>
    %c0_16 = arith.constant 0 : index
    %c1_17 = arith.constant 1 : index
    %c0_18 = arith.constant 0 : index
    %11 = vector.load %arg7[%c0_16, %c1_17, %c0_18] : memref<4x18x18xf32, #tpu.memory_space<vmem>>, vector<1x16x16xf32>
    %12 = vector.shape_cast %11 : vector<1x16x16xf32> to vector<16x16xf32>
    %c0_19 = arith.constant 0 : index
    %c1_20 = arith.constant 1 : index
    %c1_21 = arith.constant 1 : index
    %13 = vector.load %arg7[%c0_19, %c1_20, %c1_21] : memref<4x18x18xf32, #tpu.memory_space<vmem>>, vector<1x16x16xf32>
    %14 = vector.shape_cast %13 : vector<1x16x16xf32> to vector<16x16xf32>
    %c0_22 = arith.constant 0 : index
    %c1_23 = arith.constant 1 : index
    %c2_24 = arith.constant 2 : index
    %15 = vector.load %arg7[%c0_22, %c1_23, %c2_24] : memref<4x18x18xf32, #tpu.memory_space<vmem>>, vector<1x16x16xf32>
    %16 = vector.shape_cast %15 : vector<1x16x16xf32> to vector<16x16xf32>
    %c0_25 = arith.constant 0 : index
    %c2_26 = arith.constant 2 : index
    %c0_27 = arith.constant 0 : index
    %17 = vector.load %arg7[%c0_25, %c2_26, %c0_27] : memref<4x18x18xf32, #tpu.memory_space<vmem>>, vector<1x16x16xf32>
    %18 = vector.shape_cast %17 : vector<1x16x16xf32> to vector<16x16xf32>
    %c0_28 = arith.constant 0 : index
    %c2_29 = arith.constant 2 : index
    %c1_30 = arith.constant 1 : index
    %19 = vector.load %arg7[%c0_28, %c2_29, %c1_30] : memref<4x18x18xf32, #tpu.memory_space<vmem>>, vector<1x16x16xf32>
    %20 = vector.shape_cast %19 : vector<1x16x16xf32> to vector<16x16xf32>
    %c0_31 = arith.constant 0 : index
    %c2_32 = arith.constant 2 : index
    %c2_33 = arith.constant 2 : index
    %21 = vector.load %arg7[%c0_31, %c2_32, %c2_33] : memref<4x18x18xf32, #tpu.memory_space<vmem>>, vector<1x16x16xf32>
    %22 = vector.shape_cast %21 : vector<1x16x16xf32> to vector<16x16xf32>
    %c1_34 = arith.constant 1 : index
    %c0_35 = arith.constant 0 : index
    %c0_36 = arith.constant 0 : index
    %23 = vector.load %arg7[%c1_34, %c0_35, %c0_36] : memref<4x18x18xf32, #tpu.memory_space<vmem>>, vector<1x16x16xf32>
    %24 = vector.shape_cast %23 : vector<1x16x16xf32> to vector<16x16xf32>
    %c1_37 = arith.constant 1 : index
    %c0_38 = arith.constant 0 : index
    %c1_39 = arith.constant 1 : index
    %25 = vector.load %arg7[%c1_37, %c0_38, %c1_39] : memref<4x18x18xf32, #tpu.memory_space<vmem>>, vector<1x16x16xf32>
    %26 = vector.shape_cast %25 : vector<1x16x16xf32> to vector<16x16xf32>
    %c1_40 = arith.constant 1 : index
    %c0_41 = arith.constant 0 : index
    %c2_42 = arith.constant 2 : index
    %27 = vector.load %arg7[%c1_40, %c0_41, %c2_42] : memref<4x18x18xf32, #tpu.memory_space<vmem>>, vector<1x16x16xf32>
    %28 = vector.shape_cast %27 : vector<1x16x16xf32> to vector<16x16xf32>
    %c1_43 = arith.constant 1 : index
    %c1_44 = arith.constant 1 : index
    %c0_45 = arith.constant 0 : index
    %29 = vector.load %arg7[%c1_43, %c1_44, %c0_45] : memref<4x18x18xf32, #tpu.memory_space<vmem>>, vector<1x16x16xf32>
    %30 = vector.shape_cast %29 : vector<1x16x16xf32> to vector<16x16xf32>
    %c1_46 = arith.constant 1 : index
    %c1_47 = arith.constant 1 : index
    %c1_48 = arith.constant 1 : index
    %31 = vector.load %arg7[%c1_46, %c1_47, %c1_48] : memref<4x18x18xf32, #tpu.memory_space<vmem>>, vector<1x16x16xf32>
    %32 = vector.shape_cast %31 : vector<1x16x16xf32> to vector<16x16xf32>
    %c1_49 = arith.constant 1 : index
    %c1_50 = arith.constant 1 : index
    %c2_51 = arith.constant 2 : index
    %33 = vector.load %arg7[%c1_49, %c1_50, %c2_51] : memref<4x18x18xf32, #tpu.memory_space<vmem>>, vector<1x16x16xf32>
    %34 = vector.shape_cast %33 : vector<1x16x16xf32> to vector<16x16xf32>
    %c1_52 = arith.constant 1 : index
    %c2_53 = arith.constant 2 : index
    %c0_54 = arith.constant 0 : index
    %35 = vector.load %arg7[%c1_52, %c2_53, %c0_54] : memref<4x18x18xf32, #tpu.memory_space<vmem>>, vector<1x16x16xf32>
    %36 = vector.shape_cast %35 : vector<1x16x16xf32> to vector<16x16xf32>
    %c1_55 = arith.constant 1 : index
    %c2_56 = arith.constant 2 : index
    %c1_57 = arith.constant 1 : index
    %37 = vector.load %arg7[%c1_55, %c2_56, %c1_57] : memref<4x18x18xf32, #tpu.memory_space<vmem>>, vector<1x16x16xf32>
    %38 = vector.shape_cast %37 : vector<1x16x16xf32> to vector<16x16xf32>
    %c1_58 = arith.constant 1 : index
    %c2_59 = arith.constant 2 : index
    %c2_60 = arith.constant 2 : index
    %39 = vector.load %arg7[%c1_58, %c2_59, %c2_60] : memref<4x18x18xf32, #tpu.memory_space<vmem>>, vector<1x16x16xf32>
    %40 = vector.shape_cast %39 : vector<1x16x16xf32> to vector<16x16xf32>
    %c2_61 = arith.constant 2 : index
    %c0_62 = arith.constant 0 : index
    %c0_63 = arith.constant 0 : index
    %41 = vector.load %arg7[%c2_61, %c0_62, %c0_63] : memref<4x18x18xf32, #tpu.memory_space<vmem>>, vector<1x16x16xf32>
    %42 = vector.shape_cast %41 : vector<1x16x16xf32> to vector<16x16xf32>
    %c2_64 = arith.constant 2 : index
    %c0_65 = arith.constant 0 : index
    %c1_66 = arith.constant 1 : index
    %43 = vector.load %arg7[%c2_64, %c0_65, %c1_66] : memref<4x18x18xf32, #tpu.memory_space<vmem>>, vector<1x16x16xf32>
    %44 = vector.shape_cast %43 : vector<1x16x16xf32> to vector<16x16xf32>
    %c2_67 = arith.constant 2 : index
    %c0_68 = arith.constant 0 : index
    %c2_69 = arith.constant 2 : index
    %45 = vector.load %arg7[%c2_67, %c0_68, %c2_69] : memref<4x18x18xf32, #tpu.memory_space<vmem>>, vector<1x16x16xf32>
    %46 = vector.shape_cast %45 : vector<1x16x16xf32> to vector<16x16xf32>
    %c2_70 = arith.constant 2 : index
    %c1_71 = arith.constant 1 : index
    %c0_72 = arith.constant 0 : index
    %47 = vector.load %arg7[%c2_70, %c1_71, %c0_72] : memref<4x18x18xf32, #tpu.memory_space<vmem>>, vector<1x16x16xf32>
    %48 = vector.shape_cast %47 : vector<1x16x16xf32> to vector<16x16xf32>
    %c2_73 = arith.constant 2 : index
    %c1_74 = arith.constant 1 : index
    %c1_75 = arith.constant 1 : index
    %49 = vector.load %arg7[%c2_73, %c1_74, %c1_75] : memref<4x18x18xf32, #tpu.memory_space<vmem>>, vector<1x16x16xf32>
    %50 = vector.shape_cast %49 : vector<1x16x16xf32> to vector<16x16xf32>
    %c2_76 = arith.constant 2 : index
    %c1_77 = arith.constant 1 : index
    %c2_78 = arith.constant 2 : index
    %51 = vector.load %arg7[%c2_76, %c1_77, %c2_78] : memref<4x18x18xf32, #tpu.memory_space<vmem>>, vector<1x16x16xf32>
    %52 = vector.shape_cast %51 : vector<1x16x16xf32> to vector<16x16xf32>
    %c2_79 = arith.constant 2 : index
    %c2_80 = arith.constant 2 : index
    %c0_81 = arith.constant 0 : index
    %53 = vector.load %arg7[%c2_79, %c2_80, %c0_81] : memref<4x18x18xf32, #tpu.memory_space<vmem>>, vector<1x16x16xf32>
    %54 = vector.shape_cast %53 : vector<1x16x16xf32> to vector<16x16xf32>
    %c2_82 = arith.constant 2 : index
    %c2_83 = arith.constant 2 : index
    %c1_84 = arith.constant 1 : index
    %55 = vector.load %arg7[%c2_82, %c2_83, %c1_84] : memref<4x18x18xf32, #tpu.memory_space<vmem>>, vector<1x16x16xf32>
    %56 = vector.shape_cast %55 : vector<1x16x16xf32> to vector<16x16xf32>
    %c2_85 = arith.constant 2 : index
    %c2_86 = arith.constant 2 : index
    %c2_87 = arith.constant 2 : index
    %57 = vector.load %arg7[%c2_85, %c2_86, %c2_87] : memref<4x18x18xf32, #tpu.memory_space<vmem>>, vector<1x16x16xf32>
    %58 = vector.shape_cast %57 : vector<1x16x16xf32> to vector<16x16xf32>
    %c3 = arith.constant 3 : index
    %c0_88 = arith.constant 0 : index
    %c0_89 = arith.constant 0 : index
    %59 = vector.load %arg7[%c3, %c0_88, %c0_89] : memref<4x18x18xf32, #tpu.memory_space<vmem>>, vector<1x16x16xf32>
    %60 = vector.shape_cast %59 : vector<1x16x16xf32> to vector<16x16xf32>
    %c3_90 = arith.constant 3 : index
    %c0_91 = arith.constant 0 : index
    %c1_92 = arith.constant 1 : index
    %61 = vector.load %arg7[%c3_90, %c0_91, %c1_92] : memref<4x18x18xf32, #tpu.memory_space<vmem>>, vector<1x16x16xf32>
    %62 = vector.shape_cast %61 : vector<1x16x16xf32> to vector<16x16xf32>
    %c3_93 = arith.constant 3 : index
    %c0_94 = arith.constant 0 : index
    %c2_95 = arith.constant 2 : index
    %63 = vector.load %arg7[%c3_93, %c0_94, %c2_95] : memref<4x18x18xf32, #tpu.memory_space<vmem>>, vector<1x16x16xf32>
    %64 = vector.shape_cast %63 : vector<1x16x16xf32> to vector<16x16xf32>
    %c3_96 = arith.constant 3 : index
    %c1_97 = arith.constant 1 : index
    %c0_98 = arith.constant 0 : index
    %65 = vector.load %arg7[%c3_96, %c1_97, %c0_98] : memref<4x18x18xf32, #tpu.memory_space<vmem>>, vector<1x16x16xf32>
    %66 = vector.shape_cast %65 : vector<1x16x16xf32> to vector<16x16xf32>
    %c3_99 = arith.constant 3 : index
    %c1_100 = arith.constant 1 : index
    %c1_101 = arith.constant 1 : index
    %67 = vector.load %arg7[%c3_99, %c1_100, %c1_101] : memref<4x18x18xf32, #tpu.memory_space<vmem>>, vector<1x16x16xf32>
    %68 = vector.shape_cast %67 : vector<1x16x16xf32> to vector<16x16xf32>
    %c3_102 = arith.constant 3 : index
    %c1_103 = arith.constant 1 : index
    %c2_104 = arith.constant 2 : index
    %69 = vector.load %arg7[%c3_102, %c1_103, %c2_104] : memref<4x18x18xf32, #tpu.memory_space<vmem>>, vector<1x16x16xf32>
    %70 = vector.shape_cast %69 : vector<1x16x16xf32> to vector<16x16xf32>
    %c3_105 = arith.constant 3 : index
    %c2_106 = arith.constant 2 : index
    %c0_107 = arith.constant 0 : index
    %71 = vector.load %arg7[%c3_105, %c2_106, %c0_107] : memref<4x18x18xf32, #tpu.memory_space<vmem>>, vector<1x16x16xf32>
    %72 = vector.shape_cast %71 : vector<1x16x16xf32> to vector<16x16xf32>
    %c3_108 = arith.constant 3 : index
    %c2_109 = arith.constant 2 : index
    %c1_110 = arith.constant 1 : index
    %73 = vector.load %arg7[%c3_108, %c2_109, %c1_110] : memref<4x18x18xf32, #tpu.memory_space<vmem>>, vector<1x16x16xf32>
    %74 = vector.shape_cast %73 : vector<1x16x16xf32> to vector<16x16xf32>
    %c3_111 = arith.constant 3 : index
    %c2_112 = arith.constant 2 : index
    %c2_113 = arith.constant 2 : index
    %75 = vector.load %arg7[%c3_111, %c2_112, %c2_113] : memref<4x18x18xf32, #tpu.memory_space<vmem>>, vector<1x16x16xf32>
    %76 = vector.shape_cast %75 : vector<1x16x16xf32> to vector<16x16xf32>
    %cst_114 = arith.constant 0.000000e+00 : f32
    %77 = vector.broadcast %cst_114 : f32 to vector<16x16xf32>
    %cst_115 = arith.constant 0.000000e+00 : f32
    %78 = vector.broadcast %cst_115 : f32 to vector<16x16xf32>
    %cst_116 = arith.constant 0.000000e+00 : f32
    %79 = vector.broadcast %cst_116 : f32 to vector<16x16xf32>
    %cst_117 = arith.constant 0.000000e+00 : f32
    %80 = vector.broadcast %cst_117 : f32 to vector<16x16xf32>
    %c0_118 = arith.constant 0 : index
    %81 = memref.load %arg2[%c0_118] : memref<144xf32, #tpu.memory_space<smem>>
    %82 = vector.broadcast %81 : f32 to vector<16x16xf32>
    %83 = arith.mulf %82, %6 : vector<16x16xf32>
    %84 = arith.addf %77, %83 : vector<16x16xf32>
    %c1_119 = arith.constant 1 : index
    %85 = memref.load %arg2[%c1_119] : memref<144xf32, #tpu.memory_space<smem>>
    %86 = vector.broadcast %85 : f32 to vector<16x16xf32>
    %87 = arith.mulf %86, %8 : vector<16x16xf32>
    %88 = arith.addf %78, %87 : vector<16x16xf32>
    %c2_120 = arith.constant 2 : index
    %89 = memref.load %arg2[%c2_120] : memref<144xf32, #tpu.memory_space<smem>>
    %90 = vector.broadcast %89 : f32 to vector<16x16xf32>
    %91 = arith.mulf %90, %10 : vector<16x16xf32>
    %92 = arith.addf %79, %91 : vector<16x16xf32>
    %c3_121 = arith.constant 3 : index
    %93 = memref.load %arg2[%c3_121] : memref<144xf32, #tpu.memory_space<smem>>
    %94 = vector.broadcast %93 : f32 to vector<16x16xf32>
    %95 = arith.mulf %94, %12 : vector<16x16xf32>
    %96 = arith.addf %80, %95 : vector<16x16xf32>
    %c4 = arith.constant 4 : index
    %97 = memref.load %arg2[%c4] : memref<144xf32, #tpu.memory_space<smem>>
    %98 = vector.broadcast %97 : f32 to vector<16x16xf32>
    %99 = arith.mulf %98, %14 : vector<16x16xf32>
    %100 = arith.addf %84, %99 : vector<16x16xf32>
    %c5 = arith.constant 5 : index
    %101 = memref.load %arg2[%c5] : memref<144xf32, #tpu.memory_space<smem>>
    %102 = vector.broadcast %101 : f32 to vector<16x16xf32>
    %103 = arith.mulf %102, %16 : vector<16x16xf32>
    %104 = arith.addf %88, %103 : vector<16x16xf32>
    %c6 = arith.constant 6 : index
    %105 = memref.load %arg2[%c6] : memref<144xf32, #tpu.memory_space<smem>>
    %106 = vector.broadcast %105 : f32 to vector<16x16xf32>
    %107 = arith.mulf %106, %18 : vector<16x16xf32>
    %108 = arith.addf %92, %107 : vector<16x16xf32>
    %c7 = arith.constant 7 : index
    %109 = memref.load %arg2[%c7] : memref<144xf32, #tpu.memory_space<smem>>
    %110 = vector.broadcast %109 : f32 to vector<16x16xf32>
    %111 = arith.mulf %110, %20 : vector<16x16xf32>
    %112 = arith.addf %96, %111 : vector<16x16xf32>
    %c8 = arith.constant 8 : index
    %113 = memref.load %arg2[%c8] : memref<144xf32, #tpu.memory_space<smem>>
    %114 = vector.broadcast %113 : f32 to vector<16x16xf32>
    %115 = arith.mulf %114, %22 : vector<16x16xf32>
    %116 = arith.addf %100, %115 : vector<16x16xf32>
    %c9 = arith.constant 9 : index
    %117 = memref.load %arg2[%c9] : memref<144xf32, #tpu.memory_space<smem>>
    %118 = vector.broadcast %117 : f32 to vector<16x16xf32>
    %119 = arith.mulf %118, %24 : vector<16x16xf32>
    %120 = arith.addf %104, %119 : vector<16x16xf32>
    %c10 = arith.constant 10 : index
    %121 = memref.load %arg2[%c10] : memref<144xf32, #tpu.memory_space<smem>>
    %122 = vector.broadcast %121 : f32 to vector<16x16xf32>
    %123 = arith.mulf %122, %26 : vector<16x16xf32>
    %124 = arith.addf %108, %123 : vector<16x16xf32>
    %c11 = arith.constant 11 : index
    %125 = memref.load %arg2[%c11] : memref<144xf32, #tpu.memory_space<smem>>
    %126 = vector.broadcast %125 : f32 to vector<16x16xf32>
    %127 = arith.mulf %126, %28 : vector<16x16xf32>
    %128 = arith.addf %112, %127 : vector<16x16xf32>
    %c12 = arith.constant 12 : index
    %129 = memref.load %arg2[%c12] : memref<144xf32, #tpu.memory_space<smem>>
    %130 = vector.broadcast %129 : f32 to vector<16x16xf32>
    %131 = arith.mulf %130, %30 : vector<16x16xf32>
    %132 = arith.addf %116, %131 : vector<16x16xf32>
    %c13 = arith.constant 13 : index
    %133 = memref.load %arg2[%c13] : memref<144xf32, #tpu.memory_space<smem>>
    %134 = vector.broadcast %133 : f32 to vector<16x16xf32>
    %135 = arith.mulf %134, %32 : vector<16x16xf32>
    %136 = arith.addf %120, %135 : vector<16x16xf32>
    %c14 = arith.constant 14 : index
    %137 = memref.load %arg2[%c14] : memref<144xf32, #tpu.memory_space<smem>>
    %138 = vector.broadcast %137 : f32 to vector<16x16xf32>
    %139 = arith.mulf %138, %34 : vector<16x16xf32>
    %140 = arith.addf %124, %139 : vector<16x16xf32>
    %c15 = arith.constant 15 : index
    %141 = memref.load %arg2[%c15] : memref<144xf32, #tpu.memory_space<smem>>
    %142 = vector.broadcast %141 : f32 to vector<16x16xf32>
    %143 = arith.mulf %142, %36 : vector<16x16xf32>
    %144 = arith.addf %128, %143 : vector<16x16xf32>
    %c16 = arith.constant 16 : index
    %145 = memref.load %arg2[%c16] : memref<144xf32, #tpu.memory_space<smem>>
    %146 = vector.broadcast %145 : f32 to vector<16x16xf32>
    %147 = arith.mulf %146, %38 : vector<16x16xf32>
    %148 = arith.addf %132, %147 : vector<16x16xf32>
    %c17 = arith.constant 17 : index
    %149 = memref.load %arg2[%c17] : memref<144xf32, #tpu.memory_space<smem>>
    %150 = vector.broadcast %149 : f32 to vector<16x16xf32>
    %151 = arith.mulf %150, %40 : vector<16x16xf32>
    %152 = arith.addf %136, %151 : vector<16x16xf32>
    %c18 = arith.constant 18 : index
    %153 = memref.load %arg2[%c18] : memref<144xf32, #tpu.memory_space<smem>>
    %154 = vector.broadcast %153 : f32 to vector<16x16xf32>
    %155 = arith.mulf %154, %42 : vector<16x16xf32>
    %156 = arith.addf %140, %155 : vector<16x16xf32>
    %c19 = arith.constant 19 : index
    %157 = memref.load %arg2[%c19] : memref<144xf32, #tpu.memory_space<smem>>
    %158 = vector.broadcast %157 : f32 to vector<16x16xf32>
    %159 = arith.mulf %158, %44 : vector<16x16xf32>
    %160 = arith.addf %144, %159 : vector<16x16xf32>
    %c20 = arith.constant 20 : index
    %161 = memref.load %arg2[%c20] : memref<144xf32, #tpu.memory_space<smem>>
    %162 = vector.broadcast %161 : f32 to vector<16x16xf32>
    %163 = arith.mulf %162, %46 : vector<16x16xf32>
    %164 = arith.addf %148, %163 : vector<16x16xf32>
    %c21 = arith.constant 21 : index
    %165 = memref.load %arg2[%c21] : memref<144xf32, #tpu.memory_space<smem>>
    %166 = vector.broadcast %165 : f32 to vector<16x16xf32>
    %167 = arith.mulf %166, %48 : vector<16x16xf32>
    %168 = arith.addf %152, %167 : vector<16x16xf32>
    %c22 = arith.constant 22 : index
    %169 = memref.load %arg2[%c22] : memref<144xf32, #tpu.memory_space<smem>>
    %170 = vector.broadcast %169 : f32 to vector<16x16xf32>
    %171 = arith.mulf %170, %50 : vector<16x16xf32>
    %172 = arith.addf %156, %171 : vector<16x16xf32>
    %c23 = arith.constant 23 : index
    %173 = memref.load %arg2[%c23] : memref<144xf32, #tpu.memory_space<smem>>
    %174 = vector.broadcast %173 : f32 to vector<16x16xf32>
    %175 = arith.mulf %174, %52 : vector<16x16xf32>
    %176 = arith.addf %160, %175 : vector<16x16xf32>
    %c24 = arith.constant 24 : index
    %177 = memref.load %arg2[%c24] : memref<144xf32, #tpu.memory_space<smem>>
    %178 = vector.broadcast %177 : f32 to vector<16x16xf32>
    %179 = arith.mulf %178, %54 : vector<16x16xf32>
    %180 = arith.addf %164, %179 : vector<16x16xf32>
    %c25 = arith.constant 25 : index
    %181 = memref.load %arg2[%c25] : memref<144xf32, #tpu.memory_space<smem>>
    %182 = vector.broadcast %181 : f32 to vector<16x16xf32>
    %183 = arith.mulf %182, %56 : vector<16x16xf32>
    %184 = arith.addf %168, %183 : vector<16x16xf32>
    %c26 = arith.constant 26 : index
    %185 = memref.load %arg2[%c26] : memref<144xf32, #tpu.memory_space<smem>>
    %186 = vector.broadcast %185 : f32 to vector<16x16xf32>
    %187 = arith.mulf %186, %58 : vector<16x16xf32>
    %188 = arith.addf %172, %187 : vector<16x16xf32>
    %c27 = arith.constant 27 : index
    %189 = memref.load %arg2[%c27] : memref<144xf32, #tpu.memory_space<smem>>
    %190 = vector.broadcast %189 : f32 to vector<16x16xf32>
    %191 = arith.mulf %190, %60 : vector<16x16xf32>
    %192 = arith.addf %176, %191 : vector<16x16xf32>
    %c28 = arith.constant 28 : index
    %193 = memref.load %arg2[%c28] : memref<144xf32, #tpu.memory_space<smem>>
    %194 = vector.broadcast %193 : f32 to vector<16x16xf32>
    %195 = arith.mulf %194, %62 : vector<16x16xf32>
    %196 = arith.addf %180, %195 : vector<16x16xf32>
    %c29 = arith.constant 29 : index
    %197 = memref.load %arg2[%c29] : memref<144xf32, #tpu.memory_space<smem>>
    %198 = vector.broadcast %197 : f32 to vector<16x16xf32>
    %199 = arith.mulf %198, %64 : vector<16x16xf32>
    %200 = arith.addf %184, %199 : vector<16x16xf32>
    %c30 = arith.constant 30 : index
    %201 = memref.load %arg2[%c30] : memref<144xf32, #tpu.memory_space<smem>>
    %202 = vector.broadcast %201 : f32 to vector<16x16xf32>
    %203 = arith.mulf %202, %66 : vector<16x16xf32>
    %204 = arith.addf %188, %203 : vector<16x16xf32>
    %c31 = arith.constant 31 : index
    %205 = memref.load %arg2[%c31] : memref<144xf32, #tpu.memory_space<smem>>
    %206 = vector.broadcast %205 : f32 to vector<16x16xf32>
    %207 = arith.mulf %206, %68 : vector<16x16xf32>
    %208 = arith.addf %192, %207 : vector<16x16xf32>
    %c32 = arith.constant 32 : index
    %209 = memref.load %arg2[%c32] : memref<144xf32, #tpu.memory_space<smem>>
    %210 = vector.broadcast %209 : f32 to vector<16x16xf32>
    %211 = arith.mulf %210, %70 : vector<16x16xf32>
    %212 = arith.addf %196, %211 : vector<16x16xf32>
    %c33 = arith.constant 33 : index
    %213 = memref.load %arg2[%c33] : memref<144xf32, #tpu.memory_space<smem>>
    %214 = vector.broadcast %213 : f32 to vector<16x16xf32>
    %215 = arith.mulf %214, %72 : vector<16x16xf32>
    %216 = arith.addf %200, %215 : vector<16x16xf32>
    %c34 = arith.constant 34 : index
    %217 = memref.load %arg2[%c34] : memref<144xf32, #tpu.memory_space<smem>>
    %218 = vector.broadcast %217 : f32 to vector<16x16xf32>
    %219 = arith.mulf %218, %74 : vector<16x16xf32>
    %220 = arith.addf %204, %219 : vector<16x16xf32>
    %c35 = arith.constant 35 : index
    %221 = memref.load %arg2[%c35] : memref<144xf32, #tpu.memory_space<smem>>
    %222 = vector.broadcast %221 : f32 to vector<16x16xf32>
    %223 = arith.mulf %222, %76 : vector<16x16xf32>
    %224 = arith.addf %208, %223 : vector<16x16xf32>
    %225 = arith.addf %212, %216 : vector<16x16xf32>
    %226 = arith.addf %220, %224 : vector<16x16xf32>
    %227 = arith.addf %225, %226 : vector<16x16xf32>
    %c0_122 = arith.constant 0 : index
    %228 = memref.load %arg3[%c0_122] : memref<4xf32, #tpu.memory_space<smem>>
    %229 = vector.broadcast %228 : f32 to vector<16x16xf32>
    %230 = arith.addf %227, %229 : vector<16x16xf32>
    %cst_123 = arith.constant 0.000000e+00 : f32
    %231 = vector.broadcast %cst_123 : f32 to vector<16x16xf32>
    %232 = arith.cmpf ogt, %230, %231 : vector<16x16xf32>
    %233 = math.exp %230 : vector<16x16xf32>
    %cst_124 = arith.constant 1.000000e+00 : f32
    %234 = vector.broadcast %cst_124 : f32 to vector<16x16xf32>
    %235 = arith.subf %233, %234 : vector<16x16xf32>
    %cst_125 = arith.constant 1.67326319 : f32
    %236 = vector.broadcast %cst_125 : f32 to vector<16x16xf32>
    %237 = arith.mulf %236, %235 : vector<16x16xf32>
    %238 = arith.select %232, %230, %237 : vector<16x16xi1>, vector<16x16xf32>
    %cst_126 = arith.constant 1.05070102 : f32
    %239 = vector.broadcast %cst_126 : f32 to vector<16x16xf32>
    %240 = arith.mulf %239, %238 : vector<16x16xf32>
    %cst_127 = arith.constant 0.000000e+00 : f32
    %241 = vector.broadcast %cst_127 : f32 to vector<16x16xf32>
    %cst_128 = arith.constant 0.000000e+00 : f32
    %242 = vector.broadcast %cst_128 : f32 to vector<16x16xf32>
    %cst_129 = arith.constant 0.000000e+00 : f32
    %243 = vector.broadcast %cst_129 : f32 to vector<16x16xf32>
    %cst_130 = arith.constant 0.000000e+00 : f32
    %244 = vector.broadcast %cst_130 : f32 to vector<16x16xf32>
    %c36 = arith.constant 36 : index
    %245 = memref.load %arg2[%c36] : memref<144xf32, #tpu.memory_space<smem>>
    %246 = vector.broadcast %245 : f32 to vector<16x16xf32>
    %247 = arith.mulf %246, %6 : vector<16x16xf32>
    %248 = arith.addf %241, %247 : vector<16x16xf32>
    %c37 = arith.constant 37 : index
    %249 = memref.load %arg2[%c37] : memref<144xf32, #tpu.memory_space<smem>>
    %250 = vector.broadcast %249 : f32 to vector<16x16xf32>
    %251 = arith.mulf %250, %8 : vector<16x16xf32>
    %252 = arith.addf %242, %251 : vector<16x16xf32>
    %c38 = arith.constant 38 : index
    %253 = memref.load %arg2[%c38] : memref<144xf32, #tpu.memory_space<smem>>
    %254 = vector.broadcast %253 : f32 to vector<16x16xf32>
    %255 = arith.mulf %254, %10 : vector<16x16xf32>
    %256 = arith.addf %243, %255 : vector<16x16xf32>
    %c39 = arith.constant 39 : index
    %257 = memref.load %arg2[%c39] : memref<144xf32, #tpu.memory_space<smem>>
    %258 = vector.broadcast %257 : f32 to vector<16x16xf32>
    %259 = arith.mulf %258, %12 : vector<16x16xf32>
    %260 = arith.addf %244, %259 : vector<16x16xf32>
    %c40 = arith.constant 40 : index
    %261 = memref.load %arg2[%c40] : memref<144xf32, #tpu.memory_space<smem>>
    %262 = vector.broadcast %261 : f32 to vector<16x16xf32>
    %263 = arith.mulf %262, %14 : vector<16x16xf32>
    %264 = arith.addf %248, %263 : vector<16x16xf32>
    %c41 = arith.constant 41 : index
    %265 = memref.load %arg2[%c41] : memref<144xf32, #tpu.memory_space<smem>>
    %266 = vector.broadcast %265 : f32 to vector<16x16xf32>
    %267 = arith.mulf %266, %16 : vector<16x16xf32>
    %268 = arith.addf %252, %267 : vector<16x16xf32>
    %c42 = arith.constant 42 : index
    %269 = memref.load %arg2[%c42] : memref<144xf32, #tpu.memory_space<smem>>
    %270 = vector.broadcast %269 : f32 to vector<16x16xf32>
    %271 = arith.mulf %270, %18 : vector<16x16xf32>
    %272 = arith.addf %256, %271 : vector<16x16xf32>
    %c43 = arith.constant 43 : index
    %273 = memref.load %arg2[%c43] : memref<144xf32, #tpu.memory_space<smem>>
    %274 = vector.broadcast %273 : f32 to vector<16x16xf32>
    %275 = arith.mulf %274, %20 : vector<16x16xf32>
    %276 = arith.addf %260, %275 : vector<16x16xf32>
    %c44 = arith.constant 44 : index
    %277 = memref.load %arg2[%c44] : memref<144xf32, #tpu.memory_space<smem>>
    %278 = vector.broadcast %277 : f32 to vector<16x16xf32>
    %279 = arith.mulf %278, %22 : vector<16x16xf32>
    %280 = arith.addf %264, %279 : vector<16x16xf32>
    %c45 = arith.constant 45 : index
    %281 = memref.load %arg2[%c45] : memref<144xf32, #tpu.memory_space<smem>>
    %282 = vector.broadcast %281 : f32 to vector<16x16xf32>
    %283 = arith.mulf %282, %24 : vector<16x16xf32>
    %284 = arith.addf %268, %283 : vector<16x16xf32>
    %c46 = arith.constant 46 : index
    %285 = memref.load %arg2[%c46] : memref<144xf32, #tpu.memory_space<smem>>
    %286 = vector.broadcast %285 : f32 to vector<16x16xf32>
    %287 = arith.mulf %286, %26 : vector<16x16xf32>
    %288 = arith.addf %272, %287 : vector<16x16xf32>
    %c47 = arith.constant 47 : index
    %289 = memref.load %arg2[%c47] : memref<144xf32, #tpu.memory_space<smem>>
    %290 = vector.broadcast %289 : f32 to vector<16x16xf32>
    %291 = arith.mulf %290, %28 : vector<16x16xf32>
    %292 = arith.addf %276, %291 : vector<16x16xf32>
    %c48 = arith.constant 48 : index
    %293 = memref.load %arg2[%c48] : memref<144xf32, #tpu.memory_space<smem>>
    %294 = vector.broadcast %293 : f32 to vector<16x16xf32>
    %295 = arith.mulf %294, %30 : vector<16x16xf32>
    %296 = arith.addf %280, %295 : vector<16x16xf32>
    %c49 = arith.constant 49 : index
    %297 = memref.load %arg2[%c49] : memref<144xf32, #tpu.memory_space<smem>>
    %298 = vector.broadcast %297 : f32 to vector<16x16xf32>
    %299 = arith.mulf %298, %32 : vector<16x16xf32>
    %300 = arith.addf %284, %299 : vector<16x16xf32>
    %c50 = arith.constant 50 : index
    %301 = memref.load %arg2[%c50] : memref<144xf32, #tpu.memory_space<smem>>
    %302 = vector.broadcast %301 : f32 to vector<16x16xf32>
    %303 = arith.mulf %302, %34 : vector<16x16xf32>
    %304 = arith.addf %288, %303 : vector<16x16xf32>
    %c51 = arith.constant 51 : index
    %305 = memref.load %arg2[%c51] : memref<144xf32, #tpu.memory_space<smem>>
    %306 = vector.broadcast %305 : f32 to vector<16x16xf32>
    %307 = arith.mulf %306, %36 : vector<16x16xf32>
    %308 = arith.addf %292, %307 : vector<16x16xf32>
    %c52 = arith.constant 52 : index
    %309 = memref.load %arg2[%c52] : memref<144xf32, #tpu.memory_space<smem>>
    %310 = vector.broadcast %309 : f32 to vector<16x16xf32>
    %311 = arith.mulf %310, %38 : vector<16x16xf32>
    %312 = arith.addf %296, %311 : vector<16x16xf32>
    %c53 = arith.constant 53 : index
    %313 = memref.load %arg2[%c53] : memref<144xf32, #tpu.memory_space<smem>>
    %314 = vector.broadcast %313 : f32 to vector<16x16xf32>
    %315 = arith.mulf %314, %40 : vector<16x16xf32>
    %316 = arith.addf %300, %315 : vector<16x16xf32>
    %c54 = arith.constant 54 : index
    %317 = memref.load %arg2[%c54] : memref<144xf32, #tpu.memory_space<smem>>
    %318 = vector.broadcast %317 : f32 to vector<16x16xf32>
    %319 = arith.mulf %318, %42 : vector<16x16xf32>
    %320 = arith.addf %304, %319 : vector<16x16xf32>
    %c55 = arith.constant 55 : index
    %321 = memref.load %arg2[%c55] : memref<144xf32, #tpu.memory_space<smem>>
    %322 = vector.broadcast %321 : f32 to vector<16x16xf32>
    %323 = arith.mulf %322, %44 : vector<16x16xf32>
    %324 = arith.addf %308, %323 : vector<16x16xf32>
    %c56 = arith.constant 56 : index
    %325 = memref.load %arg2[%c56] : memref<144xf32, #tpu.memory_space<smem>>
    %326 = vector.broadcast %325 : f32 to vector<16x16xf32>
    %327 = arith.mulf %326, %46 : vector<16x16xf32>
    %328 = arith.addf %312, %327 : vector<16x16xf32>
    %c57 = arith.constant 57 : index
    %329 = memref.load %arg2[%c57] : memref<144xf32, #tpu.memory_space<smem>>
    %330 = vector.broadcast %329 : f32 to vector<16x16xf32>
    %331 = arith.mulf %330, %48 : vector<16x16xf32>
    %332 = arith.addf %316, %331 : vector<16x16xf32>
    %c58 = arith.constant 58 : index
    %333 = memref.load %arg2[%c58] : memref<144xf32, #tpu.memory_space<smem>>
    %334 = vector.broadcast %333 : f32 to vector<16x16xf32>
    %335 = arith.mulf %334, %50 : vector<16x16xf32>
    %336 = arith.addf %320, %335 : vector<16x16xf32>
    %c59 = arith.constant 59 : index
    %337 = memref.load %arg2[%c59] : memref<144xf32, #tpu.memory_space<smem>>
    %338 = vector.broadcast %337 : f32 to vector<16x16xf32>
    %339 = arith.mulf %338, %52 : vector<16x16xf32>
    %340 = arith.addf %324, %339 : vector<16x16xf32>
    %c60 = arith.constant 60 : index
    %341 = memref.load %arg2[%c60] : memref<144xf32, #tpu.memory_space<smem>>
    %342 = vector.broadcast %341 : f32 to vector<16x16xf32>
    %343 = arith.mulf %342, %54 : vector<16x16xf32>
    %344 = arith.addf %328, %343 : vector<16x16xf32>
    %c61 = arith.constant 61 : index
    %345 = memref.load %arg2[%c61] : memref<144xf32, #tpu.memory_space<smem>>
    %346 = vector.broadcast %345 : f32 to vector<16x16xf32>
    %347 = arith.mulf %346, %56 : vector<16x16xf32>
    %348 = arith.addf %332, %347 : vector<16x16xf32>
    %c62 = arith.constant 62 : index
    %349 = memref.load %arg2[%c62] : memref<144xf32, #tpu.memory_space<smem>>
    %350 = vector.broadcast %349 : f32 to vector<16x16xf32>
    %351 = arith.mulf %350, %58 : vector<16x16xf32>
    %352 = arith.addf %336, %351 : vector<16x16xf32>
    %c63 = arith.constant 63 : index
    %353 = memref.load %arg2[%c63] : memref<144xf32, #tpu.memory_space<smem>>
    %354 = vector.broadcast %353 : f32 to vector<16x16xf32>
    %355 = arith.mulf %354, %60 : vector<16x16xf32>
    %356 = arith.addf %340, %355 : vector<16x16xf32>
    %c64 = arith.constant 64 : index
    %357 = memref.load %arg2[%c64] : memref<144xf32, #tpu.memory_space<smem>>
    %358 = vector.broadcast %357 : f32 to vector<16x16xf32>
    %359 = arith.mulf %358, %62 : vector<16x16xf32>
    %360 = arith.addf %344, %359 : vector<16x16xf32>
    %c65 = arith.constant 65 : index
    %361 = memref.load %arg2[%c65] : memref<144xf32, #tpu.memory_space<smem>>
    %362 = vector.broadcast %361 : f32 to vector<16x16xf32>
    %363 = arith.mulf %362, %64 : vector<16x16xf32>
    %364 = arith.addf %348, %363 : vector<16x16xf32>
    %c66 = arith.constant 66 : index
    %365 = memref.load %arg2[%c66] : memref<144xf32, #tpu.memory_space<smem>>
    %366 = vector.broadcast %365 : f32 to vector<16x16xf32>
    %367 = arith.mulf %366, %66 : vector<16x16xf32>
    %368 = arith.addf %352, %367 : vector<16x16xf32>
    %c67 = arith.constant 67 : index
    %369 = memref.load %arg2[%c67] : memref<144xf32, #tpu.memory_space<smem>>
    %370 = vector.broadcast %369 : f32 to vector<16x16xf32>
    %371 = arith.mulf %370, %68 : vector<16x16xf32>
    %372 = arith.addf %356, %371 : vector<16x16xf32>
    %c68 = arith.constant 68 : index
    %373 = memref.load %arg2[%c68] : memref<144xf32, #tpu.memory_space<smem>>
    %374 = vector.broadcast %373 : f32 to vector<16x16xf32>
    %375 = arith.mulf %374, %70 : vector<16x16xf32>
    %376 = arith.addf %360, %375 : vector<16x16xf32>
    %c69 = arith.constant 69 : index
    %377 = memref.load %arg2[%c69] : memref<144xf32, #tpu.memory_space<smem>>
    %378 = vector.broadcast %377 : f32 to vector<16x16xf32>
    %379 = arith.mulf %378, %72 : vector<16x16xf32>
    %380 = arith.addf %364, %379 : vector<16x16xf32>
    %c70 = arith.constant 70 : index
    %381 = memref.load %arg2[%c70] : memref<144xf32, #tpu.memory_space<smem>>
    %382 = vector.broadcast %381 : f32 to vector<16x16xf32>
    %383 = arith.mulf %382, %74 : vector<16x16xf32>
    %384 = arith.addf %368, %383 : vector<16x16xf32>
    %c71 = arith.constant 71 : index
    %385 = memref.load %arg2[%c71] : memref<144xf32, #tpu.memory_space<smem>>
    %386 = vector.broadcast %385 : f32 to vector<16x16xf32>
    %387 = arith.mulf %386, %76 : vector<16x16xf32>
    %388 = arith.addf %372, %387 : vector<16x16xf32>
    %389 = arith.addf %376, %380 : vector<16x16xf32>
    %390 = arith.addf %384, %388 : vector<16x16xf32>
    %391 = arith.addf %389, %390 : vector<16x16xf32>
    %c1_131 = arith.constant 1 : index
    %392 = memref.load %arg3[%c1_131] : memref<4xf32, #tpu.memory_space<smem>>
    %393 = vector.broadcast %392 : f32 to vector<16x16xf32>
    %394 = arith.addf %391, %393 : vector<16x16xf32>
    %cst_132 = arith.constant 0.000000e+00 : f32
    %395 = vector.broadcast %cst_132 : f32 to vector<16x16xf32>
    %396 = arith.cmpf ogt, %394, %395 : vector<16x16xf32>
    %397 = math.exp %394 : vector<16x16xf32>
    %cst_133 = arith.constant 1.000000e+00 : f32
    %398 = vector.broadcast %cst_133 : f32 to vector<16x16xf32>
    %399 = arith.subf %397, %398 : vector<16x16xf32>
    %cst_134 = arith.constant 1.67326319 : f32
    %400 = vector.broadcast %cst_134 : f32 to vector<16x16xf32>
    %401 = arith.mulf %400, %399 : vector<16x16xf32>
    %402 = arith.select %396, %394, %401 : vector<16x16xi1>, vector<16x16xf32>
    %cst_135 = arith.constant 1.05070102 : f32
    %403 = vector.broadcast %cst_135 : f32 to vector<16x16xf32>
    %404 = arith.mulf %403, %402 : vector<16x16xf32>
    %cst_136 = arith.constant 0.000000e+00 : f32
    %405 = vector.broadcast %cst_136 : f32 to vector<16x16xf32>
    %cst_137 = arith.constant 0.000000e+00 : f32
    %406 = vector.broadcast %cst_137 : f32 to vector<16x16xf32>
    %cst_138 = arith.constant 0.000000e+00 : f32
    %407 = vector.broadcast %cst_138 : f32 to vector<16x16xf32>
    %cst_139 = arith.constant 0.000000e+00 : f32
    %408 = vector.broadcast %cst_139 : f32 to vector<16x16xf32>
    %c72 = arith.constant 72 : index
    %409 = memref.load %arg2[%c72] : memref<144xf32, #tpu.memory_space<smem>>
    %410 = vector.broadcast %409 : f32 to vector<16x16xf32>
    %411 = arith.mulf %410, %6 : vector<16x16xf32>
    %412 = arith.addf %405, %411 : vector<16x16xf32>
    %c73 = arith.constant 73 : index
    %413 = memref.load %arg2[%c73] : memref<144xf32, #tpu.memory_space<smem>>
    %414 = vector.broadcast %413 : f32 to vector<16x16xf32>
    %415 = arith.mulf %414, %8 : vector<16x16xf32>
    %416 = arith.addf %406, %415 : vector<16x16xf32>
    %c74 = arith.constant 74 : index
    %417 = memref.load %arg2[%c74] : memref<144xf32, #tpu.memory_space<smem>>
    %418 = vector.broadcast %417 : f32 to vector<16x16xf32>
    %419 = arith.mulf %418, %10 : vector<16x16xf32>
    %420 = arith.addf %407, %419 : vector<16x16xf32>
    %c75 = arith.constant 75 : index
    %421 = memref.load %arg2[%c75] : memref<144xf32, #tpu.memory_space<smem>>
    %422 = vector.broadcast %421 : f32 to vector<16x16xf32>
    %423 = arith.mulf %422, %12 : vector<16x16xf32>
    %424 = arith.addf %408, %423 : vector<16x16xf32>
    %c76 = arith.constant 76 : index
    %425 = memref.load %arg2[%c76] : memref<144xf32, #tpu.memory_space<smem>>
    %426 = vector.broadcast %425 : f32 to vector<16x16xf32>
    %427 = arith.mulf %426, %14 : vector<16x16xf32>
    %428 = arith.addf %412, %427 : vector<16x16xf32>
    %c77 = arith.constant 77 : index
    %429 = memref.load %arg2[%c77] : memref<144xf32, #tpu.memory_space<smem>>
    %430 = vector.broadcast %429 : f32 to vector<16x16xf32>
    %431 = arith.mulf %430, %16 : vector<16x16xf32>
    %432 = arith.addf %416, %431 : vector<16x16xf32>
    %c78 = arith.constant 78 : index
    %433 = memref.load %arg2[%c78] : memref<144xf32, #tpu.memory_space<smem>>
    %434 = vector.broadcast %433 : f32 to vector<16x16xf32>
    %435 = arith.mulf %434, %18 : vector<16x16xf32>
    %436 = arith.addf %420, %435 : vector<16x16xf32>
    %c79 = arith.constant 79 : index
    %437 = memref.load %arg2[%c79] : memref<144xf32, #tpu.memory_space<smem>>
    %438 = vector.broadcast %437 : f32 to vector<16x16xf32>
    %439 = arith.mulf %438, %20 : vector<16x16xf32>
    %440 = arith.addf %424, %439 : vector<16x16xf32>
    %c80 = arith.constant 80 : index
    %441 = memref.load %arg2[%c80] : memref<144xf32, #tpu.memory_space<smem>>
    %442 = vector.broadcast %441 : f32 to vector<16x16xf32>
    %443 = arith.mulf %442, %22 : vector<16x16xf32>
    %444 = arith.addf %428, %443 : vector<16x16xf32>
    %c81 = arith.constant 81 : index
    %445 = memref.load %arg2[%c81] : memref<144xf32, #tpu.memory_space<smem>>
    %446 = vector.broadcast %445 : f32 to vector<16x16xf32>
    %447 = arith.mulf %446, %24 : vector<16x16xf32>
    %448 = arith.addf %432, %447 : vector<16x16xf32>
    %c82 = arith.constant 82 : index
    %449 = memref.load %arg2[%c82] : memref<144xf32, #tpu.memory_space<smem>>
    %450 = vector.broadcast %449 : f32 to vector<16x16xf32>
    %451 = arith.mulf %450, %26 : vector<16x16xf32>
    %452 = arith.addf %436, %451 : vector<16x16xf32>
    %c83 = arith.constant 83 : index
    %453 = memref.load %arg2[%c83] : memref<144xf32, #tpu.memory_space<smem>>
    %454 = vector.broadcast %453 : f32 to vector<16x16xf32>
    %455 = arith.mulf %454, %28 : vector<16x16xf32>
    %456 = arith.addf %440, %455 : vector<16x16xf32>
    %c84 = arith.constant 84 : index
    %457 = memref.load %arg2[%c84] : memref<144xf32, #tpu.memory_space<smem>>
    %458 = vector.broadcast %457 : f32 to vector<16x16xf32>
    %459 = arith.mulf %458, %30 : vector<16x16xf32>
    %460 = arith.addf %444, %459 : vector<16x16xf32>
    %c85 = arith.constant 85 : index
    %461 = memref.load %arg2[%c85] : memref<144xf32, #tpu.memory_space<smem>>
    %462 = vector.broadcast %461 : f32 to vector<16x16xf32>
    %463 = arith.mulf %462, %32 : vector<16x16xf32>
    %464 = arith.addf %448, %463 : vector<16x16xf32>
    %c86 = arith.constant 86 : index
    %465 = memref.load %arg2[%c86] : memref<144xf32, #tpu.memory_space<smem>>
    %466 = vector.broadcast %465 : f32 to vector<16x16xf32>
    %467 = arith.mulf %466, %34 : vector<16x16xf32>
    %468 = arith.addf %452, %467 : vector<16x16xf32>
    %c87 = arith.constant 87 : index
    %469 = memref.load %arg2[%c87] : memref<144xf32, #tpu.memory_space<smem>>
    %470 = vector.broadcast %469 : f32 to vector<16x16xf32>
    %471 = arith.mulf %470, %36 : vector<16x16xf32>
    %472 = arith.addf %456, %471 : vector<16x16xf32>
    %c88 = arith.constant 88 : index
    %473 = memref.load %arg2[%c88] : memref<144xf32, #tpu.memory_space<smem>>
    %474 = vector.broadcast %473 : f32 to vector<16x16xf32>
    %475 = arith.mulf %474, %38 : vector<16x16xf32>
    %476 = arith.addf %460, %475 : vector<16x16xf32>
    %c89 = arith.constant 89 : index
    %477 = memref.load %arg2[%c89] : memref<144xf32, #tpu.memory_space<smem>>
    %478 = vector.broadcast %477 : f32 to vector<16x16xf32>
    %479 = arith.mulf %478, %40 : vector<16x16xf32>
    %480 = arith.addf %464, %479 : vector<16x16xf32>
    %c90 = arith.constant 90 : index
    %481 = memref.load %arg2[%c90] : memref<144xf32, #tpu.memory_space<smem>>
    %482 = vector.broadcast %481 : f32 to vector<16x16xf32>
    %483 = arith.mulf %482, %42 : vector<16x16xf32>
    %484 = arith.addf %468, %483 : vector<16x16xf32>
    %c91 = arith.constant 91 : index
    %485 = memref.load %arg2[%c91] : memref<144xf32, #tpu.memory_space<smem>>
    %486 = vector.broadcast %485 : f32 to vector<16x16xf32>
    %487 = arith.mulf %486, %44 : vector<16x16xf32>
    %488 = arith.addf %472, %487 : vector<16x16xf32>
    %c92 = arith.constant 92 : index
    %489 = memref.load %arg2[%c92] : memref<144xf32, #tpu.memory_space<smem>>
    %490 = vector.broadcast %489 : f32 to vector<16x16xf32>
    %491 = arith.mulf %490, %46 : vector<16x16xf32>
    %492 = arith.addf %476, %491 : vector<16x16xf32>
    %c93 = arith.constant 93 : index
    %493 = memref.load %arg2[%c93] : memref<144xf32, #tpu.memory_space<smem>>
    %494 = vector.broadcast %493 : f32 to vector<16x16xf32>
    %495 = arith.mulf %494, %48 : vector<16x16xf32>
    %496 = arith.addf %480, %495 : vector<16x16xf32>
    %c94 = arith.constant 94 : index
    %497 = memref.load %arg2[%c94] : memref<144xf32, #tpu.memory_space<smem>>
    %498 = vector.broadcast %497 : f32 to vector<16x16xf32>
    %499 = arith.mulf %498, %50 : vector<16x16xf32>
    %500 = arith.addf %484, %499 : vector<16x16xf32>
    %c95 = arith.constant 95 : index
    %501 = memref.load %arg2[%c95] : memref<144xf32, #tpu.memory_space<smem>>
    %502 = vector.broadcast %501 : f32 to vector<16x16xf32>
    %503 = arith.mulf %502, %52 : vector<16x16xf32>
    %504 = arith.addf %488, %503 : vector<16x16xf32>
    %c96 = arith.constant 96 : index
    %505 = memref.load %arg2[%c96] : memref<144xf32, #tpu.memory_space<smem>>
    %506 = vector.broadcast %505 : f32 to vector<16x16xf32>
    %507 = arith.mulf %506, %54 : vector<16x16xf32>
    %508 = arith.addf %492, %507 : vector<16x16xf32>
    %c97 = arith.constant 97 : index
    %509 = memref.load %arg2[%c97] : memref<144xf32, #tpu.memory_space<smem>>
    %510 = vector.broadcast %509 : f32 to vector<16x16xf32>
    %511 = arith.mulf %510, %56 : vector<16x16xf32>
    %512 = arith.addf %496, %511 : vector<16x16xf32>
    %c98 = arith.constant 98 : index
    %513 = memref.load %arg2[%c98] : memref<144xf32, #tpu.memory_space<smem>>
    %514 = vector.broadcast %513 : f32 to vector<16x16xf32>
    %515 = arith.mulf %514, %58 : vector<16x16xf32>
    %516 = arith.addf %500, %515 : vector<16x16xf32>
    %c99 = arith.constant 99 : index
    %517 = memref.load %arg2[%c99] : memref<144xf32, #tpu.memory_space<smem>>
    %518 = vector.broadcast %517 : f32 to vector<16x16xf32>
    %519 = arith.mulf %518, %60 : vector<16x16xf32>
    %520 = arith.addf %504, %519 : vector<16x16xf32>
    %c100 = arith.constant 100 : index
    %521 = memref.load %arg2[%c100] : memref<144xf32, #tpu.memory_space<smem>>
    %522 = vector.broadcast %521 : f32 to vector<16x16xf32>
    %523 = arith.mulf %522, %62 : vector<16x16xf32>
    %524 = arith.addf %508, %523 : vector<16x16xf32>
    %c101 = arith.constant 101 : index
    %525 = memref.load %arg2[%c101] : memref<144xf32, #tpu.memory_space<smem>>
    %526 = vector.broadcast %525 : f32 to vector<16x16xf32>
    %527 = arith.mulf %526, %64 : vector<16x16xf32>
    %528 = arith.addf %512, %527 : vector<16x16xf32>
    %c102 = arith.constant 102 : index
    %529 = memref.load %arg2[%c102] : memref<144xf32, #tpu.memory_space<smem>>
    %530 = vector.broadcast %529 : f32 to vector<16x16xf32>
    %531 = arith.mulf %530, %66 : vector<16x16xf32>
    %532 = arith.addf %516, %531 : vector<16x16xf32>
    %c103 = arith.constant 103 : index
    %533 = memref.load %arg2[%c103] : memref<144xf32, #tpu.memory_space<smem>>
    %534 = vector.broadcast %533 : f32 to vector<16x16xf32>
    %535 = arith.mulf %534, %68 : vector<16x16xf32>
    %536 = arith.addf %520, %535 : vector<16x16xf32>
    %c104 = arith.constant 104 : index
    %537 = memref.load %arg2[%c104] : memref<144xf32, #tpu.memory_space<smem>>
    %538 = vector.broadcast %537 : f32 to vector<16x16xf32>
    %539 = arith.mulf %538, %70 : vector<16x16xf32>
    %540 = arith.addf %524, %539 : vector<16x16xf32>
    %c105 = arith.constant 105 : index
    %541 = memref.load %arg2[%c105] : memref<144xf32, #tpu.memory_space<smem>>
    %542 = vector.broadcast %541 : f32 to vector<16x16xf32>
    %543 = arith.mulf %542, %72 : vector<16x16xf32>
    %544 = arith.addf %528, %543 : vector<16x16xf32>
    %c106 = arith.constant 106 : index
    %545 = memref.load %arg2[%c106] : memref<144xf32, #tpu.memory_space<smem>>
    %546 = vector.broadcast %545 : f32 to vector<16x16xf32>
    %547 = arith.mulf %546, %74 : vector<16x16xf32>
    %548 = arith.addf %532, %547 : vector<16x16xf32>
    %c107 = arith.constant 107 : index
    %549 = memref.load %arg2[%c107] : memref<144xf32, #tpu.memory_space<smem>>
    %550 = vector.broadcast %549 : f32 to vector<16x16xf32>
    %551 = arith.mulf %550, %76 : vector<16x16xf32>
    %552 = arith.addf %536, %551 : vector<16x16xf32>
    %553 = arith.addf %540, %544 : vector<16x16xf32>
    %554 = arith.addf %548, %552 : vector<16x16xf32>
    %555 = arith.addf %553, %554 : vector<16x16xf32>
    %c2_140 = arith.constant 2 : index
    %556 = memref.load %arg3[%c2_140] : memref<4xf32, #tpu.memory_space<smem>>
    %557 = vector.broadcast %556 : f32 to vector<16x16xf32>
    %558 = arith.addf %555, %557 : vector<16x16xf32>
    %cst_141 = arith.constant 0.000000e+00 : f32
    %559 = vector.broadcast %cst_141 : f32 to vector<16x16xf32>
    %560 = arith.cmpf ogt, %558, %559 : vector<16x16xf32>
    %561 = math.exp %558 : vector<16x16xf32>
    %cst_142 = arith.constant 1.000000e+00 : f32
    %562 = vector.broadcast %cst_142 : f32 to vector<16x16xf32>
    %563 = arith.subf %561, %562 : vector<16x16xf32>
    %cst_143 = arith.constant 1.67326319 : f32
    %564 = vector.broadcast %cst_143 : f32 to vector<16x16xf32>
    %565 = arith.mulf %564, %563 : vector<16x16xf32>
    %566 = arith.select %560, %558, %565 : vector<16x16xi1>, vector<16x16xf32>
    %cst_144 = arith.constant 1.05070102 : f32
    %567 = vector.broadcast %cst_144 : f32 to vector<16x16xf32>
    %568 = arith.mulf %567, %566 : vector<16x16xf32>
    %cst_145 = arith.constant 0.000000e+00 : f32
    %569 = vector.broadcast %cst_145 : f32 to vector<16x16xf32>
    %cst_146 = arith.constant 0.000000e+00 : f32
    %570 = vector.broadcast %cst_146 : f32 to vector<16x16xf32>
    %cst_147 = arith.constant 0.000000e+00 : f32
    %571 = vector.broadcast %cst_147 : f32 to vector<16x16xf32>
    %cst_148 = arith.constant 0.000000e+00 : f32
    %572 = vector.broadcast %cst_148 : f32 to vector<16x16xf32>
    %c108 = arith.constant 108 : index
    %573 = memref.load %arg2[%c108] : memref<144xf32, #tpu.memory_space<smem>>
    %574 = vector.broadcast %573 : f32 to vector<16x16xf32>
    %575 = arith.mulf %574, %6 : vector<16x16xf32>
    %576 = arith.addf %569, %575 : vector<16x16xf32>
    %c109 = arith.constant 109 : index
    %577 = memref.load %arg2[%c109] : memref<144xf32, #tpu.memory_space<smem>>
    %578 = vector.broadcast %577 : f32 to vector<16x16xf32>
    %579 = arith.mulf %578, %8 : vector<16x16xf32>
    %580 = arith.addf %570, %579 : vector<16x16xf32>
    %c110 = arith.constant 110 : index
    %581 = memref.load %arg2[%c110] : memref<144xf32, #tpu.memory_space<smem>>
    %582 = vector.broadcast %581 : f32 to vector<16x16xf32>
    %583 = arith.mulf %582, %10 : vector<16x16xf32>
    %584 = arith.addf %571, %583 : vector<16x16xf32>
    %c111 = arith.constant 111 : index
    %585 = memref.load %arg2[%c111] : memref<144xf32, #tpu.memory_space<smem>>
    %586 = vector.broadcast %585 : f32 to vector<16x16xf32>
    %587 = arith.mulf %586, %12 : vector<16x16xf32>
    %588 = arith.addf %572, %587 : vector<16x16xf32>
    %c112 = arith.constant 112 : index
    %589 = memref.load %arg2[%c112] : memref<144xf32, #tpu.memory_space<smem>>
    %590 = vector.broadcast %589 : f32 to vector<16x16xf32>
    %591 = arith.mulf %590, %14 : vector<16x16xf32>
    %592 = arith.addf %576, %591 : vector<16x16xf32>
    %c113 = arith.constant 113 : index
    %593 = memref.load %arg2[%c113] : memref<144xf32, #tpu.memory_space<smem>>
    %594 = vector.broadcast %593 : f32 to vector<16x16xf32>
    %595 = arith.mulf %594, %16 : vector<16x16xf32>
    %596 = arith.addf %580, %595 : vector<16x16xf32>
    %c114 = arith.constant 114 : index
    %597 = memref.load %arg2[%c114] : memref<144xf32, #tpu.memory_space<smem>>
    %598 = vector.broadcast %597 : f32 to vector<16x16xf32>
    %599 = arith.mulf %598, %18 : vector<16x16xf32>
    %600 = arith.addf %584, %599 : vector<16x16xf32>
    %c115 = arith.constant 115 : index
    %601 = memref.load %arg2[%c115] : memref<144xf32, #tpu.memory_space<smem>>
    %602 = vector.broadcast %601 : f32 to vector<16x16xf32>
    %603 = arith.mulf %602, %20 : vector<16x16xf32>
    %604 = arith.addf %588, %603 : vector<16x16xf32>
    %c116 = arith.constant 116 : index
    %605 = memref.load %arg2[%c116] : memref<144xf32, #tpu.memory_space<smem>>
    %606 = vector.broadcast %605 : f32 to vector<16x16xf32>
    %607 = arith.mulf %606, %22 : vector<16x16xf32>
    %608 = arith.addf %592, %607 : vector<16x16xf32>
    %c117 = arith.constant 117 : index
    %609 = memref.load %arg2[%c117] : memref<144xf32, #tpu.memory_space<smem>>
    %610 = vector.broadcast %609 : f32 to vector<16x16xf32>
    %611 = arith.mulf %610, %24 : vector<16x16xf32>
    %612 = arith.addf %596, %611 : vector<16x16xf32>
    %c118 = arith.constant 118 : index
    %613 = memref.load %arg2[%c118] : memref<144xf32, #tpu.memory_space<smem>>
    %614 = vector.broadcast %613 : f32 to vector<16x16xf32>
    %615 = arith.mulf %614, %26 : vector<16x16xf32>
    %616 = arith.addf %600, %615 : vector<16x16xf32>
    %c119 = arith.constant 119 : index
    %617 = memref.load %arg2[%c119] : memref<144xf32, #tpu.memory_space<smem>>
    %618 = vector.broadcast %617 : f32 to vector<16x16xf32>
    %619 = arith.mulf %618, %28 : vector<16x16xf32>
    %620 = arith.addf %604, %619 : vector<16x16xf32>
    %c120 = arith.constant 120 : index
    %621 = memref.load %arg2[%c120] : memref<144xf32, #tpu.memory_space<smem>>
    %622 = vector.broadcast %621 : f32 to vector<16x16xf32>
    %623 = arith.mulf %622, %30 : vector<16x16xf32>
    %624 = arith.addf %608, %623 : vector<16x16xf32>
    %c121 = arith.constant 121 : index
    %625 = memref.load %arg2[%c121] : memref<144xf32, #tpu.memory_space<smem>>
    %626 = vector.broadcast %625 : f32 to vector<16x16xf32>
    %627 = arith.mulf %626, %32 : vector<16x16xf32>
    %628 = arith.addf %612, %627 : vector<16x16xf32>
    %c122 = arith.constant 122 : index
    %629 = memref.load %arg2[%c122] : memref<144xf32, #tpu.memory_space<smem>>
    %630 = vector.broadcast %629 : f32 to vector<16x16xf32>
    %631 = arith.mulf %630, %34 : vector<16x16xf32>
    %632 = arith.addf %616, %631 : vector<16x16xf32>
    %c123 = arith.constant 123 : index
    %633 = memref.load %arg2[%c123] : memref<144xf32, #tpu.memory_space<smem>>
    %634 = vector.broadcast %633 : f32 to vector<16x16xf32>
    %635 = arith.mulf %634, %36 : vector<16x16xf32>
    %636 = arith.addf %620, %635 : vector<16x16xf32>
    %c124 = arith.constant 124 : index
    %637 = memref.load %arg2[%c124] : memref<144xf32, #tpu.memory_space<smem>>
    %638 = vector.broadcast %637 : f32 to vector<16x16xf32>
    %639 = arith.mulf %638, %38 : vector<16x16xf32>
    %640 = arith.addf %624, %639 : vector<16x16xf32>
    %c125 = arith.constant 125 : index
    %641 = memref.load %arg2[%c125] : memref<144xf32, #tpu.memory_space<smem>>
    %642 = vector.broadcast %641 : f32 to vector<16x16xf32>
    %643 = arith.mulf %642, %40 : vector<16x16xf32>
    %644 = arith.addf %628, %643 : vector<16x16xf32>
    %c126 = arith.constant 126 : index
    %645 = memref.load %arg2[%c126] : memref<144xf32, #tpu.memory_space<smem>>
    %646 = vector.broadcast %645 : f32 to vector<16x16xf32>
    %647 = arith.mulf %646, %42 : vector<16x16xf32>
    %648 = arith.addf %632, %647 : vector<16x16xf32>
    %c127 = arith.constant 127 : index
    %649 = memref.load %arg2[%c127] : memref<144xf32, #tpu.memory_space<smem>>
    %650 = vector.broadcast %649 : f32 to vector<16x16xf32>
    %651 = arith.mulf %650, %44 : vector<16x16xf32>
    %652 = arith.addf %636, %651 : vector<16x16xf32>
    %c128 = arith.constant 128 : index
    %653 = memref.load %arg2[%c128] : memref<144xf32, #tpu.memory_space<smem>>
    %654 = vector.broadcast %653 : f32 to vector<16x16xf32>
    %655 = arith.mulf %654, %46 : vector<16x16xf32>
    %656 = arith.addf %640, %655 : vector<16x16xf32>
    %c129 = arith.constant 129 : index
    %657 = memref.load %arg2[%c129] : memref<144xf32, #tpu.memory_space<smem>>
    %658 = vector.broadcast %657 : f32 to vector<16x16xf32>
    %659 = arith.mulf %658, %48 : vector<16x16xf32>
    %660 = arith.addf %644, %659 : vector<16x16xf32>
    %c130 = arith.constant 130 : index
    %661 = memref.load %arg2[%c130] : memref<144xf32, #tpu.memory_space<smem>>
    %662 = vector.broadcast %661 : f32 to vector<16x16xf32>
    %663 = arith.mulf %662, %50 : vector<16x16xf32>
    %664 = arith.addf %648, %663 : vector<16x16xf32>
    %c131 = arith.constant 131 : index
    %665 = memref.load %arg2[%c131] : memref<144xf32, #tpu.memory_space<smem>>
    %666 = vector.broadcast %665 : f32 to vector<16x16xf32>
    %667 = arith.mulf %666, %52 : vector<16x16xf32>
    %668 = arith.addf %652, %667 : vector<16x16xf32>
    %c132 = arith.constant 132 : index
    %669 = memref.load %arg2[%c132] : memref<144xf32, #tpu.memory_space<smem>>
    %670 = vector.broadcast %669 : f32 to vector<16x16xf32>
    %671 = arith.mulf %670, %54 : vector<16x16xf32>
    %672 = arith.addf %656, %671 : vector<16x16xf32>
    %c133 = arith.constant 133 : index
    %673 = memref.load %arg2[%c133] : memref<144xf32, #tpu.memory_space<smem>>
    %674 = vector.broadcast %673 : f32 to vector<16x16xf32>
    %675 = arith.mulf %674, %56 : vector<16x16xf32>
    %676 = arith.addf %660, %675 : vector<16x16xf32>
    %c134 = arith.constant 134 : index
    %677 = memref.load %arg2[%c134] : memref<144xf32, #tpu.memory_space<smem>>
    %678 = vector.broadcast %677 : f32 to vector<16x16xf32>
    %679 = arith.mulf %678, %58 : vector<16x16xf32>
    %680 = arith.addf %664, %679 : vector<16x16xf32>
    %c135 = arith.constant 135 : index
    %681 = memref.load %arg2[%c135] : memref<144xf32, #tpu.memory_space<smem>>
    %682 = vector.broadcast %681 : f32 to vector<16x16xf32>
    %683 = arith.mulf %682, %60 : vector<16x16xf32>
    %684 = arith.addf %668, %683 : vector<16x16xf32>
    %c136 = arith.constant 136 : index
    %685 = memref.load %arg2[%c136] : memref<144xf32, #tpu.memory_space<smem>>
    %686 = vector.broadcast %685 : f32 to vector<16x16xf32>
    %687 = arith.mulf %686, %62 : vector<16x16xf32>
    %688 = arith.addf %672, %687 : vector<16x16xf32>
    %c137 = arith.constant 137 : index
    %689 = memref.load %arg2[%c137] : memref<144xf32, #tpu.memory_space<smem>>
    %690 = vector.broadcast %689 : f32 to vector<16x16xf32>
    %691 = arith.mulf %690, %64 : vector<16x16xf32>
    %692 = arith.addf %676, %691 : vector<16x16xf32>
    %c138 = arith.constant 138 : index
    %693 = memref.load %arg2[%c138] : memref<144xf32, #tpu.memory_space<smem>>
    %694 = vector.broadcast %693 : f32 to vector<16x16xf32>
    %695 = arith.mulf %694, %66 : vector<16x16xf32>
    %696 = arith.addf %680, %695 : vector<16x16xf32>
    %c139 = arith.constant 139 : index
    %697 = memref.load %arg2[%c139] : memref<144xf32, #tpu.memory_space<smem>>
    %698 = vector.broadcast %697 : f32 to vector<16x16xf32>
    %699 = arith.mulf %698, %68 : vector<16x16xf32>
    %700 = arith.addf %684, %699 : vector<16x16xf32>
    %c140 = arith.constant 140 : index
    %701 = memref.load %arg2[%c140] : memref<144xf32, #tpu.memory_space<smem>>
    %702 = vector.broadcast %701 : f32 to vector<16x16xf32>
    %703 = arith.mulf %702, %70 : vector<16x16xf32>
    %704 = arith.addf %688, %703 : vector<16x16xf32>
    %c141 = arith.constant 141 : index
    %705 = memref.load %arg2[%c141] : memref<144xf32, #tpu.memory_space<smem>>
    %706 = vector.broadcast %705 : f32 to vector<16x16xf32>
    %707 = arith.mulf %706, %72 : vector<16x16xf32>
    %708 = arith.addf %692, %707 : vector<16x16xf32>
    %c142 = arith.constant 142 : index
    %709 = memref.load %arg2[%c142] : memref<144xf32, #tpu.memory_space<smem>>
    %710 = vector.broadcast %709 : f32 to vector<16x16xf32>
    %711 = arith.mulf %710, %74 : vector<16x16xf32>
    %712 = arith.addf %696, %711 : vector<16x16xf32>
    %c143 = arith.constant 143 : index
    %713 = memref.load %arg2[%c143] : memref<144xf32, #tpu.memory_space<smem>>
    %714 = vector.broadcast %713 : f32 to vector<16x16xf32>
    %715 = arith.mulf %714, %76 : vector<16x16xf32>
    %716 = arith.addf %700, %715 : vector<16x16xf32>
    %717 = arith.addf %704, %708 : vector<16x16xf32>
    %718 = arith.addf %712, %716 : vector<16x16xf32>
    %719 = arith.addf %717, %718 : vector<16x16xf32>
    %c3_149 = arith.constant 3 : index
    %720 = memref.load %arg3[%c3_149] : memref<4xf32, #tpu.memory_space<smem>>
    %721 = vector.broadcast %720 : f32 to vector<16x16xf32>
    %722 = arith.addf %719, %721 : vector<16x16xf32>
    %cst_150 = arith.constant 0.000000e+00 : f32
    %723 = vector.broadcast %cst_150 : f32 to vector<16x16xf32>
    %724 = arith.cmpf ogt, %722, %723 : vector<16x16xf32>
    %725 = math.exp %722 : vector<16x16xf32>
    %cst_151 = arith.constant 1.000000e+00 : f32
    %726 = vector.broadcast %cst_151 : f32 to vector<16x16xf32>
    %727 = arith.subf %725, %726 : vector<16x16xf32>
    %cst_152 = arith.constant 1.67326319 : f32
    %728 = vector.broadcast %cst_152 : f32 to vector<16x16xf32>
    %729 = arith.mulf %728, %727 : vector<16x16xf32>
    %730 = arith.select %724, %722, %729 : vector<16x16xi1>, vector<16x16xf32>
    %cst_153 = arith.constant 1.05070102 : f32
    %731 = vector.broadcast %cst_153 : f32 to vector<16x16xf32>
    %732 = arith.mulf %731, %730 : vector<16x16xf32>
    %733 = tpu.concatenate %240, %404, %568, %732 in 0 : vector<16x16xf32>, vector<16x16xf32>, vector<16x16xf32>, vector<16x16xf32> -> vector<64x16xf32>
    %c0_154 = arith.constant 0 : index
    %c0_155 = arith.constant 0 : index
    %734 = vector.load %arg4[%c0_154, %c0_155] : memref<128x64xf32, #tpu.memory_space<vmem>>, vector<128x64xf32>
    %cst_156 = arith.constant dense<0.000000e+00> : vector<128x16xf32>
    %735 = tpu.matmul %734, %733, %cst_156 {dimension_numbers = #tpu.dot_dimension_numbers<[1], [0], [0], [1], [0, 0, 1, 1], [], []>, precision = #tpu.contract_precision<fp32>} : vector<128x64xf32>, vector<64x16xf32>, vector<128x16xf32> -> vector<128x16xf32>
    %c0_157 = arith.constant 0 : index
    %c0_158 = arith.constant 0 : index
    %736 = vector.load %arg5[%c0_157, %c0_158] : memref<16x32xf32, #tpu.memory_space<vmem>>, vector<16x32xf32>
    %cst_159 = arith.constant dense<0.000000e+00> : vector<128x32xf32>
    %737 = tpu.matmul %735, %736, %cst_159 {dimension_numbers = #tpu.dot_dimension_numbers<[1], [0], [0], [1], [0, 0, 1, 1], [], []>, precision = #tpu.contract_precision<fp32>} : vector<128x16xf32>, vector<16x32xf32>, vector<128x32xf32> -> vector<128x32xf32>
    %738 = vector.extract_strided_slice %737 {offsets = [0, 0], sizes = [32, 32], strides = [1, 1]} : vector<128x32xf32> to vector<32x32xf32>
    %c0_160 = arith.constant 0 : index
    %c0_161 = arith.constant 0 : index
    %c0_162 = arith.constant 0 : index
    %c0_163 = arith.constant 0 : index
    %739 = vector.load %arg6[%c0_160, %c0_161, %c0_162, %c0_163] : memref<1x4x32x32xf32, #tpu.memory_space<vmem>>, vector<1x1x32x32xf32>
    %740 = vector.shape_cast %739 : vector<1x1x32x32xf32> to vector<32x32xf32>
    %741 = vector.shape_cast %738 : vector<32x32xf32> to vector<1x1x32x32xf32>
    tpu.vector_store %arg6[%c0_160, %c0_161, %c0_162, %c0_163], %741 {strides = array<i32>} : memref<1x4x32x32xf32, #tpu.memory_space<vmem>>, vector<1x1x32x32xf32>,
    %742 = vector.extract_strided_slice %737 {offsets = [32, 0], sizes = [32, 32], strides = [1, 1]} : vector<128x32xf32> to vector<32x32xf32>
    %c0_164 = arith.constant 0 : index
    %c1_165 = arith.constant 1 : index
    %c0_166 = arith.constant 0 : index
    %c0_167 = arith.constant 0 : index
    %743 = vector.load %arg6[%c0_164, %c1_165, %c0_166, %c0_167] : memref<1x4x32x32xf32, #tpu.memory_space<vmem>>, vector<1x1x32x32xf32>
    %744 = vector.shape_cast %743 : vector<1x1x32x32xf32> to vector<32x32xf32>
    %745 = vector.shape_cast %742 : vector<32x32xf32> to vector<1x1x32x32xf32>
    tpu.vector_store %arg6[%c0_164, %c1_165, %c0_166, %c0_167], %745 {strides = array<i32>} : memref<1x4x32x32xf32, #tpu.memory_space<vmem>>, vector<1x1x32x32xf32>,
    %746 = vector.extract_strided_slice %737 {offsets = [64, 0], sizes = [32, 32], strides = [1, 1]} : vector<128x32xf32> to vector<32x32xf32>
    %c0_168 = arith.constant 0 : index
    %c2_169 = arith.constant 2 : index
    %c0_170 = arith.constant 0 : index
    %c0_171 = arith.constant 0 : index
    %747 = vector.load %arg6[%c0_168, %c2_169, %c0_170, %c0_171] : memref<1x4x32x32xf32, #tpu.memory_space<vmem>>, vector<1x1x32x32xf32>
    %748 = vector.shape_cast %747 : vector<1x1x32x32xf32> to vector<32x32xf32>
    %749 = vector.shape_cast %746 : vector<32x32xf32> to vector<1x1x32x32xf32>
    tpu.vector_store %arg6[%c0_168, %c2_169, %c0_170, %c0_171], %749 {strides = array<i32>} : memref<1x4x32x32xf32, #tpu.memory_space<vmem>>, vector<1x1x32x32xf32>,
    %750 = vector.extract_strided_slice %737 {offsets = [96, 0], sizes = [32, 32], strides = [1, 1]} : vector<128x32xf32> to vector<32x32xf32>
    %c0_172 = arith.constant 0 : index
    %c3_173 = arith.constant 3 : index
    %c0_174 = arith.constant 0 : index
    %c0_175 = arith.constant 0 : index
    %751 = vector.load %arg6[%c0_172, %c3_173, %c0_174, %c0_175] : memref<1x4x32x32xf32, #tpu.memory_space<vmem>>, vector<1x1x32x32xf32>
    %752 = vector.shape_cast %751 : vector<1x1x32x32xf32> to vector<32x32xf32>
    %753 = vector.shape_cast %750 : vector<32x32xf32> to vector<1x1x32x32xf32>
    tpu.vector_store %arg6[%c0_172, %c3_173, %c0_174, %c0_175], %753 {strides = array<i32>} : memref<1x4x32x32xf32, #tpu.memory_space<vmem>>, vector<1x1x32x32xf32>,
    return
  }
  func.func @transform_0(%arg0: i32) -> (i32, i32, i32, i32) {
    %c0_i32 = arith.constant 0 : i32
    %c0_i32_0 = arith.constant 0 : i32
    %c0_i32_1 = arith.constant 0 : i32
    %c0_i32_2 = arith.constant 0 : i32
    return %arg0, %c0_i32, %c0_i32_0, %c0_i32_1 : i32, i32, i32, i32
  }
  func.func @transform_1(%arg0: i32) -> i32 {
    %c0_i32 = arith.constant 0 : i32
    %c0_i32_0 = arith.constant 0 : i32
    return %c0_i32 : i32
  }
  func.func @transform_2(%arg0: i32) -> i32 {
    %c0_i32 = arith.constant 0 : i32
    %c0_i32_0 = arith.constant 0 : i32
    return %c0_i32 : i32
  }
  func.func @transform_3(%arg0: i32) -> (i32, i32) {
    %c0_i32 = arith.constant 0 : i32
    %c0_i32_0 = arith.constant 0 : i32
    %c0_i32_1 = arith.constant 0 : i32
    return %c0_i32, %c0_i32_0 : i32, i32
  }
  func.func @transform_4(%arg0: i32) -> (i32, i32) {
    %c0_i32 = arith.constant 0 : i32
    %c0_i32_0 = arith.constant 0 : i32
    %c0_i32_1 = arith.constant 0 : i32
    return %c0_i32, %c0_i32_0 : i32, i32
  }
  func.func @transform_5(%arg0: i32) -> (i32, i32, i32, i32) {
    %c0_i32 = arith.constant 0 : i32
    %c0_i32_0 = arith.constant 0 : i32
    %c0_i32_1 = arith.constant 0 : i32
    %c0_i32_2 = arith.constant 0 : i32
    return %arg0, %c0_i32, %c0_i32_0, %c0_i32_1 : i32, i32, i32, i32
  }
}

</mosaic_0001>

<bundles_post_ra>
// kernel: tpu_custom_call.1
= control target key start
LH: loop header
LB: loop body
LE: loop exit
PB: predicated region body
PF: predicated region fallthrough
CT: control target
= control target key end

     0   :  { %10 = vsyncpa [#allocation5], 0  ;;  %s8124_s0 = inlined_call_operand.vmem [shape: f32[2,4,16,16], index: 0, kind: input, shape index: {}]   ;;  %s8125_s1 = inlined_call_operand.vmem [shape: f32[144], index: 1, kind: input, shape index: {}]   ;;  %s8126_s2 = inlined_call_operand.vmem [shape: f32[4], index: 2, kind: input, shape index: {}]   ;;  %s8127_s3 = inlined_call_operand.vmem [shape: f32[128,64], index: 3, kind: input, shape index: {}]   ;;  %s8128_s4 = inlined_call_operand.vmem [shape: f32[16,32], index: 4, kind: input, shape index: {}]   ;;  %s8129_s5 = inlined_call_operand.hbm [shape: f32[2,4,32,32], index: 5, kind: output, shape index: {}]  }
   0x1   :  { %11 = vsyncpa [#allocation7], 0 }
   0x2   :  { %12 = vsyncpa [#allocation4], 0 }
   0x3   :  { %14 = vsyncpa [#allocation4 + $0x1], 0  ;;  %s6051_s18 = smov 0   ;;  %s6053_s19 = smov 0  }
   0x4   :  { %s6055_s20 = smov 0   ;;  %s6057_s21 = smov 0  }
   0x5 LB: > { %s6072_s22 = sadd.s32 4294967295, %s6009_s21   ;;  %s4684_s23 = sadd.s32 4294967294, %s6009_s21   ;;  %s6009_s21 = sphi %s6057_s21, %s8223_s21   ;;  %s6005_s20 = sphi %s6055_s20, %s8222_s20   ;;  %s6001_s19 = sphi %s6053_s19, %s8221_s19   ;;  %s5997_s18 = sphi %s6051_s18, %s8220_s18  }
   0x6   : > { %s6076_s24 = sadd.s32 1, %s6009_s21   ;;  %s137_s25 = sadd.s32 1, %s6005_s20 }
   0x7   : > { %s134_s26 = ssub.s32 %s6009_s21, %s6076_s24  ;;  %p147_p0 = scmp.ne.s32.totalorder %s6005_s20, %s6001_s19 }
   0x8   : > { %p135_p1 = scmp.eq.s32.totalorder %s134_s26, 0  ;;  %p148_p2 = scmp.eq.s32.totalorder %s6072_s22, 1 }
   0x9   : > { %p153_p3 = scmp.ne.s32.totalorder %s6001_s19, %s5997_s18  ;;  %p154_p4 = scmp.eq.s32.totalorder %s4684_s23, 1 }
   0xa   : > { %s6087_s27 = scalar_select %p135_p1, %s6005_s20, %s137_s25  }
   0xb   : > { %p6089_p5 = por %p148_p2, %p147_p0  ;;  %p6093_p6 = por %p154_p4, %p153_p3 }
   0xc   : > { %p4685_p7 = scmp.ge.s32.totalorder %s6009_s21, 1  ;;  %p161_p8 = scmp.lt.s32.totalorder %s6009_s21, 3 }
   0xd   : > { %s8139_s28 = scalar_select %p6089_p5, 1, 0 }
   0xe   : > { %s8140_s29 = scalar_select %p6093_p6, 1, 0 }
   0xf   : > { %p8130_p9 = scmp.eq.s32.totalorder %s6072_s22, 0  ;;  %p6100_p10 = pnand %p4685_p7, %p161_p8 }
  0x10   : > { %s174_s8 = sshll.u32 %s8125_s1, 4  ;;  %s185_s11 = sshll.u32 %s8126_s2, 4  ;;  %s175_s8 = int_to_ptr.vmem [resolvable:$true] %s174_s8  ;;  %s186_s11 = int_to_ptr.vmem [resolvable:$true] %s185_s11 }
  0x11   : > { %s8141_s30 = scalar_select %p6100_p10, 1, 0 }
  0x12   : > { %p5818_p11 = pneg %p6100_p10  ;;  %s5909_s13 = scalar_lea.vmem %s175_s8, 32 }
  0x13   : > { %p5910_p13 = scmp.ne.s32.totalorder %s175_s8, %s5909_s13  ;;  %p5917_p3 = scmp.lt.s32.totalorder %s175_s8, %s175_s8 }
  0x14   : > { %p6114_p12 = pnand %p8130_p9, %p5818_p11  ;;  %p5918_p4 = scmp.lt.s32.totalorder %s5909_s13, %s5909_s13 }
  0x16   : > { %p5911_p0 = pneg %p6114_p12  ;;  %p5919_p7 = por %p5918_p4, %p5917_p3 }
  0x18   : > { %p5912_p1 = pnand %p5911_p0, %p5910_p13 }
  0x1a   : > { %p5913_p2 = pneg %p5912_p1 }
  0x1c   : > { %p5920_p8 = pnand %p5919_p7, %p5913_p2 }
  0x1e   : > { %5923 = shalt.err (!%p5920_p8)
}
  0x1f   : > { %s6011_s14 = smov [#allocation3]   ;;  %s5924_s15 = scalar_lea.vmem %s186_s11, 16 }
  0x20   : > { %5821 = dma.vmem_to_smem (!%p6114_p12), %s175_s8, 32, %s6011_s14, [#allocation5]  }
  0x21   : > { %p5925_p11 = scmp.ne.s32.totalorder %s186_s11, %s5924_s15  ;;  %p5932_p5 = scmp.lt.s32.totalorder %s186_s11, %s186_s11 }
  0x22   : > { %p5933_p10 = scmp.lt.s32.totalorder %s5924_s15, %s5924_s15 }
  0x23   : > { %p5927_p9 = pnand %p5925_p11, %p5911_p0 }
  0x24   : > { %p5934_p13 = por %p5933_p10, %p5932_p5 }
  0x25   : > { %p5928_p6 = pneg %p5927_p9 }
  0x27   : > { %p5935_p1 = pnand %p5934_p13, %p5928_p6 }
  0x29   : > { %5938 = shalt.err (!%p5935_p1)
}
  0x2a   : > { %s6012_s16 = smov [#allocation6]   ;;  %p8143_p2 = scmp.ne.s32.totalorder %s8141_s30, 0 }
  0x2b   : > { %5824 = dma.vmem_to_smem (!%p6114_p12), %s186_s11, 16, %s6012_s16, [#allocation7]  }
  0x2c   : > { %212 = sbr.rel (%p8143_p2) target bundleno = 1573 (0x625), region = 40 }
  0x33   : > { %p8144_p3 = scmp.eq.s32.totalorder %s6072_s22, 0 }
  0x35   : > { %5984 = dma.done.wait (%p8144_p3), [#allocation5], 32   ;;  %p8145_p4 = pmov %p8144_p3 }
  0x36   : > { %p8146_p9 = pmov %p8144_p3 }
  0x37   : > { %5986 = vsyncadd (%p8145_p4), [#allocation5], 4294967264 }
  0x38   : > { %5988 = dma.done.wait (%p8146_p9), [#allocation7], 16   ;;  %p8147_p5 = pmov %p8144_p3 }
  0x3a   : > { %5990 = vsyncadd (%p8147_p5), [#allocation7], 4294967280 }
  0x3b   : > { %222 = sfence }
  0x3c   : > { %p245_p6 = scmp.lt.s32.totalorder %s6072_s22, 1  ;;  %vm250_vm0 = vcmask 146432   ;;  %vm253_vm1 = vcmask 140288   ;;  %v6013_v0 = vmov 0.0   ;;  %s6014_s6 = smov 1   ;;  %vm304_vm2 = vcmask 138248  }
  0x3d   : > { %255 = vst.msk [vmem:[#allocation2 + $0x18] sm:$0xff] %vm250_vm0, %v6013_v0  ;;  %256 = vst.msk [vmem:[#allocation2 + $0x20] sm:$0xff] %vm250_vm0, %v6013_v0  ;;  %s4701_s7 = sld [smem:[#allocation3 + $0x7]]  ;;  %s4705_s8 = sld [smem:[#allocation3 + $0xb]]  ;;  %vm2180_vm3 = vcmask 523264   ;;  %vm3413_vm12 = vcmask 130048  }
  0x3e   : > { %251 = vst.msk [vmem:[#allocation2] sm:$0xff] %vm250_vm0, %v6013_v0  ;;  %252 = vst.msk [vmem:[#allocation2 + $0x8] sm:$0xff] %vm250_vm0, %v6013_v0  ;;  %s246_s17 = scalar_select %p245_p6, %s6072_s22, 1  ;;  %vm4566_vm13 = vcmask 261120  }
  0x3f   : > { %258 = vst.msk [vmem:[#allocation2 + $0x30] sm:$0xff] %vm250_vm0, %v6013_v0  ;;  %259 = vst.msk [vmem:[#allocation2 + $0x38] sm:$0xff] %vm250_vm0, %v6013_v0  ;;  %s4739_s9 = sld [smem:[#allocation3 + $0x2b]]  ;;  %s6015_s11 = smov 127  }
  0x40   : > { %261 = vst.msk [vmem:[#allocation2 + $0x48] sm:$0xff] %vm250_vm0, %v6013_v0  ;;  %262 = vst.msk [vmem:[#allocation2 + $0x50] sm:$0xff] %vm250_vm0, %v6013_v0  ;;  %s4866_s23 = sshll.u32 %s246_s17, 6  ;;  %s4713_s10 = sld [smem:[#allocation3 + $0x13]] }
  0x41   : > { %257 = vst.msk [vmem:[#allocation2 + $0x28] sm:$0x3] %vm253_vm1, %v6013_v0  ;;  %254 = vst.msk [vmem:[#allocation2 + $0x10] sm:$0x3] %vm253_vm1, %v6013_v0  ;;  %s249_s30 = scalar_lea.vmem %s8124_s0, %s4866_s23  ;;  %s4743_s12 = sld [smem:[#allocation3 + $0x2f]] }
  0x42   : > { %260 = vst.msk [vmem:[#allocation2 + $0x40] sm:$0x3] %vm253_vm1, %v6013_v0  ;;  %263 = vst.msk [vmem:[#allocation2 + $0x58] sm:$0x3] %vm253_vm1, %v6013_v0  ;;  %v266_v1 = vld [vmem:[%s249_s30 + $0x10] sm:$0xff]  ;;  %v264_v2 = vld [vmem:[%s249_s30] sm:$0xff] }
  0x43   : > { %284 = vrot.lane.b32.xlu1 %v266_v1, %s6014_s6  ;;  %280 = vrot.lane.b32.xlu0 %v264_v2, %s6014_s6  ;;  %v267_v3 = vld [vmem:[%s249_s30 + $0x18] sm:$0xff]  ;;  %v265_v4 = vld [vmem:[%s249_s30 + $0x8] sm:$0xff]  ;;  %s6016_s13 = smov 126   ;;  %s4717_s14 = sld [smem:[#allocation3 + $0x17]] }
  0x44   : > { %v269_v5 = vld [vmem:[%s249_s30 + $0x28] sm:$0xff]  ;;  %v268_v6 = vld [vmem:[%s249_s30 + $0x20] sm:$0xff]  ;;  %v271_v7 = vld [vmem:[%s249_s30 + $0x38] sm:$0xff]  ;;  %v407_v15 = vstv %s4701_s7  ;;  %s4778_s15 = sld [smem:[#allocation3 + $0x4f]]  ;;  %s4782_s17 = sld [smem:[#allocation3 + $0x53]] }
  0x45   : > { %v270_v8 = vld [vmem:[%s249_s30 + $0x30] sm:$0xff]  ;;  %v463_v24 = vstv %s4705_s8  ;;  %v863_v27 = vstv %s4739_s9  ;;  %s4751_s16 = sld [smem:[#allocation3 + $0x37]]  ;;  %s4755_s25 = sld [smem:[#allocation3 + $0x3b]] }
  0x46   : > { %v543_v30 = vstv %s4713_s10  ;;  %s4725_s23 = sld [smem:[#allocation3 + $0x1f]]  ;;  %s4817_s26 = sld [smem:[#allocation3 + $0x73]] }
  0x47   : > { %286 = vrot.lane.b32.xlu1 %v267_v3, %s6014_s6  ;;  %282 = vrot.lane.b32.xlu0 %v265_v4, %s6014_s6  ;;  %v919_v35 = vstv %s4743_s12  ;;  %s4729_s30 = sld [smem:[#allocation3 + $0x23]]  ;;  %s4821_s8 = sld [smem:[#allocation3 + $0x77]] }
  0x48   : > { %s4790_s7 = sld [smem:[#allocation3 + $0x5b]]  ;;  %s4794_s10 = sld [smem:[#allocation3 + $0x5f]] }
  0x49   : > { %v599_v40 = vstv %s4717_s14  ;;  %s4763_s9 = sld [smem:[#allocation3 + $0x43]]  ;;  %s4767_s12 = sld [smem:[#allocation3 + $0x47]] }
  0x4a   : > { %v1319_v43 = vstv %s4778_s15  ;;  %v1375_v49 = vstv %s4782_s17  ;;  %s4829_s14 = sld [smem:[#allocation3 + $0x7f]]  ;;  %s4806_s17 = sld [smem:[#allocation3 + $0x6b]] }
  0x4b   : > { %290 = vrot.lane.b32.xlu1 %v269_v5, %s6014_s6  ;;  %288 = vrot.lane.b32.xlu0 %v268_v6, %s6014_s6  ;;  %v999_v46 = vstv %s4751_s16  ;;  %v1055_v57 = vstv %s4755_s25  ;;  %s4802_s15 = sld [smem:[#allocation3 + $0x67]]  ;;  %s4833_s16 = sld [smem:[#allocation3 + $0x83]] }
  0x4c   : > { %v679_v52 = vstv %s4725_s23  ;;  %v1775_v60 = vstv %s4817_s26  ;;  %s4841_s23 = sld [smem:[#allocation3 + $0x8b]]  ;;  %s4845_s25 = sld [smem:[#allocation3 + $0x8f]] }
  0x4d   : > { %v735_v1 = vstv %s4729_s30  ;;  %s4699_s26 = sld [smem:[#allocation3 + $0x5]]  ;;  %s4700_s30 = sld [smem:[#allocation3 + $0x6]] }
  0x4e   : > { %v1455_v4 = vstv %s4790_s7  ;;  %s4703_s7 = sld [smem:[#allocation3 + $0x9]]  ;;  %p8218_p12 = scmp.ne.s32.totalorder %s8139_s28, 0 }
  0x4f   : > { %294 = vrot.lane.b32.xlu1 %v271_v7, %s6014_s6  ;;  %292 = vrot.lane.b32.xlu0 %v270_v8, %s6014_s6  ;;  %v1831_v7 = vstv %s4821_s8  ;;  %s4704_s8 = sld [smem:[#allocation3 + $0xa]] }
  0xb5   : > { %v285_v9 = vpop.permute.xlu1 %284  ;;  %v281_v10 = vpop.permute.xlu0 %280 }
  0xb6   : > { %307 = vst.msk [vmem:[#allocation2 + $0x19] sm:$0xff] %vm304_vm2, %v285_v9  ;;  %305 = vst.msk [vmem:[#allocation2 + $0x1] sm:$0xff] %vm304_vm2, %v281_v10  ;;  %v1135_v10 = vstv %s4763_s9  ;;  %s4737_s9 = sld [smem:[#allocation3 + $0x29]] }
  0xb9   : > { %v287_v11 = vpop.permute.xlu1 %286  ;;  %v283_v12 = vpop.permute.xlu0 %282 }
  0xba   : > { %308 = vst.msk [vmem:[#allocation2 + $0x21] sm:$0xff] %vm304_vm2, %v287_v11  ;;  %306 = vst.msk [vmem:[#allocation2 + $0x9] sm:$0xff] %vm304_vm2, %v283_v12 }
  0xbd   : > { %v291_v13 = vpop.permute.xlu1 %290  ;;  %v289_v14 = vpop.permute.xlu0 %288  ;;  %v6163_v22 = vld [vmem:[#allocation2 + $0x18] sm:$0xff] }
  0xbe   : > { %310 = vst.msk [vmem:[#allocation2 + $0x39] sm:$0xff] %vm304_vm2, %v291_v13  ;;  %309 = vst.msk [vmem:[#allocation2 + $0x31] sm:$0xff] %vm304_vm2, %v289_v14  ;;  %v464_v26 = vmul.f32 %v463_v24, %v6163_v22  ;;  %v920_v37 = vmul.f32 %v919_v35, %v6163_v22  ;;  %v1376_v54 = vmul.f32 %v1375_v49, %v6163_v22  ;;  %v1511_v13 = vstv %s4794_s10  ;;  %s6017_s10 = smov 2  }
  0xbf   : > { %v1832_v9 = vmul.f32 %v1831_v7, %v6163_v22 }
  0xc1   : > { %v295_v16 = vpop.permute.xlu1 %294  ;;  %v293_v17 = vpop.permute.xlu0 %292  ;;  %v6157_v18 = vld [vmem:[#allocation2 + $0x2] sm:$0xff]  ;;  %v6159_v19 = vld [vmem:[#allocation2 + $0xa] sm:$0xff] }
  0xc2   : > { %312 = vst.msk [vmem:[#allocation2 + $0x51] sm:$0xff] %vm304_vm2, %v295_v16  ;;  %311 = vst.msk [vmem:[#allocation2 + $0x49] sm:$0xff] %vm304_vm2, %v293_v17  ;;  %v409_v20 = vmul.f32 %v407_v15, %v6159_v19  ;;  %v408_v21 = vmul.f32 %v407_v15, %v6157_v18  ;;  %v6165_v23 = vld [vmem:[#allocation2 + $0x20] sm:$0xff]  ;;  %v865_v31 = vmul.f32 %v863_v27, %v6159_v19  ;;  %v1191_v16 = vstv %s4767_s12  ;;  %s4738_s12 = sld [smem:[#allocation3 + $0x2a]] }
  0xc3   : > { %v465_v25 = vmul.f32 %v463_v24, %v6165_v23  ;;  %v864_v32 = vmul.f32 %v863_v27, %v6157_v18  ;;  %v921_v36 = vmul.f32 %v919_v35, %v6165_v23  ;;  %v1321_v44 = vmul.f32 %v1319_v43, %v6159_v19 }
  0xc4   : > { %414 = vrot.lane.b32.xlu1 %v409_v20, %s6015_s11  ;;  %412 = vrot.lane.b32.xlu0 %v408_v21, %s6015_s11  ;;  %v1320_v45 = vmul.f32 %v1319_v43, %v6157_v18  ;;  %v1377_v53 = vmul.f32 %v1375_v49, %v6165_v23  ;;  %v1777_v61 = vmul.f32 %v1775_v60, %v6159_v19  ;;  %v1911_v21 = vstv %s4829_s14  ;;  %s4697_s14 = sld [smem:[#allocation3 + $0x3]] }
  0xc5   : > { %v6173_v28 = vld [vmem:[#allocation2 + $0x30] sm:$0xff]  ;;  %v6175_v29 = vld [vmem:[#allocation2 + $0x38] sm:$0xff]  ;;  %v1776_v62 = vmul.f32 %v1775_v60, %v6157_v18  ;;  %v1833_v8 = vmul.f32 %v1831_v7, %v6165_v23 }
  0xc6   : > { %v545_v33 = vmul.f32 %v543_v30, %v6175_v29  ;;  %v544_v34 = vmul.f32 %v543_v30, %v6173_v28  ;;  %v6187_v38 = vld [vmem:[#allocation2 + $0x39] sm:$0xff]  ;;  %v6189_v39 = vld [vmem:[#allocation2 + $0x31] sm:$0xff]  ;;  %v1001_v47 = vmul.f32 %v999_v46, %v6175_v29  ;;  %v1000_v48 = vmul.f32 %v999_v46, %v6173_v28  ;;  %v6277_v46 = vld [vmem:[#allocation2 + $0x9] sm:$0xff] }
  0xc7   : > { %v601_v41 = vmul.f32 %v599_v40, %v6187_v38  ;;  %v600_v42 = vmul.f32 %v599_v40, %v6189_v39  ;;  %v1057_v58 = vmul.f32 %v1055_v57, %v6187_v38  ;;  %v1056_v59 = vmul.f32 %v1055_v57, %v6189_v39 }
  0xc8   : > { %470 = vrot.lane.b32.xlu1 %v465_v25, %s6016_s13  ;;  %468 = vrot.lane.b32.xlu0 %v464_v26, %s6016_s13  ;;  %v1457_v5 = vmul.f32 %v1455_v4, %v6175_v29  ;;  %v1456_v6 = vmul.f32 %v1455_v4, %v6173_v28  ;;  %v1513_v14 = vmul.f32 %v1511_v13, %v6187_v38  ;;  %v1591_v26 = vstv %s4802_s15  ;;  %s4711_s15 = sld [smem:[#allocation3 + $0x11]] }
  0xc9   : > { %v6205_v50 = vld [vmem:[#allocation2 + $0x51] sm:$0xff]  ;;  %v6207_v51 = vld [vmem:[#allocation2 + $0x49] sm:$0xff]  ;;  %v1512_v15 = vmul.f32 %v1511_v13, %v6189_v39  ;;  %v1913_v24 = vmul.f32 %v1911_v21, %v6175_v29  ;;  %v1912_v25 = vmul.f32 %v1911_v21, %v6173_v28 }
  0xca   : > { %v681_v55 = vmul.f32 %v679_v52, %v6205_v50  ;;  %v680_v56 = vmul.f32 %v679_v52, %v6207_v51  ;;  %v6223_v63 = vld [vmem:[#allocation2 + $0x52] sm:$0xff]  ;;  %v6225_v0 = vld [vmem:[#allocation2 + $0x4a] sm:$0xff]  ;;  %v1137_v11 = vmul.f32 %v1135_v10, %v6205_v50  ;;  %v1136_v12 = vmul.f32 %v1135_v10, %v6207_v51 }
  0xcb   : > { %v737_v2 = vmul.f32 %v735_v1, %v6223_v63  ;;  %v736_v3 = vmul.f32 %v735_v1, %v6225_v0  ;;  %v1193_v17 = vmul.f32 %v1191_v16, %v6223_v63  ;;  %v1192_v20 = vmul.f32 %v1191_v16, %v6225_v0 }
  0xcc   : > { %870 = vrot.lane.b32.xlu1 %v865_v31, %s6015_s11  ;;  %868 = vrot.lane.b32.xlu0 %v864_v32, %s6015_s11  ;;  %v1593_v27 = vmul.f32 %v1591_v26, %v6205_v50  ;;  %v1592_v30 = vmul.f32 %v1591_v26, %v6207_v51  ;;  %v1967_v31 = vstv %s4833_s16  ;;  %v393_v52 = vstv %s4700_s30  ;;  %s6297_s16 = sld [smem:[#allocation3 + $0xf]]  ;;  %s6329_s30 = sld [smem:[#allocation3 + $0x33]] }
  0xcd   : > { %v1969_v32 = vmul.f32 %v1967_v31, %v6187_v38 }
  0xd0   : > { %550 = vrot.lane.b32.xlu1 %v545_v33, %s6015_s11  ;;  %548 = vrot.lane.b32.xlu0 %v544_v34, %s6015_s11  ;;  %v1968_v33 = vmul.f32 %v1967_v31, %v6189_v39  ;;  %v1647_v34 = vstv %s4806_s17  ;;  %s6301_s17 = sld [smem:[#allocation3 + $0x12]] }
  0xd1   : > { %v1649_v35 = vmul.f32 %v1647_v34, %v6223_v63 }
  0xd2   : > { %v495_v13 = vstv %s6297_s16  ;;  %s6380_s16 = sld [smem:[#allocation3 + $0x57]] }
  0xd4   : > { %926 = vrot.lane.b32.xlu1 %v921_v36, %s6016_s13  ;;  %924 = vrot.lane.b32.xlu0 %v920_v37, %s6016_s13  ;;  %v1648_v36 = vmul.f32 %v1647_v34, %v6225_v0  ;;  %v2047_v37 = vstv %s4841_s23  ;;  %s6313_s23 = sld [smem:[#allocation3 + $0x2d]] }
  0xd5   : > { %v2049_v40 = vmul.f32 %v2047_v37, %v6205_v50 }
  0xd8   : > { %606 = vrot.lane.b32.xlu1 %v601_v41, %s6016_s13  ;;  %604 = vrot.lane.b32.xlu0 %v600_v42, %s6016_s13  ;;  %v2048_v41 = vmul.f32 %v2047_v37, %v6207_v51  ;;  %v2103_v42 = vstv %s4845_s25  ;;  %s6317_s25 = sld [smem:[#allocation3 + $0x27]] }
  0xd9   : > { %v2105_v43 = vmul.f32 %v2103_v42, %v6223_v63 }
  0xda   : > { %v891_v37 = vstv %s6313_s23  ;;  %s6399_s23 = sld [smem:[#allocation3 + $0x36]] }
  0xdc   : > { %1326 = vrot.lane.b32.xlu1 %v1321_v44, %s6015_s11  ;;  %1324 = vrot.lane.b32.xlu0 %v1320_v45, %s6015_s11  ;;  %v2104_v44 = vmul.f32 %v2103_v42, %v6225_v0  ;;  %v6275_v45 = vld [vmem:[#allocation2 + $0x1] sm:$0xff] }
  0xe0   : > { %1006 = vrot.lane.b32.xlu1 %v1001_v47, %s6015_s11  ;;  %1004 = vrot.lane.b32.xlu0 %v1000_v48, %s6015_s11  ;;  %v379_v47 = vstv %s4699_s26  ;;  %s6325_s26 = sld [smem:[#allocation3 + $0x2e]] }
  0xe1   : > { %v381_v48 = vmul.f32 %v379_v47, %v6277_v46  ;;  %v380_v49 = vmul.f32 %v379_v47, %v6275_v45 }
  0xe4   : > { %1382 = vrot.lane.b32.xlu1 %v1377_v53, %s6016_s13  ;;  %1380 = vrot.lane.b32.xlu0 %v1376_v54, %s6016_s13  ;;  %v395_v53 = vmul.f32 %v393_v52, %v6159_v19  ;;  %v394_v54 = vmul.f32 %v393_v52, %v6157_v18  ;;  %v951_v52 = vstv %s6329_s30  ;;  %s6426_s30 = sld [smem:[#allocation3 + $0x52]] }
  0xe8   : > { %686 = vrot.lane.b32.xlu1 %v681_v55, %s6015_s11  ;;  %684 = vrot.lane.b32.xlu0 %v680_v56, %s6015_s11  ;;  %v435_v55 = vstv %s4703_s7  ;;  %s6333_s7 = sld [smem:[#allocation3 + $0x15]] }
  0xe9   : > { %v437_v56 = vmul.f32 %v435_v55, %v6165_v23  ;;  %v436_v57 = vmul.f32 %v435_v55, %v6163_v22 }
  0xec   : > { %1062 = vrot.lane.b32.xlu1 %v1057_v58, %s6016_s13  ;;  %1060 = vrot.lane.b32.xlu0 %v1056_v59, %s6016_s13  ;;  %v449_v58 = vstv %s4704_s8  ;;  %s6339_s8 = sld [smem:[#allocation3 + $0x1b]] }
  0xed   : > { %v451_v59 = vmul.f32 %v449_v58, %v6165_v23  ;;  %v450_v60 = vmul.f32 %v449_v58, %v6163_v22 }
  0xf0   : > { %1782 = vrot.lane.b32.xlu1 %v1777_v61, %s6015_s11  ;;  %1780 = vrot.lane.b32.xlu0 %v1776_v62, %s6015_s11  ;;  %v835_v61 = vstv %s4737_s9  ;;  %s6343_s9 = sld [smem:[#allocation3 + $0x16]] }
  0xf1   : > { %v837_v62 = vmul.f32 %v835_v61, %v6277_v46  ;;  %v836_v1 = vmul.f32 %v835_v61, %v6275_v45 }
  0xf4   : > { %742 = vrot.lane.b32.xlu1 %v737_v2, %s6016_s13  ;;  %740 = vrot.lane.b32.xlu0 %v736_v3, %s6016_s13  ;;  %v849_v2 = vstv %s4738_s12  ;;  %v359_v3 = vstv %s4697_s14  ;;  %s6356_s12 = sld [smem:[#allocation3 + $0x4d]]  ;;  %s6364_s14 = sld [smem:[#allocation3 + $0x4b]] }
  0xf5   : > { %v850_v7 = vmul.f32 %v849_v2, %v6157_v18  ;;  %v361_v10 = vmul.f32 %v359_v3, %v6277_v46 }
  0xf8   : > { %1462 = vrot.lane.b32.xlu1 %v1457_v5, %s6015_s11  ;;  %1460 = vrot.lane.b32.xlu0 %v1456_v6, %s6015_s11  ;;  %v851_v6 = vmul.f32 %v849_v2, %v6159_v19  ;;  %v6358_v2 = vld [vmem:[#allocation2 + $0x48] sm:$0xff] }
  0xfc   : > { %1838 = vrot.lane.b32.xlu1 %v1833_v8, %s6016_s13  ;;  %1836 = vrot.lane.b32.xlu0 %v1832_v9, %s6016_s13  ;;  %v6307_v8 = vld [vmem:[#allocation2 + $0x1a] sm:$0xff]  ;;  %v6309_v9 = vld [vmem:[#allocation2 + $0x22] sm:$0xff] }
 0x100   : > { %1142 = vrot.lane.b32.xlu1 %v1137_v11, %s6015_s11  ;;  %1140 = vrot.lane.b32.xlu0 %v1136_v12, %s6015_s11  ;;  %v360_v11 = vmul.f32 %v359_v3, %v6275_v45  ;;  %v515_v12 = vstv %s4711_s15  ;;  %v6360_v3 = vld [vmem:[#allocation2 + $0x50] sm:$0xff]  ;;  %s6374_s15 = sld [smem:[#allocation3 + $0x4e]] }
 0x101   : > { %v516_v21 = vmul.f32 %v515_v12, %v6307_v8 }
 0x104   : > { %1518 = vrot.lane.b32.xlu1 %v1513_v14, %s6016_s13  ;;  %1516 = vrot.lane.b32.xlu0 %v1512_v15, %s6016_s13 }
 0x108   : > { %1198 = vrot.lane.b32.xlu1 %v1193_v17, %s6016_s13  ;;  %1196 = vrot.lane.b32.xlu0 %v1192_v20, %s6016_s13  ;;  %v517_v20 = vmul.f32 %v515_v12, %v6309_v9 }
 0x10c   : > { %1918 = vrot.lane.b32.xlu1 %v1913_v24, %s6015_s11  ;;  %1916 = vrot.lane.b32.xlu0 %v1912_v25, %s6015_s11  ;;  %v529_v24 = vstv %s6301_s17  ;;  %s6388_s17 = sld [smem:[#allocation3 + $0x35]] }
 0x110   : > { %1598 = vrot.lane.b32.xlu1 %v1593_v27, %s6015_s11  ;;  %1596 = vrot.lane.b32.xlu0 %v1592_v30, %s6015_s11  ;;  %v497_v27 = vmul.f32 %v495_v13, %v6309_v9  ;;  %v496_v30 = vmul.f32 %v495_v13, %v6307_v8 }
 0x114   : > { %1974 = vrot.lane.b32.xlu1 %v1969_v32, %s6016_s13  ;;  %1972 = vrot.lane.b32.xlu0 %v1968_v33, %s6016_s13 }
 0x118   : > { %1654 = vrot.lane.b32.xlu1 %v1649_v35, %s6016_s13  ;;  %1652 = vrot.lane.b32.xlu0 %v1648_v36, %s6016_s13  ;;  %v531_v35 = vmul.f32 %v529_v24, %v6175_v29  ;;  %v530_v36 = vmul.f32 %v529_v24, %v6173_v28 }
 0x11c   : > { %2054 = vrot.lane.b32.xlu1 %v2049_v40, %s6015_s11  ;;  %2052 = vrot.lane.b32.xlu0 %v2048_v41, %s6015_s11  ;;  %v815_v40 = vstv %s6317_s25  ;;  %s6404_s25 = sld [smem:[#allocation3 + $0x3f]] }
 0x11d   : > { %v817_v47 = vmul.f32 %v815_v40, %v6277_v46 }
 0x120   : > { %2110 = vrot.lane.b32.xlu1 %v2105_v43, %s6016_s13  ;;  %2108 = vrot.lane.b32.xlu0 %v2104_v44, %s6016_s13  ;;  %v893_v43 = vmul.f32 %v891_v37, %v6165_v23  ;;  %v892_v44 = vmul.f32 %v891_v37, %v6163_v22 }
 0x124   : > { %386 = vrot.lane.b32.xlu1 %v381_v48, %s6015_s11  ;;  %384 = vrot.lane.b32.xlu0 %v380_v49, %s6015_s11  ;;  %v816_v48 = vmul.f32 %v815_v40, %v6275_v45  ;;  %v905_v49 = vstv %s6325_s26  ;;  %s6409_s26 = sld [smem:[#allocation3 + $0x51]] }
 0x125   : > { %v906_v58 = vmul.f32 %v905_v49, %v6163_v22 }
 0x128   : > { %400 = vrot.lane.b32.xlu1 %v395_v53, %s6017_s10  ;;  %398 = vrot.lane.b32.xlu0 %v394_v54, %s6017_s10 }
 0x12c   : > { %442 = vrot.lane.b32.xlu1 %v437_v56, %s6014_s6  ;;  %440 = vrot.lane.b32.xlu0 %v436_v57, %s6014_s6  ;;  %v907_v57 = vmul.f32 %v905_v49, %v6165_v23 }
 0x130   : > { %456 = vrot.lane.b32.xlu1 %v451_v59, %s6014_s6  ;;  %454 = vrot.lane.b32.xlu0 %v450_v60, %s6014_s6  ;;  %v571_v59 = vstv %s6333_s7  ;;  %s4723_s7 = sld [smem:[#allocation3 + $0x1d]] }
 0x131   : > { %v573_v13 = vmul.f32 %v571_v59, %v6187_v38 }
 0x134   : > { %842 = vrot.lane.b32.xlu1 %v837_v62, %s6015_s11  ;;  %840 = vrot.lane.b32.xlu0 %v836_v1, %s6015_s11  ;;  %v953_v62 = vmul.f32 %v951_v52, %v6309_v9  ;;  %v952_v1 = vmul.f32 %v951_v52, %v6307_v8 }
 0x136   : > { %v415_v4 = vpop.permute.xlu1 %414  ;;  %v413_v5 = vpop.permute.xlu0 %412 }
 0x137   : > { %v419_v14 = vadd.f32 %v415_v4, %v361_v10  ;;  %v418_v15 = vadd.f32 %v413_v5, %v360_v11  ;;  %v631_v4 = vstv %s6339_s8  ;;  %s4813_s8 = sld [smem:[#allocation3 + $0x6f]] }
 0x138   : > { %856 = vrot.lane.b32.xlu1 %v851_v6, %s6017_s10  ;;  %854 = vrot.lane.b32.xlu0 %v850_v7, %s6017_s10 }
 0x13a   : > { %v471_v16 = vpop.permute.xlu1 %470  ;;  %v469_v17 = vpop.permute.xlu0 %468 }
 0x13b   : > { %v475_v25 = vadd.f32 %v471_v16, %v419_v14  ;;  %v474_v26 = vadd.f32 %v469_v17, %v418_v15  ;;  %v572_v14 = vmul.f32 %v571_v59, %v6189_v39  ;;  %v585_v15 = vstv %s6343_s9  ;;  %s4724_s9 = sld [smem:[#allocation3 + $0x1e]] }
 0x13c   : > { %522 = vrot.lane.b32.xlu1 %v517_v20, %s6015_s11  ;;  %520 = vrot.lane.b32.xlu0 %v516_v21, %s6015_s11  ;;  %v633_v20 = vmul.f32 %v631_v4, %v6360_v3  ;;  %v632_v21 = vmul.f32 %v631_v4, %v6358_v2 }
 0x13d   : > { %v499_v31 = vadd.f32 %v497_v27, %v475_v25  ;;  %v498_v32 = vadd.f32 %v496_v30, %v474_v26  ;;  %v587_v30 = vmul.f32 %v585_v15, %v6187_v38 }
 0x13e   : > { %v871_v33 = vpop.permute.xlu1 %870  ;;  %v869_v34 = vpop.permute.xlu0 %868 }
 0x13f   : > { %v875_v53 = vadd.f32 %v871_v33, %v817_v47  ;;  %v874_v54 = vadd.f32 %v869_v34, %v816_v48  ;;  %v1271_v33 = vstv %s6364_s14  ;;  %s6457_s14 = sld [smem:[#allocation3 + $0x39]] }
 0x140   : > { %536 = vrot.lane.b32.xlu1 %v531_v35, %s6017_s10  ;;  %534 = vrot.lane.b32.xlu0 %v530_v36, %s6017_s10  ;;  %v1273_v40 = vmul.f32 %v1271_v33, %v6277_v46 }
 0x142   : > { %v551_v41 = vpop.permute.xlu1 %550  ;;  %v549_v42 = vpop.permute.xlu0 %548 }
 0x143   : > { %v555_v5 = vadd.f32 %v551_v41, %v499_v31  ;;  %v554_v6 = vadd.f32 %v549_v42, %v498_v32  ;;  %v586_v31 = vmul.f32 %v585_v15, %v6189_v39  ;;  %v1291_v32 = vstv %s6356_s12  ;;  %s6449_s12 = sld [smem:[#allocation3 + $0x7b]] }
 0x144   : > { %898 = vrot.lane.b32.xlu1 %v893_v43, %s6014_s6  ;;  %896 = vrot.lane.b32.xlu0 %v892_v44, %s6014_s6  ;;  %v1293_v36 = vmul.f32 %v1291_v32, %v6277_v46  ;;  %v1292_v37 = vmul.f32 %v1291_v32, %v6275_v45  ;;  %v1272_v41 = vmul.f32 %v1271_v33, %v6275_v45  ;;  %v1305_v42 = vstv %s6374_s15  ;;  %s6465_s15 = sld [smem:[#allocation3 + $0x3a]] }
 0x145   : > { %v1407_v43 = vstv %s6380_s16  ;;  %v1307_v52 = vmul.f32 %v1305_v42, %v6159_v19  ;;  %s6470_s16 = sld [smem:[#allocation3 + $0x63]] }
 0x146   : > { %v927_v55 = vpop.permute.xlu1 %926  ;;  %v925_v56 = vpop.permute.xlu0 %924 }
 0x147   : > { %v931_v60 = vadd.f32 %v927_v55, %v875_v53  ;;  %v930_v61 = vadd.f32 %v925_v56, %v874_v54  ;;  %v1306_v53 = vmul.f32 %v1305_v42, %v6157_v18  ;;  %v971_v54 = vstv %s6388_s17  ;;  %s6475_s17 = sld [smem:[#allocation3 + $0x71]] }
 0x148   : > { %912 = vrot.lane.b32.xlu1 %v907_v57, %s6014_s6  ;;  %910 = vrot.lane.b32.xlu0 %v906_v58, %s6014_s6  ;;  %v1409_v57 = vmul.f32 %v1407_v43, %v6309_v9  ;;  %v1408_v58 = vmul.f32 %v1407_v43, %v6307_v8  ;;  %v972_v4 = vmul.f32 %v971_v54, %v6307_v8  ;;  %v1727_v42 = vstv %s4813_s8  ;;  %s6527_s8 = sld [smem:[#allocation3 + $0x5a]] }
 0x149   : > { %v6367_v7 = vadd.f32 %v953_v62, %v931_v60  ;;  %v6369_v10 = vadd.f32 %v952_v1, %v930_v61  ;;  %v973_v1 = vmul.f32 %v971_v54, %v6309_v9  ;;  %v1863_v54 = vstv %s6449_s12  ;;  %s4820_s12 = sld [smem:[#allocation3 + $0x76]] }
 0x14a   : > { %v607_v11 = vpop.permute.xlu1 %606  ;;  %v605_v12 = vpop.permute.xlu0 %604 }
 0x14b   : > { %v611_v16 = vadd.f32 %v607_v11, %v555_v5  ;;  %v610_v17 = vadd.f32 %v605_v12, %v554_v6  ;;  %v985_v5 = vstv %s6399_s23  ;;  %v1087_v6 = vstv %s6404_s25  ;;  %s6488_s23 = sld [smem:[#allocation3 + $0x72]]  ;;  %s4727_s25 = sld [smem:[#allocation3 + $0x21]] }
 0x14c   : > { %578 = vrot.lane.b32.xlu1 %v573_v13, %s6014_s6  ;;  %576 = vrot.lane.b32.xlu0 %v572_v14, %s6014_s6  ;;  %v987_v15 = vmul.f32 %v985_v5, %v6175_v29 }
 0x14d   : > { %v6382_v24 = vadd.f32 %v633_v20, %v611_v16  ;;  %v6384_v25 = vadd.f32 %v632_v21, %v610_v17  ;;  %v986_v16 = vmul.f32 %v985_v5, %v6173_v28  ;;  %v1347_v17 = vstv %s6409_s26  ;;  %s4728_s26 = sld [smem:[#allocation3 + $0x22]] }
 0x14e   : > { %v1327_v26 = vpop.permute.xlu1 %1326  ;;  %v1325_v27 = vpop.permute.xlu0 %1324  ;;  %v1349_v32 = vmul.f32 %v1347_v17, %v6165_v23  ;;  %v1348_v33 = vmul.f32 %v1347_v17, %v6163_v22  ;;  %v1027_v5 = vstv %s6457_s14  ;;  %s4761_s14 = sld [smem:[#allocation3 + $0x41]] }
 0x14f   : > { %v1331_v44 = vadd.f32 %v1327_v26, %v1273_v40  ;;  %v1330_v47 = vadd.f32 %v1325_v27, %v1272_v41  ;;  %v1089_v26 = vmul.f32 %v1087_v6, %v6360_v3  ;;  %v1088_v27 = vmul.f32 %v1087_v6, %v6358_v2 }
 0x150   : > { %592 = vrot.lane.b32.xlu1 %v587_v30, %s6014_s6  ;;  %590 = vrot.lane.b32.xlu0 %v586_v31, %s6014_s6  ;;  %v651_v41 = vstv %s4723_s7  ;;  %s6517_s7 = sld [smem:[#allocation3 + $0x59]] }
 0x152   : > { %v1007_v34 = vpop.permute.xlu1 %1006  ;;  %v1005_v35 = vpop.permute.xlu0 %1004 }
 0x153   : > { %v1011_v11 = vadd.f32 %v1007_v34, %v6367_v7  ;;  %v1010_v12 = vadd.f32 %v1005_v35, %v6369_v10  ;;  %v1361_v34 = vstv %s6426_s30  ;;  %s4837_s30 = sld [smem:[#allocation3 + $0x87]] }
 0x154   : > { %1298 = vrot.lane.b32.xlu1 %v1293_v36, %s6015_s11  ;;  %1296 = vrot.lane.b32.xlu0 %v1292_v37, %s6015_s11  ;;  %v1363_v37 = vmul.f32 %v1361_v34, %v6165_v23  ;;  %v1362_v40 = vmul.f32 %v1361_v34, %v6163_v22 }
 0x156   : > { %v1383_v48 = vpop.permute.xlu1 %1382  ;;  %v1381_v49 = vpop.permute.xlu0 %1380 }
 0x157   : > { %v1387_v55 = vadd.f32 %v1383_v48, %v1331_v44  ;;  %v1386_v56 = vadd.f32 %v1381_v49, %v1330_v47  ;;  %v653_v47 = vmul.f32 %v651_v41, %v6360_v3  ;;  %v652_v48 = vmul.f32 %v651_v41, %v6358_v2 }
 0x158   : > { %1312 = vrot.lane.b32.xlu1 %v1307_v52, %s6017_s10  ;;  %1310 = vrot.lane.b32.xlu0 %v1306_v53, %s6017_s10  ;;  %v1729_v49 = vmul.f32 %v1727_v42, %v6277_v46  ;;  %v1728_v52 = vmul.f32 %v1727_v42, %v6275_v45  ;;  %v665_v53 = vstv %s4724_s9  ;;  %s4819_s9 = sld [smem:[#allocation3 + $0x75]] }
 0x159   : > { %v6415_v59 = vadd.f32 %v1409_v57, %v1387_v55  ;;  %v6417_v60 = vadd.f32 %v1408_v58, %v1386_v56 }
 0x15a   : > { %v6419_v61 = vpop.permute.xlu1 %686  ;;  %v6421_v62 = vpop.permute.xlu0 %684 }
 0x15c   : > { %978 = vrot.lane.b32.xlu1 %v973_v1, %s6015_s11  ;;  %976 = vrot.lane.b32.xlu0 %v972_v4, %s6015_s11  ;;  %v667_v1 = vmul.f32 %v665_v53, %v6205_v50  ;;  %v666_v4 = vmul.f32 %v665_v53, %v6207_v51  ;;  %v1761_v53 = vstv %s6488_s23  ;;  %s4765_s23 = sld [smem:[#allocation3 + $0x45]] }
 0x15e   : > { %v1063_v13 = vpop.permute.xlu1 %1062  ;;  %v1061_v14 = vpop.permute.xlu0 %1060 }
 0x15f   : > { %v1067_v20 = vadd.f32 %v1063_v13, %v1011_v11  ;;  %v1066_v21 = vadd.f32 %v1061_v14, %v1010_v12  ;;  %v1865_v12 = vmul.f32 %v1863_v54, %v6309_v9  ;;  %v1864_v13 = vmul.f32 %v1863_v54, %v6307_v8 }
 0x160   : > { %992 = vrot.lane.b32.xlu1 %v987_v15, %s6017_s10  ;;  %990 = vrot.lane.b32.xlu0 %v986_v16, %s6017_s10 }
 0x161   : > { %v6440_v7 = vadd.f32 %v1089_v26, %v1067_v20  ;;  %v6442_v10 = vadd.f32 %v1088_v27, %v1066_v21  ;;  %v1029_v20 = vmul.f32 %v1027_v5, %v6187_v38  ;;  %v1028_v21 = vmul.f32 %v1027_v5, %v6189_v39 }
 0x162   : > { %v1783_v30 = vpop.permute.xlu1 %1782  ;;  %v1781_v31 = vpop.permute.xlu0 %1780  ;;  %v1041_v26 = vstv %s6465_s15  ;;  %v1543_v27 = vstv %s6470_s16  ;;  %v721_v5 = vstv %s4728_s26  ;;  %s4762_s15 = sld [smem:[#allocation3 + $0x42]]  ;;  %s4792_s16 = sld [smem:[#allocation3 + $0x5d]] }
 0x163   : > { %v1787_v55 = vadd.f32 %v1783_v30, %v1729_v49  ;;  %v1786_v56 = vadd.f32 %v1781_v31, %v1728_v52  ;;  %v1043_v34 = vmul.f32 %v1041_v26, %v6187_v38  ;;  %s4827_s26 = sld [smem:[#allocation3 + $0x7d]] }
 0x164   : > { %1354 = vrot.lane.b32.xlu1 %v1349_v32, %s6014_s6  ;;  %1352 = vrot.lane.b32.xlu0 %v1348_v33, %s6014_s6 }
 0x166   : > { %v6451_v35 = vpop.permute.xlu1 %742  ;;  %v6453_v36 = vpop.permute.xlu0 %740 }
 0x168   : > { %1368 = vrot.lane.b32.xlu1 %v1363_v37, %s6014_s6  ;;  %1366 = vrot.lane.b32.xlu0 %v1362_v40, %s6014_s6  ;;  %v1042_v37 = vmul.f32 %v1041_v26, %v6189_v39  ;;  %v1747_v40 = vstv %s6475_s17  ;;  %s4793_s17 = sld [smem:[#allocation3 + $0x5e]] }
 0x169   : > { %v1749_v49 = vmul.f32 %v1747_v40, %v6277_v46  ;;  %v1748_v52 = vmul.f32 %v1747_v40, %v6275_v45  ;;  %v1441_v40 = vstv %s6527_s8  ;;  %s4801_s8 = sld [smem:[#allocation3 + $0x66]] }
 0x16a   : > { %v1463_v43 = vpop.permute.xlu1 %1462  ;;  %v1461_v44 = vpop.permute.xlu0 %1460 }
 0x16b   : > { %v1467_v30 = vadd.f32 %v1463_v43, %v6415_v59  ;;  %v1466_v31 = vadd.f32 %v1461_v44, %v6417_v60 }
 0x16c   : > { %658 = vrot.lane.b32.xlu1 %v653_v47, %s6015_s11  ;;  %656 = vrot.lane.b32.xlu0 %v652_v48, %s6015_s11  ;;  %v1545_v47 = vmul.f32 %v1543_v27, %v6360_v3  ;;  %v1544_v48 = vmul.f32 %v1543_v27, %v6358_v2 }
 0x16e   : > { %v1839_v57 = vpop.permute.xlu1 %1838  ;;  %v1837_v58 = vpop.permute.xlu0 %1836 }
 0x16f   : > { %v1843_v6 = vadd.f32 %v1839_v57, %v1787_v55  ;;  %v1842_v11 = vadd.f32 %v1837_v58, %v1786_v56  ;;  %v1763_v56 = vmul.f32 %v1761_v53, %v6159_v19  ;;  %v1762_v57 = vmul.f32 %v1761_v53, %v6157_v18 }
 0x170   : > { %672 = vrot.lane.b32.xlu1 %v667_v1, %s6017_s10  ;;  %670 = vrot.lane.b32.xlu0 %v666_v4, %s6017_s10  ;;  %v707_v58 = vstv %s4727_s25  ;;  %v1999_v18 = vstv %s4837_s30  ;;  %s4766_s25 = sld [smem:[#allocation3 + $0x46]] }
 0x171   : > { %v1867_v14 = vadd.f32 %v1865_v12, %v1843_v6  ;;  %v1866_v15 = vadd.f32 %v1864_v13, %v1842_v11  ;;  %v709_v1 = vmul.f32 %v707_v58, %v6223_v63  ;;  %v708_v4 = vmul.f32 %v707_v58, %v6225_v0  ;;  %s4828_s30 = sld [smem:[#allocation3 + $0x7e]] }
 0x172   : > { %v6481_v16 = vpop.permute.xlu1 %1142  ;;  %v6483_v17 = vpop.permute.xlu0 %1140  ;;  %v723_v13 = vmul.f32 %v721_v5, %v6223_v63 }
 0x174   : > { %1034 = vrot.lane.b32.xlu1 %v1029_v20, %s6014_s6  ;;  %1032 = vrot.lane.b32.xlu0 %v1028_v21, %s6014_s6  ;;  %v722_v20 = vmul.f32 %v721_v5, %v6225_v0  ;;  %v1427_v21 = vstv %s6517_s7  ;;  %s4800_s7 = sld [smem:[#allocation3 + $0x65]] }
 0x176   : > { %v1519_v32 = vpop.permute.xlu1 %1518  ;;  %v1517_v33 = vpop.permute.xlu0 %1516 }
 0x177   : > { %v1523_v41 = vadd.f32 %v1519_v32, %v1467_v30  ;;  %v1522_v42 = vadd.f32 %v1517_v33, %v1466_v31  ;;  %v2001_v30 = vmul.f32 %v1999_v18, %v6360_v3  ;;  %v2000_v31 = vmul.f32 %v1999_v18, %v6358_v2 }
 0x178   : > { %1048 = vrot.lane.b32.xlu1 %v1043_v34, %s6014_s6  ;;  %1046 = vrot.lane.b32.xlu0 %v1042_v37, %s6014_s6  ;;  %v1429_v34 = vmul.f32 %v1427_v21, %v6309_v9  ;;  %v1428_v37 = vmul.f32 %v1427_v21, %v6307_v8 }
 0x179   : > { %v6502_v59 = vadd.f32 %v1545_v47, %v1523_v41  ;;  %v6504_v60 = vadd.f32 %v1544_v48, %v1522_v42  ;;  %v1443_v47 = vmul.f32 %v1441_v40, %v6175_v29  ;;  %v1442_v48 = vmul.f32 %v1441_v40, %v6173_v28 }
 0x17a   : > { %v6506_v43 = vpop.permute.xlu1 %1198  ;;  %v6508_v44 = vpop.permute.xlu0 %1196 }
 0x17c   : > { %1754 = vrot.lane.b32.xlu1 %v1749_v49, %s6015_s11  ;;  %1752 = vrot.lane.b32.xlu0 %v1748_v52, %s6015_s11  ;;  %v1803_v49 = vstv %s4819_s9  ;;  %s4831_s9 = sld [smem:[#allocation3 + $0x81]] }
 0x17e   : > { %v1919_v54 = vpop.permute.xlu1 %1918  ;;  %v1917_v55 = vpop.permute.xlu0 %1916 }
 0x17f   : > { %v1923_v19 = vadd.f32 %v1919_v54, %v1867_v14  ;;  %v1922_v6 = vadd.f32 %v1917_v55, %v1866_v15  ;;  %v1805_v54 = vmul.f32 %v1803_v49, %v6165_v23  ;;  %v1804_v55 = vmul.f32 %v1803_v49, %v6163_v22 }
 0x180   : > { %1768 = vrot.lane.b32.xlu1 %v1763_v56, %s6017_s10  ;;  %1766 = vrot.lane.b32.xlu0 %v1762_v57, %s6017_s10  ;;  %v1817_v56 = vstv %s4820_s12  ;;  %s4832_s12 = sld [smem:[#allocation3 + $0x82]] }
 0x181   : > { %v1819_v57 = vmul.f32 %v1817_v56, %v6165_v23  ;;  %v1818_v58 = vmul.f32 %v1817_v56, %v6163_v22 }
 0x182   : > { %v6521_v45 = vpop.permute.xlu1 %1598  ;;  %v6523_v46 = vpop.permute.xlu0 %1596 }
 0x184   : > { %714 = vrot.lane.b32.xlu1 %v709_v1, %s6014_s6  ;;  %712 = vrot.lane.b32.xlu0 %v708_v4, %s6014_s6  ;;  %v1107_v1 = vstv %s4761_s14  ;;  %s4804_s14 = sld [smem:[#allocation3 + $0x69]] }
 0x185   : > { %v1109_v18 = vmul.f32 %v1107_v1, %v6360_v3 }
 0x186   : > { %v1975_v11 = vpop.permute.xlu1 %1974  ;;  %v1973_v12 = vpop.permute.xlu0 %1972 }
 0x187   : > { %v1979_v26 = vadd.f32 %v1975_v11, %v1923_v19  ;;  %v1978_v27 = vadd.f32 %v1973_v12, %v1922_v6  ;;  %v1108_v19 = vmul.f32 %v1107_v1, %v6358_v2  ;;  %v1121_v6 = vstv %s4762_s15  ;;  %s4805_s15 = sld [smem:[#allocation3 + $0x6a]] }
 0x188   : > { %728 = vrot.lane.b32.xlu1 %v723_v13, %s6014_s6  ;;  %726 = vrot.lane.b32.xlu0 %v722_v20, %s6014_s6  ;;  %v1123_v11 = vmul.f32 %v1121_v6, %v6205_v50  ;;  %v1122_v12 = vmul.f32 %v1121_v6, %v6207_v51  ;;  %v1483_v13 = vstv %s4792_s16  ;;  %v691_v6 = vadd.f32 %v6419_v61, %v6382_v24  ;;  %v6647_v61 = vld [vmem:[#allocation2 + $0x38] sm:$0xff]  ;;  %s4839_s16 = sld [smem:[#allocation3 + $0x89]] }
 0x189   : > { %v6538_v14 = vadd.f32 %v2001_v30, %v1979_v26  ;;  %v6540_v15 = vadd.f32 %v2000_v31, %v1978_v27  ;;  %v1485_v26 = vmul.f32 %v1483_v13, %v6187_v38  ;;  %v1484_v27 = vmul.f32 %v1483_v13, %v6189_v39 }
 0x18a   : > { %v6542_v32 = vpop.permute.xlu1 %1654  ;;  %v6544_v33 = vpop.permute.xlu0 %1652  ;;  %v1497_v30 = vstv %s4793_s17  ;;  %s4840_s17 = sld [smem:[#allocation3 + $0x8a]] }
 0x18b   : > { %v1499_v31 = vmul.f32 %v1497_v30, %v6187_v38 }
 0x18c   : > { %1434 = vrot.lane.b32.xlu1 %v1429_v34, %s6015_s11  ;;  %1432 = vrot.lane.b32.xlu0 %v1428_v37, %s6015_s11  ;;  %v1498_v34 = vmul.f32 %v1497_v30, %v6189_v39  ;;  %v1163_v37 = vstv %s4765_s23  ;;  %v1146_v30 = vadd.f32 %v6483_v17, %v6442_v10  ;;  %s4843_s23 = sld [smem:[#allocation3 + $0x8d]] }
 0x18d   : > { %v1164_v49 = vmul.f32 %v1163_v37, %v6225_v0 }
 0x18e   : > { %v6551_v41 = vpop.permute.xlu1 %2054  ;;  %v6553_v42 = vpop.permute.xlu0 %2052 }
 0x190   : > { %1448 = vrot.lane.b32.xlu1 %v1443_v47, %s6017_s10  ;;  %1446 = vrot.lane.b32.xlu0 %v1442_v48, %s6017_s10  ;;  %v1165_v48 = vmul.f32 %v1163_v37, %v6223_v63 }
 0x192   : > { %v6559_v52 = vpop.permute.xlu1 %2110  ;;  %v6561_v53 = vpop.permute.xlu0 %2108 }
 0x194   : > { %1810 = vrot.lane.b32.xlu1 %v1805_v54, %s6014_s6  ;;  %1808 = vrot.lane.b32.xlu0 %v1804_v55, %s6014_s6  ;;  %v1177_v54 = vstv %s4766_s25  ;;  %s4844_s25 = sld [smem:[#allocation3 + $0x8e]] }
 0x195   : > { %v1179_v55 = vmul.f32 %v1177_v54, %v6223_v63  ;;  %v1178_v56 = vmul.f32 %v1177_v54, %v6225_v0  ;;  %v690_v63 = vadd.f32 %v6421_v62, %v6384_v25  ;;  %v747_v0 = vadd.f32 %v6451_v35, %v691_v6  ;;  %v6650_v35 = vld [vmem:[#allocation2 + $0x30] sm:$0xff] }
 0x196   : > { %v6567_v28 = vpop.permute.xlu1 %386  ;;  %v6569_v29 = vpop.permute.xlu0 %384 }
 0x198   : > { %1824 = vrot.lane.b32.xlu1 %v1819_v57, %s6014_s6  ;;  %1822 = vrot.lane.b32.xlu0 %v1818_v58, %s6014_s6  ;;  %v1883_v57 = vstv %s4827_s26  ;;  %s4698_s26 = sld [smem:[#allocation3 + $0x4]] }
 0x19a   : > { %v6575_v4 = vpop.permute.xlu1 %400  ;;  %v6577_v5 = vpop.permute.xlu0 %398 }
 0x19c   : > { %1114 = vrot.lane.b32.xlu1 %v1109_v18, %s6015_s11  ;;  %1112 = vrot.lane.b32.xlu0 %v1108_v19, %s6015_s11  ;;  %v1885_v18 = vmul.f32 %v1883_v57, %v6309_v9  ;;  %v1884_v19 = vmul.f32 %v1883_v57, %v6307_v8  ;;  %v6682_v57 = vld [vmem:[#allocation2 + $0x49] sm:$0xff] }
 0x19e   : > { %v6583_v22 = vpop.permute.xlu1 %442  ;;  %v6585_v23 = vpop.permute.xlu0 %440 }
 0x1a0   : > { %1128 = vrot.lane.b32.xlu1 %v1123_v11, %s6017_s10  ;;  %1126 = vrot.lane.b32.xlu0 %v1122_v12, %s6017_s10  ;;  %v746_v11 = vadd.f32 %v6453_v36, %v690_v63 }
 0x1a2   : > { %v6591_v20 = vpop.permute.xlu1 %456  ;;  %v6593_v21 = vpop.permute.xlu0 %454 }
 0x1a4   : > { %1490 = vrot.lane.b32.xlu1 %v1485_v26, %s6014_s6  ;;  %1488 = vrot.lane.b32.xlu0 %v1484_v27, %s6014_s6  ;;  %v1897_v26 = vstv %s4828_s30  ;;  %v1147_v27 = vadd.f32 %v6481_v16, %v6440_v7  ;;  %s4702_s30 = sld [smem:[#allocation3 + $0x8]] }
 0x1a5   : > { %v1899_v62 = vmul.f32 %v6647_v61, %v1897_v26  ;;  %v1898_v36 = vmul.f32 %v6650_v35, %v1897_v26  ;;  %v5896_v26 = vld [vmem:[#allocation2 + $0x31] sm:$0xff] }
 0x1a6   : > { %v6599_v50 = vpop.permute.xlu1 %842  ;;  %v6601_v51 = vpop.permute.xlu0 %840 }
 0x1a8   : > { %1504 = vrot.lane.b32.xlu1 %v1499_v31, %s6014_s6  ;;  %1502 = vrot.lane.b32.xlu0 %v1498_v34, %s6014_s6  ;;  %v1203_v31 = vadd.f32 %v6506_v43, %v1147_v27  ;;  %v1202_v34 = vadd.f32 %v6508_v44, %v1146_v30  ;;  %v1577_v43 = vstv %s4801_s8  ;;  %s4714_s8 = sld [smem:[#allocation3 + $0x14]] }
 0x1aa   : > { %v6607_v40 = vpop.permute.xlu1 %856  ;;  %v6609_v47 = vpop.permute.xlu0 %854 }
 0x1ac   : > { %1170 = vrot.lane.b32.xlu1 %v1165_v48, %s6014_s6  ;;  %1168 = vrot.lane.b32.xlu0 %v1164_v49, %s6014_s6  ;;  %v1563_v49 = vstv %s4800_s7  ;;  %s4736_s7 = sld [smem:[#allocation3 + $0x28]] }
 0x1ad   : > { %v1565_v16 = vmul.f32 %v1563_v49, %v6360_v3  ;;  %v1564_v17 = vmul.f32 %v1563_v49, %v6358_v2  ;;  %v1619_v49 = vstv %s4804_s14  ;;  %s4779_s14 = sld [smem:[#allocation3 + $0x50]] }
 0x1ae   : > { %v6615_v38 = vpop.permute.xlu1 %522  ;;  %v6617_v39 = vpop.permute.xlu0 %520 }
 0x1b0   : > { %1184 = vrot.lane.b32.xlu1 %v1179_v55, %s6014_s6  ;;  %1182 = vrot.lane.b32.xlu0 %v1178_v56, %s6014_s6  ;;  %v6679_v55 = vld [vmem:[#allocation2 + $0x51] sm:$0xff] }
 0x1b1   : > { %v1579_v56 = vmul.f32 %v6679_v55, %v1577_v43 }
 0x1b2   : > { %v6623_v58 = vpop.permute.xlu1 %536  ;;  %v6625_v1 = vpop.permute.xlu0 %534 }
 0x1b4   : > { %1890 = vrot.lane.b32.xlu1 %v1885_v18, %s6015_s11  ;;  %1888 = vrot.lane.b32.xlu0 %v1884_v19, %s6015_s11  ;;  %v1578_v18 = vmul.f32 %v6682_v57, %v1577_v43  ;;  %v1939_v19 = vstv %s4831_s9  ;;  %v5897_v43 = vld [vmem:[#allocation2 + $0x52] sm:$0xff]  ;;  %s4775_s9 = sld [smem:[#allocation3 + $0x4c]] }
 0x1b6   : > { %v6637_v12 = vpop.permute.xlu1 %898  ;;  %v6639_v13 = vpop.permute.xlu0 %896 }
 0x1b8   : > { %762 = vrot.lane.b32.xlu1 %v747_v0, %s6017_s10  ;;  %760 = vrot.lane.b32.xlu0 %v746_v11, %s6017_s10  ;;  %v5895_v0 = vld [vmem:[#allocation2 + $0x39] sm:$0xff] }
 0x1b9   : > { %v1941_v11 = vmul.f32 %v5895_v0, %v1939_v19 }
 0x1ba   : > { %v6643_v24 = vpop.permute.xlu1 %912  ;;  %v6645_v25 = vpop.permute.xlu0 %910 }
 0x1bc   : > { %1904 = vrot.lane.b32.xlu1 %v1899_v62, %s6017_s10  ;;  %1902 = vrot.lane.b32.xlu0 %v1898_v36, %s6017_s10  ;;  %v1940_v62 = vmul.f32 %v5896_v26, %v1939_v19  ;;  %v1953_v36 = vstv %s4832_s12  ;;  %s4748_s12 = sld [smem:[#allocation3 + $0x34]] }
 0x1be   : > { %v6661_v37 = vpop.permute.xlu1 %578  ;;  %v6663_v48 = vpop.permute.xlu0 %576 }
 0x1c0   : > { %1218 = vrot.lane.b32.xlu1 %v1203_v31, %s6017_s10  ;;  %1216 = vrot.lane.b32.xlu0 %v1202_v34, %s6017_s10  ;;  %v1955_v31 = vmul.f32 %v5895_v0, %v1953_v36  ;;  %v1954_v34 = vmul.f32 %v5896_v26, %v1953_v36 }
 0x1c2   : > { %v6667_v7 = vpop.permute.xlu1 %592  ;;  %v6669_v10 = vpop.permute.xlu0 %590 }
 0x1c4   : > { %1570 = vrot.lane.b32.xlu1 %v1565_v16, %s6015_s11  ;;  %1568 = vrot.lane.b32.xlu0 %v1564_v17, %s6015_s11 }
 0x1c6   : > { %v6675_v44 = vpop.permute.xlu1 %1298  ;;  %v6677_v54 = vpop.permute.xlu0 %1296 }
 0x1c7   : > { %8148 = vst [vmem:[#allocation12_spill] sm:$0xff] %v6675_v44  ;;  %8149 = vst [vmem:[#allocation13_spill] sm:$0xff] %v6677_v54 }
 0x1c8   : > { %1584 = vrot.lane.b32.xlu1 %v1579_v56, %s6017_s10  ;;  %1582 = vrot.lane.b32.xlu0 %v1578_v18, %s6017_s10  ;;  %v1621_v56 = vmul.f32 %v5897_v43, %v1619_v49  ;;  %v5898_v18 = vld [vmem:[#allocation2 + $0x4a] sm:$0xff] }
 0x1c9   : > { %v1620_v19 = vmul.f32 %v5898_v18, %v1619_v49 }
 0x1ca   : > { %v6687_v6 = vpop.permute.xlu1 %1312  ;;  %v6689_v63 = vpop.permute.xlu0 %1310 }
 0x1cb   : > { %8150 = vst [vmem:[#allocation14_spill] sm:$0xff] %v6687_v6  ;;  %8151 = vst [vmem:[#allocation15_spill] sm:$0xff] %v6689_v63  ;;  %v2058_v6 = vadd.f32 %v6553_v42, %v6540_v15 }
 0x1cc   : > { %1946 = vrot.lane.b32.xlu1 %v1941_v11, %s6014_s6  ;;  %1944 = vrot.lane.b32.xlu0 %v1940_v62, %s6014_s6  ;;  %v1633_v11 = vstv %s4805_s15  ;;  %s4722_s15 = sld [smem:[#allocation3 + $0x1c]] }
 0x1cd   : > { %v1635_v62 = vmul.f32 %v5897_v43, %v1633_v11  ;;  %v1634_v36 = vmul.f32 %v5898_v18, %v1633_v11  ;;  %v2019_v11 = vstv %s4839_s16  ;;  %s4695_s16 = sld [smem:[#allocation3 + $0x1]] }
 0x1ce   : > { %v6693_v27 = vpop.permute.xlu1 %978  ;;  %v6695_v30 = vpop.permute.xlu0 %976 }
 0x1d0   : > { %1960 = vrot.lane.b32.xlu1 %v1955_v31, %s6014_s6  ;;  %1958 = vrot.lane.b32.xlu0 %v1954_v34, %s6014_s6  ;;  %v1603_v31 = vadd.f32 %v6521_v45, %v6502_v59  ;;  %v1602_v34 = vadd.f32 %v6523_v46, %v6504_v60  ;;  %v2021_v45 = vmul.f32 %v2019_v11, %v6360_v3 }
 0x1d1   : > { %v2020_v46 = vmul.f32 %v2019_v11, %v6358_v2 }
 0x1d2   : > { %v6699_v16 = vpop.permute.xlu1 %992  ;;  %v6701_v17 = vpop.permute.xlu0 %990  ;;  %v1659_v49 = vadd.f32 %v6542_v32, %v1603_v31  ;;  %v2033_v32 = vstv %s4840_s17  ;;  %s4752_s17 = sld [smem:[#allocation3 + $0x38]] }
 0x1d3   : > { %8152 = vst [vmem:[#allocation16_spill] sm:$0xff] %v6701_v17  ;;  %v2034_v31 = vmul.f32 %v6682_v57, %v2033_v32 }
 0x1d4   : > { %1626 = vrot.lane.b32.xlu1 %v1621_v56, %s6014_s6  ;;  %1624 = vrot.lane.b32.xlu0 %v1620_v19, %s6014_s6  ;;  %v1658_v56 = vadd.f32 %v6544_v33, %v1602_v34  ;;  %v2075_v34 = vstv %s4843_s23  ;;  %s6845_s23 = sld [smem:[#allocation3 + $0x70]] }
 0x1d5   : > { %v2077_v11 = vmul.f32 %v5897_v43, %v2075_v34 }
 0x1d6   : > { %v6705_v0 = vpop.permute.xlu1 %1354  ;;  %v6707_v26 = vpop.permute.xlu0 %1352 }
 0x1d7   : > { %8153 = vst [vmem:[#allocation17_spill] sm:$0xff] %v6705_v0  ;;  %8154 = vst [vmem:[#allocation18_spill] sm:$0xff] %v6707_v26 }
 0x1d8   : > { %1640 = vrot.lane.b32.xlu1 %v1635_v62, %s6014_s6  ;;  %1638 = vrot.lane.b32.xlu0 %v1634_v36, %s6014_s6  ;;  %v2035_v36 = vmul.f32 %v6679_v55, %v2033_v32  ;;  %v1013_v54 = vstv %s4752_s17  ;;  %s6982_s17 = sld [smem:[#allocation3 + $0x26]] }
 0x1da   : > { %v6717_v19 = vpop.permute.xlu1 %1368  ;;  %v6719_v63 = vpop.permute.xlu0 %1366 }
 0x1db   : > { %8155 = vst [vmem:[#allocation19_spill] sm:$0xff] %v6717_v19  ;;  %8156 = vst [vmem:[#allocation20_spill] sm:$0xff] %v6719_v63 }
 0x1dc   : > { %1674 = vrot.lane.b32.xlu1 %v1659_v49, %s6017_s10  ;;  %1672 = vrot.lane.b32.xlu0 %v1658_v56, %s6017_s10 }
 0x1de   : > { %v6723_v59 = vpop.permute.xlu1 %658  ;;  %v6725_v60 = vpop.permute.xlu0 %656 }
 0x1e0   : > { %2026 = vrot.lane.b32.xlu1 %v2021_v45, %s6015_s11  ;;  %2024 = vrot.lane.b32.xlu0 %v2020_v46, %s6015_s11  ;;  %v2076_v45 = vmul.f32 %v5898_v18, %v2075_v34  ;;  %v2089_v46 = vstv %s4844_s25  ;;  %s6849_s25 = sld [smem:[#allocation3 + $0xd]] }
 0x1e1   : > { %v2091_v19 = vmul.f32 %v5897_v43, %v2089_v46  ;;  %v365_v43 = vstv %s4698_s26  ;;  %s6861_s26 = sld [smem:[#allocation3 + $0x20]] }
 0x1e2   : > { %v6731_v33 = vpop.permute.xlu1 %672  ;;  %v6733_v62 = vpop.permute.xlu0 %670 }
 0x1e4   : > { %2040 = vrot.lane.b32.xlu1 %v2035_v36, %s6017_s10  ;;  %2038 = vrot.lane.b32.xlu0 %v2034_v31, %s6017_s10  ;;  %v2090_v36 = vmul.f32 %v5898_v18, %v2089_v46  ;;  %v2059_v31 = vadd.f32 %v6551_v41, %v6538_v14  ;;  %v6767_v41 = vld [vmem:[#allocation2 + $0x9] sm:$0xff] }
 0x1e5   : > { %v367_v42 = vmul.f32 %v6767_v41, %v365_v43  ;;  %v6779_v46 = vld [vmem:[#allocation2 + $0xa] sm:$0xff] }
 0x1e6   : > { %v6739_v49 = vpop.permute.xlu1 %1034  ;;  %v6741_v56 = vpop.permute.xlu0 %1032  ;;  %v2115_v34 = vadd.f32 %v6559_v52, %v2059_v31  ;;  %v6770_v52 = vld [vmem:[#allocation2 + $0x1] sm:$0xff] }
 0x1e7   : > { %v6782_v31 = vld [vmem:[#allocation2 + $0x2] sm:$0xff] }
 0x1e8   : > { %2082 = vrot.lane.b32.xlu1 %v2077_v11, %s6014_s6  ;;  %2080 = vrot.lane.b32.xlu0 %v2076_v45, %s6014_s6  ;;  %v2114_v11 = vadd.f32 %v6561_v53, %v2058_v6  ;;  %v366_v53 = vmul.f32 %v6770_v52, %v365_v43  ;;  %v421_v6 = vstv %s4702_s30  ;;  %s6865_s30 = sld [smem:[#allocation3 + $0x2]] }
 0x1ea   : > { %v6745_v63 = vpop.permute.xlu1 %1048  ;;  %v6747_v32 = vpop.permute.xlu0 %1046 }
 0x1eb   : > { %8157 = vst [vmem:[#allocation21_spill] sm:$0xff] %v6745_v63  ;;  %8158 = vst [vmem:[#allocation22_spill] sm:$0xff] %v6747_v32  ;;  %v637_v32 = vstv %s4722_s15  ;;  %v347_v63 = vstv %s4695_s16  ;;  %s6951_s15 = sld [smem:[#allocation3 + $0x5c]]  ;;  %s6964_s16 = sld [smem:[#allocation3 + $0x31]] }
 0x1ec   : > { %2096 = vrot.lane.b32.xlu1 %v2091_v19, %s6014_s6  ;;  %2094 = vrot.lane.b32.xlu0 %v2090_v36, %s6014_s6  ;;  %s4710_s6 = sld [smem:[#allocation3 + $0x10]]  ;;  %v423_v36 = vmul.f32 %v6779_v46, %v421_v6 }
 0x1ee   : > { %v6757_v45 = vpop.permute.xlu1 %1754  ;;  %v6759_v26 = vpop.permute.xlu0 %1752 }
 0x1ef   : > { %8159 = vst [vmem:[#allocation23_spill] sm:$0xff] %v6757_v45  ;;  %8160 = vst [vmem:[#allocation24_spill] sm:$0xff] %v6759_v26 }
 0x1f0   : > { %2130 = vrot.lane.b32.xlu1 %v2115_v34, %s6017_s10  ;;  %2128 = vrot.lane.b32.xlu0 %v2114_v11, %s6017_s10  ;;  %v422_v34 = vmul.f32 %v6782_v31, %v421_v6  ;;  %v821_v11 = vstv %s4736_s7  ;;  %s4740_s10 = sld [smem:[#allocation3 + $0x2c]]  ;;  %s6876_s7 = sld [smem:[#allocation3 + $0x58]] }
 0x1f2   : > { %v6763_v14 = vpop.permute.xlu1 %1768  ;;  %v6765_v15 = vpop.permute.xlu0 %1766 }
 0x1f3   : > { %8161 = vst [vmem:[#allocation25_spill] sm:$0xff] %v6763_v14  ;;  %8162 = vst [vmem:[#allocation26_spill] sm:$0xff] %v6765_v15  ;;  %v822_v15 = vmul.f32 %v6770_v52, %v821_v11  ;;  %v501_v14 = vstv %s4710_s6  ;;  %s6887_s6 = sld [smem:[#allocation3 + $0xe]] }
 0x1f4   : > { %372 = vrot.lane.b32.xlu1 %v367_v42, %s6015_s11  ;;  %370 = vrot.lane.b32.xlu0 %v366_v53, %s6015_s11  ;;  %v823_v53 = vmul.f32 %v6767_v41, %v821_v11 }
 0x1f6   : > { %v6775_v18 = vpop.permute.xlu1 %714  ;;  %v6777_v19 = vpop.permute.xlu0 %712  ;;  %v877_v45 = vstv %s4740_s10  ;;  %s6889_s10 = sld [smem:[#allocation3 + $0x19]] }
 0x1f8   : > { %428 = vrot.lane.b32.xlu1 %v423_v36, %s6016_s13  ;;  %426 = vrot.lane.b32.xlu0 %v422_v34, %s6016_s13  ;;  %v503_v36 = vmul.f32 %v501_v14, %v6309_v9  ;;  %v502_v34 = vmul.f32 %v501_v14, %v6307_v8 }
 0x1fa   : > { %v6787_v43 = vpop.permute.xlu1 %728  ;;  %v6789_v42 = vpop.permute.xlu0 %726 }
 0x1fc   : > { %828 = vrot.lane.b32.xlu1 %v823_v53, %s6015_s11  ;;  %826 = vrot.lane.b32.xlu0 %v822_v15, %s6015_s11  ;;  %v879_v15 = vmul.f32 %v6779_v46, %v877_v45  ;;  %v878_v53 = vmul.f32 %v6782_v31, %v877_v45 }
 0x1fe   : > { %v6795_v6 = vpop.permute.xlu1 %1434  ;;  %v6797_v26 = vpop.permute.xlu0 %1432 }
 0x1ff   : > { %8163 = vst [vmem:[#allocation27_spill] sm:$0xff] %v6795_v6  ;;  %8164 = vst [vmem:[#allocation28_spill] sm:$0xff] %v6797_v26  ;;  %v557_v6 = vstv %s4714_s8  ;;  %s6900_s8 = sld [smem:[#allocation3 + $0x74]] }
 0x200   : > { %508 = vrot.lane.b32.xlu1 %v503_v36, %s6015_s11  ;;  %506 = vrot.lane.b32.xlu0 %v502_v34, %s6015_s11  ;;  %v559_v14 = vmul.f32 %v6647_v61, %v557_v6  ;;  %v558_v36 = vmul.f32 %v6650_v35, %v557_v6  ;;  %v1277_v34 = vstv %s4775_s9  ;;  %s6925_s9 = sld [smem:[#allocation3 + $0x25]] }
 0x202   : > { %v6803_v11 = vpop.permute.xlu1 %1448  ;;  %v6805_v0 = vpop.permute.xlu0 %1446 }
 0x203   : > { %8165 = vst [vmem:[#allocation29_spill] sm:$0xff] %v6803_v11  ;;  %8166 = vst [vmem:[#allocation30_spill] sm:$0xff] %v6805_v0 }
 0x204   : > { %884 = vrot.lane.b32.xlu1 %v879_v15, %s6016_s13  ;;  %882 = vrot.lane.b32.xlu0 %v878_v53, %s6016_s13  ;;  %v1279_v15 = vmul.f32 %v6767_v41, %v1277_v34  ;;  %v1278_v53 = vmul.f32 %v6770_v52, %v1277_v34  ;;  %v1333_v34 = vstv %s4779_s14  ;;  %s6942_s14 = sld [smem:[#allocation3 + $0x40]] }
 0x205   : > { %v1335_v11 = vmul.f32 %v6779_v46, %v1333_v34  ;;  %v1334_v26 = vmul.f32 %v6782_v31, %v1333_v34  ;;  %v6859_v34 = vld [vmem:[#allocation2 + $0x8] sm:$0xff] }
 0x206   : > { %v6811_v8 = vpop.permute.xlu1 %1810  ;;  %v6813_v9 = vpop.permute.xlu0 %1808 }
 0x207   : > { %8167 = vst [vmem:[#allocation31_spill] sm:$0xff] %v6811_v8  ;;  %8168 = vst [vmem:[#allocation32_spill] sm:$0xff] %v6813_v9  ;;  %v957_v8 = vstv %s4748_s12  ;;  %s6939_s12 = sld [smem:[#allocation3 + $0x1a]] }
 0x208   : > { %564 = vrot.lane.b32.xlu1 %v559_v14, %s6016_s13  ;;  %562 = vrot.lane.b32.xlu0 %v558_v36, %s6016_s13  ;;  %v6831_v14 = vld [vmem:[#allocation2 + $0x22] sm:$0xff] }
 0x209   : > { %v959_v36 = vmul.f32 %v6831_v14, %v957_v8 }
 0x20a   : > { %v6819_v45 = vpop.permute.xlu1 %1824  ;;  %v6821_v0 = vpop.permute.xlu0 %1822 }
 0x20b   : > { %8169 = vst [vmem:[#allocation33_spill] sm:$0xff] %v6819_v45  ;;  %8170 = vst [vmem:[#allocation34_spill] sm:$0xff] %v6821_v0  ;;  %v6834_v45 = vld [vmem:[#allocation2 + $0x1a] sm:$0xff] }
 0x20c   : > { %1284 = vrot.lane.b32.xlu1 %v1279_v15, %s6015_s11  ;;  %1282 = vrot.lane.b32.xlu0 %v1278_v53, %s6015_s11  ;;  %v958_v0 = vmul.f32 %v6834_v45, %v957_v8 }
 0x20e   : > { %v6827_v6 = vpop.permute.xlu1 %1114  ;;  %v6829_v9 = vpop.permute.xlu0 %1112 }
 0x210   : > { %964 = vrot.lane.b32.xlu1 %v959_v36, %s6015_s11  ;;  %962 = vrot.lane.b32.xlu0 %v958_v0, %s6015_s11  ;;  %v639_v36 = vmul.f32 %v637_v32, %v6360_v3  ;;  %v349_v3 = vmul.f32 %v347_v63, %v6859_v34 }
 0x212   : > { %v6839_v15 = vpop.permute.xlu1 %1128  ;;  %v6841_v53 = vpop.permute.xlu0 %1126 }
 0x213   : > { %8171 = vst [vmem:[#allocation35_spill] sm:$0xff] %v6839_v15  ;;  %8172 = vst [vmem:[#allocation36_spill] sm:$0xff] %v6841_v53  ;;  %v638_v53 = vmul.f32 %v637_v32, %v6358_v2  ;;  %v6857_v15 = vld [vmem:[#allocation2] sm:$0xff] }
 0x214   : > { %1340 = vrot.lane.b32.xlu1 %v1335_v11, %s6016_s13  ;;  %1338 = vrot.lane.b32.xlu0 %v1334_v26, %s6016_s13  ;;  %v348_v26 = vmul.f32 %v347_v63, %v6857_v15  ;;  %v1015_v11 = vmul.f32 %v6647_v61, %v1013_v54  ;;  %v6882_v63 = vld [vmem:[#allocation2 + $0x19] sm:$0xff] }
 0x216   : > { %v6851_v8 = vpop.permute.xlu1 %1490  ;;  %v6853_v0 = vpop.permute.xlu0 %1488 }
 0x217   : > { %8173 = vst [vmem:[#allocation37_spill] sm:$0xff] %v6851_v8  ;;  %8174 = vst [vmem:[#allocation38_spill] sm:$0xff] %v6853_v0  ;;  %v1014_v0 = vmul.f32 %v6650_v35, %v1013_v54  ;;  %v1733_v8 = vstv %s6845_s23  ;;  %s6985_s23 = sld [smem:[#allocation3 + $0x44]] }
 0x218   : > { %644 = vrot.lane.b32.xlu1 %v639_v36, %s6015_s11  ;;  %642 = vrot.lane.b32.xlu0 %v638_v53, %s6015_s11  ;;  %v391_v53 = vadd.f32 %v6567_v28, %v349_v3  ;;  %v390_v36 = vadd.f32 %v6569_v29, %v348_v26  ;;  %v1734_v26 = vmul.f32 %v6770_v52, %v1733_v8 }
 0x21a   : > { %v6869_v2 = vpop.permute.xlu1 %1504  ;;  %v6871_v32 = vpop.permute.xlu0 %1502  ;;  %v447_v54 = vadd.f32 %v6583_v22, %v391_v53  ;;  %v446_v28 = vadd.f32 %v6585_v23, %v390_v36  ;;  %v353_v22 = vstv %s6865_s30  ;;  %s7019_s30 = sld [smem:[#allocation3 + $0x7c]] }
 0x21b   : > { %8175 = vst [vmem:[#allocation39_spill] sm:$0xff] %v6869_v2  ;;  %8176 = vst [vmem:[#allocation40_spill] sm:$0xff] %v6871_v32  ;;  %v6884_v2 = vld [vmem:[#allocation2 + $0x21] sm:$0xff]  ;;  %v483_v32 = vstv %s6849_s25  ;;  %s7004_s25 = sld [smem:[#allocation3 + $0x32]] }
 0x21c   : > { %1020 = vrot.lane.b32.xlu1 %v1015_v11, %s6016_s13  ;;  %1018 = vrot.lane.b32.xlu0 %v1014_v0, %s6016_s13  ;;  %v1735_v0 = vmul.f32 %v6767_v41, %v1733_v8  ;;  %v693_v11 = vstv %s6861_s26  ;;  %v485_v44 = vmul.f32 %v483_v32, %v6884_v2  ;;  %v484_v17 = vmul.f32 %v483_v32, %v6882_v63  ;;  %s7006_s26 = sld [smem:[#allocation3 + $0x3d]] }
 0x21d   : > { %v695_v52 = vmul.f32 %v6679_v55, %v693_v11  ;;  %v694_v8 = vmul.f32 %v6682_v57, %v693_v11  ;;  %v1413_v32 = vstv %s6876_s7  ;;  %v489_v11 = vstv %s6887_s6  ;;  %s7027_s7 = sld [smem:[#allocation3 + $0x49]]  ;;  %s7045_s6 = sld [smem:[#allocation3 + $0x3e]] }
 0x21e   : > { %v6893_v3 = vpop.permute.xlu1 %1170  ;;  %v6895_v29 = vpop.permute.xlu0 %1168  ;;  %v487_v23 = vadd.f32 %v485_v44, %v447_v54  ;;  %v486_v53 = vadd.f32 %v484_v17, %v446_v28  ;;  %v6920_v17 = vld [vmem:[#allocation2 + $0x3a] sm:$0xff]  ;;  %v6922_v54 = vld [vmem:[#allocation2 + $0x32] sm:$0xff] }
 0x21f   : > { %8177 = vst [vmem:[#allocation41_spill] sm:$0xff] %v6895_v29  ;;  %v355_v29 = vmul.f32 %v353_v22, %v6859_v34 }
 0x220   : > { %1740 = vrot.lane.b32.xlu1 %v1735_v0, %s6015_s11  ;;  %1738 = vrot.lane.b32.xlu0 %v1734_v26, %s6015_s11  ;;  %v354_v0 = vmul.f32 %v353_v22, %v6857_v15  ;;  %v527_v26 = vadd.f32 %v6615_v38, %v487_v23  ;;  %v526_v44 = vadd.f32 %v6617_v39, %v486_v53 }
 0x221   : > { %v405_v28 = vadd.f32 %v6575_v4, %v355_v29  ;;  %v1415_v22 = vmul.f32 %v6831_v14, %v1413_v32  ;;  %v1789_v29 = vstv %s6900_s8  ;;  %s7061_s8 = sld [smem:[#allocation3 + $0x4a]] }
 0x222   : > { %v6907_v36 = vpop.permute.xlu1 %1184  ;;  %v6909_v41 = vpop.permute.xlu0 %1182  ;;  %v404_v38 = vadd.f32 %v6577_v5, %v354_v0  ;;  %v583_v39 = vadd.f32 %v6661_v37, %v527_v26  ;;  %v582_v23 = vadd.f32 %v6663_v48, %v526_v44  ;;  %v491_v48 = vmul.f32 %v489_v11, %v6884_v2 }
 0x223   : > { %8178 = vst [vmem:[#allocation42_spill] sm:$0xff] %v6907_v36  ;;  %8179 = vst [vmem:[#allocation43_spill] sm:$0xff] %v6909_v41  ;;  %v619_v41 = vstv %s6889_s10  ;;  %v461_v4 = vadd.f32 %v6591_v20, %v405_v28  ;;  %v490_v20 = vmul.f32 %v489_v11, %v6882_v63  ;;  %v1791_v44 = vmul.f32 %v6779_v46, %v1789_v29  ;;  %s7058_s10 = sld [smem:[#allocation3 + $0x64]] }
 0x224   : > { %700 = vrot.lane.b32.xlu1 %v695_v52, %s6016_s13  ;;  %698 = vrot.lane.b32.xlu0 %v694_v8, %s6016_s13  ;;  %v1414_v8 = vmul.f32 %v6834_v45, %v1413_v32  ;;  %v460_v36 = vadd.f32 %v6593_v21, %v404_v38  ;;  %v621_v5 = vmul.f32 %v619_v41, %v6920_v17 }
 0x225   : > { %v620_v37 = vmul.f32 %v619_v41, %v6922_v54  ;;  %v1790_v41 = vmul.f32 %v6782_v31, %v1789_v29  ;;  %v493_v28 = vadd.f32 %v491_v48, %v461_v4  ;;  %v1093_v4 = vstv %s6942_s14  ;;  %v6993_v48 = vld [vmem:[#allocation2 + $0x50] sm:$0xff]  ;;  %s7080_s14 = sld [smem:[#allocation3 + $0x56]] }
 0x226   : > { %v6933_v53 = vpop.permute.xlu1 %1890  ;;  %v6935_v52 = vpop.permute.xlu0 %1888  ;;  %v623_v32 = vadd.f32 %v621_v5, %v583_v39  ;;  %v803_v39 = vstv %s6925_s9  ;;  %s7070_s9 = sld [smem:[#allocation3 + $0x55]] }
 0x227   : > { %v622_v0 = vadd.f32 %v620_v37, %v582_v23  ;;  %v541_v46 = vadd.f32 %v6623_v58, %v493_v28  ;;  %v805_v58 = vmul.f32 %v803_v39, %v6859_v34 }
 0x228   : > { %1420 = vrot.lane.b32.xlu1 %v1415_v22, %s6015_s11  ;;  %1418 = vrot.lane.b32.xlu0 %v1414_v8, %s6015_s11  ;;  %v492_v22 = vadd.f32 %v490_v20, %v460_v36  ;;  %v663_v38 = vadd.f32 %v6723_v59, %v623_v32  ;;  %v1095_v20 = vmul.f32 %v6993_v48, %v1093_v4  ;;  %v6996_v32 = vld [vmem:[#allocation2 + $0x48] sm:$0xff] }
 0x229   : > { %v662_v11 = vadd.f32 %v6725_v60, %v622_v0  ;;  %v625_v60 = vstv %s6939_s12  ;;  %v597_v29 = vadd.f32 %v6667_v7, %v541_v46  ;;  %v1094_v0 = vmul.f32 %v6996_v32, %v1093_v4  ;;  %s7072_s12 = sld [smem:[#allocation3 + $0x80]] }
 0x22a   : > { %v6953_v26 = vpop.permute.xlu1 %762  ;;  %v6955_v21 = vpop.permute.xlu0 %760  ;;  %v540_v23 = vadd.f32 %v6625_v1, %v492_v22  ;;  %v719_v31 = vadd.f32 %v6775_v18, %v663_v38  ;;  %v804_v1 = vmul.f32 %v803_v39, %v6857_v15  ;;  %v1469_v18 = vstv %s6951_s15  ;;  %s7098_s15 = sld [smem:[#allocation3 + $0x6d]] }
 0x22b   : > { %v718_v36 = vadd.f32 %v6777_v19, %v662_v11  ;;  %v627_v19 = vmul.f32 %v625_v60, %v6920_v17  ;;  %v626_v7 = vmul.f32 %v625_v60, %v6922_v54  ;;  %v939_v38 = vstv %s6964_s16  ;;  %s7105_s16 = sld [smem:[#allocation3 + $0x6e]] }
 0x22c   : > { %1796 = vrot.lane.b32.xlu1 %v1791_v44, %s6016_s13  ;;  %1794 = vrot.lane.b32.xlu0 %v1790_v41, %s6016_s13  ;;  %v596_v5 = vadd.f32 %v6669_v10, %v540_v23  ;;  %v847_v44 = vadd.f32 %v6599_v50, %v805_v58  ;;  %v846_v41 = vadd.f32 %v6601_v51, %v804_v1 }
 0x22d   : > { %v629_v28 = vadd.f32 %v627_v19, %v597_v29  ;;  %v1471_v11 = vmul.f32 %v6647_v61, %v1469_v18  ;;  %v1470_v39 = vmul.f32 %v6650_v35, %v1469_v18  ;;  %v941_v60 = vmul.f32 %v939_v38, %v6884_v2 }
 0x22e   : > { %v6970_v8 = vpop.permute.xlu1 %1904  ;;  %v6972_v59 = vpop.permute.xlu0 %1902  ;;  %v628_v22 = vadd.f32 %v626_v7, %v596_v5  ;;  %v903_v50 = vadd.f32 %v6637_v12, %v847_v44  ;;  %v902_v51 = vadd.f32 %v6639_v13, %v846_v41  ;;  %v940_v4 = vmul.f32 %v939_v38, %v6882_v63 }
 0x22f   : > { %v677_v46 = vadd.f32 %v6731_v33, %v629_v28  ;;  %v809_v13 = vstv %s6982_s17  ;;  %v1149_v33 = vstv %s6985_s23  ;;  %s7112_s17 = sld [smem:[#allocation3 + $0x61]]  ;;  %s7115_s23 = sld [smem:[#allocation3 + $0x68]] }
 0x230   : > { %752 = vrot.lane.b32.xlu1 %v719_v31, %s6015_s11  ;;  %750 = vrot.lane.b32.xlu0 %v718_v36, %s6015_s11  ;;  %v676_v23 = vadd.f32 %v6733_v62, %v628_v22  ;;  %v943_v62 = vadd.f32 %v941_v60, %v903_v50  ;;  %v942_v5 = vadd.f32 %v940_v4, %v902_v51 }
 0x231   : > { %v733_v29 = vadd.f32 %v6787_v43, %v677_v46  ;;  %v810_v19 = vmul.f32 %v809_v13, %v6857_v15  ;;  %v1151_v44 = vmul.f32 %v6679_v55, %v1149_v33  ;;  %v1150_v38 = vmul.f32 %v6682_v57, %v1149_v33 }
 0x232   : > { %v6989_v37 = vpop.permute.xlu1 %1218  ;;  %v6991_v10 = vpop.permute.xlu0 %1216  ;;  %v732_v12 = vadd.f32 %v6789_v42, %v676_v23  ;;  %v811_v42 = vmul.f32 %v809_v13, %v6859_v34  ;;  %v983_v7 = vadd.f32 %v6693_v27, %v943_v62 }
 0x233   : > { %v767_v58 = vadd.f32 %v6953_v26, %v733_v29  ;;  %v860_v41 = vadd.f32 %v6609_v47, %v810_v19 }
 0x234   : > { %1100 = vrot.lane.b32.xlu1 %v1095_v20, %s6015_s11  ;;  %1098 = vrot.lane.b32.xlu0 %v1094_v0, %s6015_s11  ;;  %v766_v1 = vadd.f32 %v6955_v21, %v732_v12  ;;  %v982_v20 = vadd.f32 %v6695_v30, %v942_v5  ;;  %v861_v26 = vadd.f32 %v6607_v40, %v811_v42  ;;  %v945_v21 = vstv %s7004_s25  ;;  %s7128_s25 = sld [smem:[#allocation3 + $0x79]] }
 0x235   : > { %v1075_v0 = vstv %s7006_s26  ;;  %v1039_v27 = vadd.f32 %v6739_v49, %v983_v7  ;;  %v947_v50 = vmul.f32 %v945_v21, %v6884_v2  ;;  %v1081_v5 = vstv %s7045_s6  ;;  %s7130_s26 = sld [smem:[#allocation3 + $0x7a]]  ;;  %s7204_s6 = sld [smem:[#allocation3 + $0x85]] }
 0x236   : > { %v7014_v31 = vpop.permute.xlu1 %1570  ;;  %v7016_v36 = vpop.permute.xlu0 %1568  ;;  %v1038_v28 = vadd.f32 %v6741_v56, %v982_v20  ;;  %v917_v40 = vadd.f32 %v6643_v24, %v861_v26  ;;  %v1077_v47 = vmul.f32 %v1075_v0, %v6920_v17  ;;  %v1076_v49 = vmul.f32 %v1075_v0, %v6922_v54  ;;  %v8182_v20 = vld [vmem:[#allocation12_spill] sm:$0xff]  ;;  %v8183_v0 = vld [vmem:[#allocation13_spill] sm:$0xff] }
 0x237   : > { %v1259_v56 = vstv %s7027_s7  ;;  %v946_v24 = vmul.f32 %v945_v21, %v6882_v63  ;;  %v1549_v21 = vstv %s7058_s10  ;;  %s7158_s7 = sld [smem:[#allocation3 + $0x88]]  ;;  %s7206_s10 = sld [smem:[#allocation3 + $0x86]] }
 0x238   : > { %1476 = vrot.lane.b32.xlu1 %v1471_v11, %s6016_s13  ;;  %1474 = vrot.lane.b32.xlu0 %v1470_v39, %s6016_s13  ;;  %v1869_v11 = vstv %s7019_s30  ;;  %v916_v39 = vadd.f32 %v6645_v25, %v860_v41  ;;  %v1079_v25 = vadd.f32 %v1077_v47, %v1039_v27  ;;  %v1078_v51 = vadd.f32 %v1076_v49, %v1038_v28  ;;  %v8184_v41 = vld [vmem:[#allocation21_spill] sm:$0xff]  ;;  %v8185_v28 = vld [vmem:[#allocation22_spill] sm:$0xff]  ;;  %s7134_s30 = sld [smem:[#allocation3 + $0x62]] }
 0x239   : > { %v1871_v60 = vmul.f32 %v6831_v14, %v1869_v11  ;;  %v1870_v4 = vmul.f32 %v6834_v45, %v1869_v11  ;;  %v949_v29 = vadd.f32 %v947_v50, %v917_v40  ;;  %v1261_v62 = vmul.f32 %v1259_v56, %v6859_v34  ;;  %v8187_v49 = vld [vmem:[#allocation18_spill] sm:$0xff] }
 0x23a   : > { %v7032_v18 = vpop.permute.xlu1 %1584  ;;  %v7034_v43 = vpop.permute.xlu0 %1582  ;;  %v948_v12 = vadd.f32 %v946_v24, %v916_v39  ;;  %v1119_v13 = vadd.f32 %v6827_v6, %v1079_v25  ;;  %v1118_v33 = vadd.f32 %v6829_v9, %v1078_v51  ;;  %v1260_v14 = vmul.f32 %v1259_v56, %v6857_v15  ;;  %v8181_v6 = vld [vmem:[#allocation41_spill] sm:$0xff] }
 0x23b   : > { %v997_v45 = vadd.f32 %v6699_v16, %v949_v29  ;;  %v1303_v26 = vadd.f32 %v8182_v20, %v1261_v62  ;;  %v1265_v16 = vstv %s7061_s8  ;;  %v1395_v11 = vstv %s7070_s9  ;;  %v8190_v20 = vld [vmem:[#allocation35_spill] sm:$0xff]  ;;  %s7219_s8 = sld [smem:[#allocation3 + $0x8c]]  ;;  %s7224_s9 = sld [smem:[#allocation3]] }
 0x23c   : > { %772 = vrot.lane.b32.xlu1 %v767_v58, %s6016_s13  ;;  %770 = vrot.lane.b32.xlu0 %v766_v1, %s6016_s13  ;;  %v8180_v58 = vld [vmem:[#allocation16_spill] sm:$0xff]  ;;  %v1175_v42 = vadd.f32 %v6893_v3, %v1119_v13  ;;  %v1174_v19 = vadd.f32 %v8181_v6, %v1118_v33  ;;  %v8186_v3 = vld [vmem:[#allocation17_spill] sm:$0xff]  ;;  %v1083_v39 = vmul.f32 %v1081_v5, %v6920_v17  ;;  %v1925_v47 = vstv %s7072_s12  ;;  %s7242_s12 = sld [smem:[#allocation3 + $0xc]] }
 0x23d   : > { %v996_v1 = vadd.f32 %v8180_v58, %v948_v12  ;;  %v1053_v27 = vadd.f32 %v8184_v41, %v997_v45  ;;  %v1359_v40 = vadd.f32 %v8186_v3, %v1303_v26  ;;  %v1082_v50 = vmul.f32 %v1081_v5, %v6922_v54  ;;  %v8188_v5 = vld [vmem:[#allocation14_spill] sm:$0xff]  ;;  %v8189_v58 = vld [vmem:[#allocation15_spill] sm:$0xff] }
 0x23e   : > { %v7051_v30 = vpop.permute.xlu1 %1946  ;;  %v7053_v22 = vpop.permute.xlu0 %1944  ;;  %v1551_v51 = vmul.f32 %v6993_v48, %v1549_v21  ;;  %v1266_v29 = vmul.f32 %v1265_v16, %v6857_v15  ;;  %v1397_v12 = vmul.f32 %v1395_v11, %v6884_v2  ;;  %v1396_v13 = vmul.f32 %v1395_v11, %v6882_v63  ;;  %v8194_v11 = vld [vmem:[#allocation27_spill] sm:$0xff] }
 0x23f   : > { %v1401_v33 = vstv %s7080_s14  ;;  %v1085_v62 = vadd.f32 %v1083_v39, %v1053_v27  ;;  %v1927_v6 = vmul.f32 %v6647_v61, %v1925_v47  ;;  %v1926_v41 = vmul.f32 %v6650_v35, %v1925_v47  ;;  %v8192_v27 = vld [vmem:[#allocation19_spill] sm:$0xff]  ;;  %s7248_s14 = sld [smem:[#allocation3 + $0x24]] }
 0x240   : > { %1156 = vrot.lane.b32.xlu1 %v1151_v44, %s6016_s13  ;;  %1154 = vrot.lane.b32.xlu0 %v1150_v38, %s6016_s13  ;;  %v1302_v44 = vadd.f32 %v8183_v0, %v1260_v14  ;;  %v1052_v38 = vadd.f32 %v8185_v28, %v996_v1  ;;  %v1316_v1 = vadd.f32 %v8189_v58, %v1266_v29  ;;  %v1721_v39 = vstv %s7105_s16  ;;  %s4718_s16 = sld [smem:[#allocation3 + $0x18]] }
 0x241   : > { %v1133_v26 = vadd.f32 %v8190_v20, %v1085_v62  ;;  %v1403_v35 = vmul.f32 %v1401_v33, %v6884_v2  ;;  %v1402_v47 = vmul.f32 %v1401_v33, %v6882_v63  ;;  %v1531_v29 = vstv %s7112_s17  ;;  %s4867_s17 = sshll.u32 %s6072_s22, 11 }
 0x242   : > { %v7074_v46 = vpop.permute.xlu1 %1960  ;;  %v7076_v23 = vpop.permute.xlu0 %1958  ;;  %v1358_v56 = vadd.f32 %v8187_v49, %v1302_v44  ;;  %v1084_v14 = vadd.f32 %v1082_v50, %v1052_v38  ;;  %v8193_v38 = vld [vmem:[#allocation20_spill] sm:$0xff]  ;;  %v8196_v50 = vld [vmem:[#allocation42_spill] sm:$0xff]  ;;  %v1851_v20 = vstv %s7128_s25  ;;  %v1857_v33 = vstv %s7130_s26  ;;  %s4756_s25 = sld [smem:[#allocation3 + $0x3c]] }
 0x243   : > { %v1372_v3 = vadd.f32 %v8193_v38, %v1316_v1  ;;  %v8195_v49 = vld [vmem:[#allocation28_spill] sm:$0xff]  ;;  %s4810_s26 = sld [smem:[#allocation3 + $0x6c]] }
 0x244   : > { %1876 = vrot.lane.b32.xlu1 %v1871_v60, %s6015_s11  ;;  %1874 = vrot.lane.b32.xlu0 %v1870_v4, %s6015_s11  ;;  %v1550_v60 = vmul.f32 %v6996_v32, %v1549_v21  ;;  %v1267_v4 = vmul.f32 %v1265_v16, %v6859_v34  ;;  %v8191_v21 = vld [vmem:[#allocation36_spill] sm:$0xff] }
 0x245   : > { %v1132_v0 = vadd.f32 %v8191_v21, %v1084_v14  ;;  %v8199_v14 = vld [vmem:[#allocation38_spill] sm:$0xff]  ;;  %v1533_v21 = vmul.f32 %v1531_v29, %v6920_v17 }
 0x246   : > { %v7093_v9 = vpop.permute.xlu1 %1626  ;;  %v7095_v7 = vpop.permute.xlu0 %1624  ;;  %v1317_v45 = vadd.f32 %v8188_v5, %v1267_v4 }
 0x248   : > { %1208 = vrot.lane.b32.xlu1 %v1175_v42, %s6015_s11  ;;  %1206 = vrot.lane.b32.xlu0 %v1174_v19, %s6015_s11  ;;  %v1399_v42 = vadd.f32 %v1397_v12, %v1359_v40  ;;  %v1398_v19 = vadd.f32 %v1396_v13, %v1358_v56  ;;  %v1373_v28 = vadd.f32 %v8192_v27, %v1317_v45  ;;  %v1715_v40 = vstv %s7098_s15  ;;  %v8198_v13 = vld [vmem:[#allocation37_spill] sm:$0xff]  ;;  %s4744_s15 = sld [smem:[#allocation3 + $0x30]] }
 0x249   : > { %v1605_v12 = vstv %s7115_s23  ;;  %v8200_v27 = vld [vmem:[#allocation29_spill] sm:$0xff] }
 0x24a   : > { %v7119_v24 = vpop.permute.xlu1 %1640  ;;  %v7121_v25 = vpop.permute.xlu0 %1638  ;;  %v1439_v61 = vadd.f32 %v8194_v11, %v1399_v42  ;;  %v1438_v56 = vadd.f32 %v8195_v49, %v1398_v19  ;;  %v1405_v19 = vadd.f32 %v1403_v35, %v1373_v28  ;;  %v1607_v28 = vmul.f32 %v6679_v55, %v1605_v12  ;;  %v8201_v11 = vld [vmem:[#allocation30_spill] sm:$0xff]  ;;  %v8205_v55 = vld [vmem:[#allocation40_spill] sm:$0xff] }
 0x24c   : > { %1556 = vrot.lane.b32.xlu1 %v1551_v51, %s6015_s11  ;;  %1554 = vrot.lane.b32.xlu0 %v1550_v60, %s6015_s11  ;;  %v1189_v51 = vadd.f32 %v8196_v50, %v1133_v26  ;;  %v8197_v60 = vld [vmem:[#allocation43_spill] sm:$0xff]  ;;  %v1495_v62 = vadd.f32 %v8198_v13, %v1439_v61  ;;  %v1494_v5 = vadd.f32 %v8199_v14, %v1438_v56 }
 0x24d   : > { %v1188_v4 = vadd.f32 %v8197_v60, %v1132_v0  ;;  %v1404_v26 = vadd.f32 %v1402_v47, %v1372_v3  ;;  %v1532_v0 = vmul.f32 %v1531_v29, %v6922_v54  ;;  %v1453_v38 = vadd.f32 %v8200_v27, %v1405_v19  ;;  %v8202_v60 = vld [vmem:[#allocation23_spill] sm:$0xff] }
 0x24e   : > { %v7143_v44 = vpop.permute.xlu1 %1674  ;;  %v7145_v16 = vpop.permute.xlu0 %1672  ;;  %v1223_v45 = vadd.f32 %v6989_v37, %v1189_v51  ;;  %v1716_v37 = vmul.f32 %v1715_v40, %v6857_v15  ;;  %v1535_v61 = vadd.f32 %v1533_v21, %v1495_v62  ;;  %v1606_v51 = vmul.f32 %v6682_v57, %v1605_v12  ;;  %v8204_v29 = vld [vmem:[#allocation39_spill] sm:$0xff]  ;;  %v8206_v57 = vld [vmem:[#allocation25_spill] sm:$0xff] }
 0x24f   : > { %v1222_v58 = vadd.f32 %v6991_v10, %v1188_v4  ;;  %v1723_v10 = vmul.f32 %v1721_v39, %v6859_v34  ;;  %v1452_v3 = vadd.f32 %v8201_v11, %v1404_v26  ;;  %v1534_v49 = vadd.f32 %v1532_v0, %v1494_v5  ;;  %v8208_v19 = vld [vmem:[#allocation31_spill] sm:$0xff]  ;;  %v8211_v11 = vld [vmem:[#allocation34_spill] sm:$0xff] }
 0x250   : > { %1932 = vrot.lane.b32.xlu1 %v1927_v6, %s6016_s13  ;;  %1930 = vrot.lane.b32.xlu0 %v1926_v41, %s6016_s13  ;;  %v1717_v6 = vmul.f32 %v1715_v40, %v6859_v34  ;;  %v1537_v41 = vstv %s7134_s30  ;;  %v8203_v40 = vld [vmem:[#allocation24_spill] sm:$0xff]  ;;  %v1722_v47 = vmul.f32 %v1721_v39, %v6857_v15  ;;  %v1509_v13 = vadd.f32 %v8204_v29, %v1453_v38  ;;  %v8210_v38 = vld [vmem:[#allocation33_spill] sm:$0xff]  ;;  %s4822_s30 = sld [smem:[#allocation3 + $0x78]] }
 0x251   : > { %v1758_v35 = vadd.f32 %v8203_v40, %v1716_v37  ;;  %v1508_v14 = vadd.f32 %v8205_v55, %v1452_v3  ;;  %v1574_v62 = vadd.f32 %v7016_v36, %v1534_v49  ;;  %v2005_v5 = vstv %s7158_s7  ;;  %s4795_s7 = sld [smem:[#allocation3 + $0x60]] }
 0x252   : > { %v7168_v1 = vpop.permute.xlu1 %2026  ;;  %v7170_v42 = vpop.permute.xlu0 %2024  ;;  %v1759_v4 = vadd.f32 %v8202_v60, %v1717_v6  ;;  %v1773_v12 = vadd.f32 %v8206_v57, %v1723_v10  ;;  %v1539_v39 = vmul.f32 %v1537_v41, %v6920_v17  ;;  %v1538_v36 = vmul.f32 %v1537_v41, %v6922_v54 }
 0x253   : > { %v1630_v37 = vadd.f32 %v7095_v7, %v1574_v62  ;;  %v1852_v49 = vmul.f32 %v1851_v20, %v6882_v63  ;;  %v1859_v7 = vmul.f32 %v1857_v33, %v6884_v2  ;;  %v1858_v60 = vmul.f32 %v1857_v33, %v6882_v63 }
 0x254   : > { %1228 = vrot.lane.b32.xlu1 %v1223_v45, %s6016_s13  ;;  %1226 = vrot.lane.b32.xlu0 %v1222_v58, %s6016_s13  ;;  %v1575_v45 = vadd.f32 %v7014_v31, %v1535_v61  ;;  %v8207_v58 = vld [vmem:[#allocation26_spill] sm:$0xff]  ;;  %v1815_v26 = vadd.f32 %v8208_v19, %v1759_v4  ;;  %v8209_v31 = vld [vmem:[#allocation32_spill] sm:$0xff]  ;;  %v1853_v61 = vmul.f32 %v1851_v20, %v6884_v2  ;;  %v1993_v62 = vstv %s7206_s10  ;;  %s4834_s10 = sld [smem:[#allocation3 + $0x84]] }
 0x255   : > { %v1772_v6 = vadd.f32 %v8207_v58, %v1722_v47  ;;  %v1814_v21 = vadd.f32 %v8209_v31, %v1758_v35  ;;  %v1540_v41 = vadd.f32 %v1538_v36, %v1508_v14  ;;  %v2007_v4 = vmul.f32 %v6993_v48, %v2005_v5 }
 0x256   : > { %v7185_v56 = vpop.permute.xlu1 %2040  ;;  %v7187_v50 = vpop.permute.xlu0 %2038  ;;  %v1631_v0 = vadd.f32 %v7093_v9, %v1575_v45  ;;  %v1855_v9 = vadd.f32 %v1853_v61, %v1815_v26  ;;  %v477_v61 = vstv %s7242_s12  ;;  %s7362_s12 = sld [smem:[#allocation6 + $0x3]] }
 0x257   : > { %v1828_v3 = vadd.f32 %v8211_v11, %v1772_v6  ;;  %v1854_v40 = vadd.f32 %v1852_v49, %v1814_v21  ;;  %v1588_v20 = vadd.f32 %v7034_v43, %v1540_v41  ;;  %v5908_v21 = vld [vmem:[#allocation2 + $0x49] sm:$0xff]  ;;  %v797_v41 = vstv %s7248_s14 }
 0x258   : > { %1612 = vrot.lane.b32.xlu1 %v1607_v28, %s6016_s13  ;;  %1610 = vrot.lane.b32.xlu0 %v1606_v51, %s6016_s13  ;;  %v1829_v28 = vadd.f32 %v8210_v38, %v1773_v12  ;;  %v1541_v51 = vadd.f32 %v1539_v39, %v1509_v13  ;;  %v2006_v13 = vmul.f32 %v6996_v32, %v2005_v5 }
 0x259   : > { %v1895_v55 = vadd.f32 %v6933_v53, %v1855_v9  ;;  %v1860_v45 = vadd.f32 %v1858_v60, %v1828_v3  ;;  %v1894_v33 = vadd.f32 %v6935_v52, %v1854_v40  ;;  %v1987_v53 = vstv %s7204_s6  ;;  %s778_s6 = sld [smem:[#allocation6]] }
 0x25a   : > { %v7212_v27 = vpop.permute.xlu1 %2082  ;;  %v7214_v10 = vpop.permute.xlu0 %2080  ;;  %v1589_v35 = vadd.f32 %v7032_v18, %v1541_v51  ;;  %v1861_v14 = vadd.f32 %v1859_v7, %v1829_v28  ;;  %v1644_v18 = vadd.f32 %v7121_v25, %v1588_v20  ;;  %v1989_v6 = vmul.f32 %v1987_v53, %v6920_v17 }
 0x25b   : > { %v1908_v32 = vadd.f32 %v6972_v59, %v1860_v45  ;;  %v1951_v52 = vadd.f32 %v7051_v30, %v1895_v55  ;;  %v1988_v19 = vmul.f32 %v1987_v53, %v6922_v54  ;;  %v341_v30 = vstv %s7224_s9  ;;  %s4807_s9 = sld [smem:[#allocation6 + $0x2]] }
 0x25c   : > { %1664 = vrot.lane.b32.xlu1 %v1631_v0, %s6015_s11  ;;  %1662 = vrot.lane.b32.xlu0 %v1630_v37, %s6015_s11  ;;  %v1645_v48 = vadd.f32 %v7119_v24, %v1589_v35  ;;  %v1909_v43 = vadd.f32 %v6970_v8, %v1861_v14  ;;  %v1950_v24 = vadd.f32 %v7053_v22, %v1894_v33  ;;  %v2061_v8 = vstv %s7219_s8  ;;  %s7333_s8 = sld [smem:[#allocation6 + $0x1]] }
 0x25d   : > { %v1678_v5 = vadd.f32 %v7145_v16, %v1644_v18  ;;  %v1964_v59 = vadd.f32 %v7076_v23, %v1908_v32  ;;  %v1995_v22 = vmul.f32 %v1993_v62, %v6920_v17  ;;  %v1991_v16 = vadd.f32 %v1989_v6, %v1951_v52  ;;  %v5907_v23 = vld [vmem:[#allocation2 + $0x51] sm:$0xff] }
 0x25e   : > { %v7231_v47 = vpop.permute.xlu1 %2096  ;;  %v7233_v29 = vpop.permute.xlu0 %2094  ;;  %v1679_v25 = vadd.f32 %v7143_v44, %v1645_v48  ;;  %v1965_v58 = vadd.f32 %v7074_v46, %v1909_v43  ;;  %v1994_v44 = vmul.f32 %v1993_v62, %v6922_v54  ;;  %v1990_v26 = vadd.f32 %v1988_v19, %v1950_v24 }
 0x25f   : > { %v2063_v31 = vmul.f32 %v5907_v23, %v2061_v8  ;;  %v2062_v36 = vmul.f32 %v5908_v21, %v2061_v8  ;;  %v343_v37 = vmul.f32 %v341_v30, %v6859_v34  ;;  %v342_v38 = vmul.f32 %v341_v30, %v6857_v15 }
 0x260   : > { %2012 = vrot.lane.b32.xlu1 %v2007_v4, %s6015_s11  ;;  %2010 = vrot.lane.b32.xlu0 %v2006_v13, %s6015_s11  ;;  %v1997_v0 = vadd.f32 %v1995_v22, %v1965_v58  ;;  %v2031_v28 = vadd.f32 %v7168_v1, %v1991_v16  ;;  %v2030_v11 = vadd.f32 %v7170_v42, %v1990_v26  ;;  %v933_v53 = vstv %s4744_s15 }
 0x261   : > { %v1996_v3 = vadd.f32 %v1994_v44, %v1964_v59  ;;  %v479_v20 = vmul.f32 %v477_v61, %v6884_v2  ;;  %v478_v13 = vmul.f32 %v477_v61, %v6882_v63 }
 0x262   : > { %v2131_v57 = vpop.permute.xlu1 %2130  ;;  %v2129_v12 = vpop.permute.xlu0 %2128  ;;  %v2045_v9 = vadd.f32 %v7185_v56, %v1997_v0  ;;  %v2087_v60 = vadd.f32 %v7212_v27, %v2031_v28  ;;  %v2086_v4 = vadd.f32 %v7214_v10, %v2030_v11  ;;  %v799_v56 = vmul.f32 %v797_v41, %v6859_v34 }
 0x263   : > { %v2044_v7 = vadd.f32 %v7187_v50, %v1996_v3  ;;  %v798_v50 = vmul.f32 %v797_v41, %v6857_v15  ;;  %v2164_v3 = vld [vmem:[%s8127_s3] sm:$0xff] }
 0x264   : > { %1684 = vrot.lane.b32.xlu1 %v1679_v25, %s6016_s13  ;;  %1682 = vrot.lane.b32.xlu0 %v1678_v5, %s6016_s13  ;;  %v2101_v55 = vadd.f32 %v7231_v47, %v2045_v9  ;;  %v935_v5 = vmul.f32 %v933_v53, %v6884_v2  ;;  %v2182_v61 = vsel %vm2180_vm3, %v2164_v3, 0 }
 0x265   : > { %v2100_v14 = vadd.f32 %v7233_v29, %v2044_v7 }
 0x266   : > { %v373_v46 = vpop.permute.xlu1 %372  ;;  %v371_v39 = vpop.permute.xlu0 %370  ;;  %v2135_v45 = vadd.f32 %v2131_v57, %v2101_v55  ;;  %v934_v57 = vmul.f32 %v933_v53, %v6882_v63 }
 0x267   : > { %v377_v49 = vadd.f32 %v373_v46, %v343_v37  ;;  %v376_v51 = vadd.f32 %v371_v39, %v342_v38  ;;  %v2134_v33 = vadd.f32 %v2129_v12, %v2100_v14  ;;  %v613_v12 = vstv %s4718_s16  ;;  %s242_s16 = sand.u32 1, %s6001_s19  }
 0x268   : > { %2068 = vrot.lane.b32.xlu1 %v2063_v31, %s6016_s13  ;;  %2066 = vrot.lane.b32.xlu0 %v2062_v36, %s6016_s13  ;;  %v615_v26 = vmul.f32 %v613_v12, %v6920_v17  ;;  %v614_v46 = vmul.f32 %v613_v12, %v6922_v54  ;;  %s8083_s22 = scalar_lea.sflag [#allocation4], %s242_s16 }
 0x26a   : > { %v429_v1 = vpop.permute.xlu1 %428  ;;  %v427_v40 = vpop.permute.xlu0 %426 }
 0x26b   : > { %v433_v42 = vadd.f32 %v429_v1, %v377_v49  ;;  %v432_v35 = vadd.f32 %v427_v40, %v376_v51  ;;  %v7300_v51 = vand.u32 4294901760, %v2182_v61 }
 0x26c   : > { %2120 = vrot.lane.b32.xlu1 %v2087_v60, %s6015_s11  ;;  %2118 = vrot.lane.b32.xlu0 %v2086_v4, %s6015_s11  ;;  %s4771_s11 = sld [smem:[#allocation3 + $0x48]] }
 0x26d   : > { %v481_v27 = vadd.f32 %v479_v20, %v433_v42  ;;  %v480_v10 = vadd.f32 %v478_v13, %v432_v35  ;;  %v7303_v7 = vsub.f32 %v2182_v61, %v7300_v51 }
 0x26e   : > { %v829_v48 = vpop.permute.xlu1 %828  ;;  %v827_v18 = vpop.permute.xlu0 %826 }
 0x26f   : > { %v833_v43 = vadd.f32 %v829_v48, %v799_v56  ;;  %v832_v32 = vadd.f32 %v827_v18, %v798_v50  ;;  %v2304_v42 = vand.u32 4294901760, %v7303_v7  ;;  %v1069_v56 = vstv %s4756_s25 }
 0x270   : > { %2140 = vrot.lane.b32.xlu1 %v2135_v45, %s6016_s13  ;;  %2138 = vrot.lane.b32.xlu0 %v2134_v33, %s6016_s13  ;;  %s4783_s13 = sld [smem:[#allocation3 + $0x54]] }
 0x271   : > { %v2305_v14 = vsub.f32 %v7303_v7, %v2304_v42 }
 0x272   : > { %v509_v47 = vpop.permute.xlu1 %508  ;;  %v507_v29 = vpop.permute.xlu0 %506  ;;  %v1253_v22 = vstv %s4771_s11  ;;  %s4692_s11 = sshll.u32 %s242_s16, 7 }
 0x273   : > { %v513_v58 = vadd.f32 %v509_v47, %v481_v27  ;;  %v512_v8 = vadd.f32 %v507_v29, %v480_v10  ;;  %v1255_v39 = vmul.f32 %v1253_v22, %v6859_v34  ;;  %v1254_v23 = vmul.f32 %v1253_v22, %v6857_v15 }
 0x274   : > { %v2306_v50 = vand.u32 4294901760, %v2305_v14 }
 0x276   : > { %v885_v62 = vpop.permute.xlu1 %884  ;;  %v883_v52 = vpop.permute.xlu0 %882  ;;  %v1389_v49 = vstv %s4783_s13  ;;  %5136 = vmatprep.mubr.f32.mxu0 %v2306_v50  ;;  %s8038_s13 = scalar_lea.vmem [#allocation8], %s4692_s11 }
 0x277   : > { %v889_v24 = vadd.f32 %v885_v62, %v833_v43  ;;  %v888_v25 = vadd.f32 %v883_v52, %v832_v32  ;;  %v1391_v1 = vmul.f32 %v1389_v49, %v6884_v2  ;;  %v1390_v40 = vmul.f32 %v1389_v49, %v6882_v63  ;;  %s4600_s23 = sshll.u32 %s8038_s13, 4  ;;  %s8075_s23 = int_to_ptr.vmem [resolvable:$true] %s4600_s23 }
 0x278   : > { %v1071_v43 = vmul.f32 %v1069_v56, %v6920_v17  ;;  %v1070_v32 = vmul.f32 %v1069_v56, %v6922_v54 }
 0x279   : > { %v937_v59 = vadd.f32 %v935_v5, %v889_v24  ;;  %v936_v6 = vadd.f32 %v934_v57, %v888_v25  ;;  %v1709_v25 = vstv %s4810_s26 }
 0x27a   : > { %v565_v19 = vpop.permute.xlu1 %564  ;;  %v563_v30 = vpop.permute.xlu0 %562  ;;  %v1711_v12 = vmul.f32 %v1709_v25, %v6859_v34 }
 0x27b   : > { %v569_v44 = vadd.f32 %v565_v19, %v513_v58  ;;  %v568_v16 = vadd.f32 %v563_v30, %v512_v8  ;;  %v1710_v58 = vmul.f32 %v1709_v25, %v6857_v15  ;;  %v1845_v8 = vstv %s4822_s30  ;;  %s8073_s30 = scalar_lea.hbm %s8129_s5, %s4867_s17 }
 0x27c   : > { %v1525_v15 = vstv %s4795_s7  ;;  %s5939_s7 = scalar_lea.vmem %s8075_s23, 2048 }
 0x27d   : > { %v7292_v31 = vadd.f32 %v615_v26, %v569_v44  ;;  %v7294_v21 = vadd.f32 %v614_v46, %v568_v16  ;;  %v1847_v16 = vmul.f32 %v1845_v8, %v6884_v2  ;;  %v1846_v26 = vmul.f32 %v1845_v8, %v6882_v63  ;;  %p5940_p10 = scmp.ne.s32.totalorder %s8075_s23, %s5939_s7 }
 0x27e   : > { %v1285_v36 = vpop.permute.xlu1 %1284  ;;  %v1283_v0 = vpop.permute.xlu0 %1282  ;;  %v1527_v2 = vmul.f32 %v1525_v15, %v6920_v17  ;;  %v1526_v63 = vmul.f32 %v1525_v15, %v6922_v54 }
 0x27f   : > { %v1289_v37 = vadd.f32 %v1285_v36, %v1255_v39  ;;  %v1288_v38 = vadd.f32 %v1283_v0, %v1254_v23  ;;  %p5941_p0 = pnand %p5940_p10, %p8218_p12 }
 0x281   : > { %p5942_p7 = pneg %p5941_p0 }
 0x282   : > { %v965_v28 = vpop.permute.xlu1 %964  ;;  %v963_v11 = vpop.permute.xlu0 %962 }
 0x283   : > { %v969_v27 = vadd.f32 %v965_v28, %v937_v59  ;;  %v968_v10 = vadd.f32 %v963_v11, %v936_v6 }
 0x286   : > { %v1341_v41 = vpop.permute.xlu1 %1340  ;;  %v1339_v9 = vpop.permute.xlu0 %1338 }
 0x287   : > { %v1345_v60 = vadd.f32 %v1341_v41, %v1289_v37  ;;  %v1344_v4 = vadd.f32 %v1339_v9, %v1288_v38 }
 0x289   : > { %v1393_v35 = vadd.f32 %v1391_v1, %v1345_v60  ;;  %v1392_v20 = vadd.f32 %v1390_v40, %v1344_v4 }
 0x28a   : > { %v645_v13 = vpop.permute.xlu1 %644  ;;  %v643_v55 = vpop.permute.xlu0 %642 }
 0x28b   : > { %v649_v37 = vadd.f32 %v645_v13, %v7292_v31  ;;  %v648_v38 = vadd.f32 %v643_v55, %v7294_v21  ;;  %v779_v31 = vstv %s778_s6  ;;  %s6018_s6 = smov [#allocation8]  }
 0x28e   : > { %v1021_v45 = vpop.permute.xlu1 %1020  ;;  %v1019_v33 = vpop.permute.xlu0 %1018 }
 0x28f   : > { %v1025_v48 = vadd.f32 %v1021_v45, %v969_v27  ;;  %v1024_v18 = vadd.f32 %v1019_v33, %v968_v10 }
 0x291   : > { %v7313_v47 = vadd.f32 %v1071_v43, %v1025_v48  ;;  %v7315_v29 = vadd.f32 %v1070_v32, %v1024_v18 }
 0x292   : > { %v1741_v53 = vpop.permute.xlu1 %1740  ;;  %v1739_v62 = vpop.permute.xlu0 %1738 }
 0x293   : > { %v1745_v59 = vadd.f32 %v1741_v53, %v1711_v12  ;;  %v1744_v6 = vadd.f32 %v1739_v62, %v1710_v58  ;;  %v1981_v62 = vstv %s4834_s10  ;;  %s5943_s10 = sshll.u32 %s6018_s6, 4  ;;  %s5944_s10 = int_to_ptr.vmem [resolvable:$false] %s5943_s10 }
 0x294   : > { %p5946_p8 = scmp.lt.s32.totalorder %s8075_s23, %s5944_s10 }
 0x296   : > { %v701_v52 = vpop.permute.xlu1 %700  ;;  %v699_v24 = vpop.permute.xlu0 %698 }
 0x297   : > { %v705_v49 = vadd.f32 %v701_v52, %v649_v37  ;;  %v704_v41 = vadd.f32 %v699_v24, %v648_v38  ;;  %v1235_v37 = vstv %s7333_s8  ;;  %s5945_s8 = scalar_lea.vmem %s5944_s10, 4096 }
 0x298   : > { %p5947_p11 = scmp.lt.s32.totalorder %s5945_s8, %s5939_s7 }
 0x29a   : > { %v1421_v5 = vpop.permute.xlu1 %1420  ;;  %v1419_v57 = vpop.permute.xlu0 %1418  ;;  %p5948_p13 = por %p5947_p11, %p5946_p8 }
 0x29b   : > { %v1425_v28 = vadd.f32 %v1421_v5, %v1393_v35  ;;  %v1424_v11 = vadd.f32 %v1419_v57, %v1392_v20 }
 0x29c   : > { %p5949_p1 = pnand %p5948_p13, %p5942_p7 }
 0x29e   : > { %v1797_v19 = vpop.permute.xlu1 %1796  ;;  %v1795_v30 = vpop.permute.xlu0 %1794 }
 0x29f   : > { %v1801_v22 = vadd.f32 %v1797_v19, %v1745_v59  ;;  %v1800_v44 = vadd.f32 %v1795_v30, %v1744_v6  ;;  %v1983_v59 = vmul.f32 %v1981_v62, %v6920_v17 }
 0x2a1   : > { %v1849_v46 = vadd.f32 %v1847_v16, %v1801_v22  ;;  %v1848_v39 = vadd.f32 %v1846_v26, %v1800_v44  ;;  %v1982_v16 = vmul.f32 %v1981_v62, %v6922_v54 }
 0x2a2   : > { %v753_v23 = vpop.permute.xlu1 %752  ;;  %v751_v36 = vpop.permute.xlu0 %750 }
 0x2a3   : > { %v757_v4 = vadd.f32 %v753_v23, %v705_v49  ;;  %v756_v1 = vadd.f32 %v751_v36, %v704_v41 }
 0x2a6   : > { %v1101_v0 = vpop.permute.xlu1 %1100  ;;  %v1099_v34 = vpop.permute.xlu0 %1098 }
 0x2a7   : > { %v1105_v25 = vadd.f32 %v1101_v0, %v7313_v47  ;;  %v1104_v5 = vadd.f32 %v1099_v34, %v7315_v29 }
 0x2aa   : > { %v1477_v3 = vpop.permute.xlu1 %1476  ;;  %v1475_v61 = vpop.permute.xlu0 %1474 }
 0x2ab   : > { %v1481_v9 = vadd.f32 %v1477_v3, %v1425_v28  ;;  %v1480_v60 = vadd.f32 %v1475_v61, %v1424_v11 }
 0x2ad   : > { %v7325_v40 = vadd.f32 %v1527_v2, %v1481_v9  ;;  %v7327_v14 = vadd.f32 %v1526_v63, %v1480_v60 }
 0x2ae   : > { %v773_v21 = vpop.permute.xlu1 %772  ;;  %v771_v35 = vpop.permute.xlu0 %770 }
 0x2af   : > { %v777_v20 = vadd.f32 %v773_v21, %v757_v4  ;;  %v776_v13 = vadd.f32 %v771_v35, %v756_v1 }
 0x2b1   : > { %v781_v55 = vadd.f32 %v779_v31, %v777_v20  ;;  %v780_v56 = vadd.f32 %v779_v31, %v776_v13 }
 0x2b2   : > { %v1157_v50 = vpop.permute.xlu1 %1156  ;;  %v1155_v27 = vpop.permute.xlu0 %1154 }
 0x2b3   : > { %v786_v10 = vmul.f32 1.442695, %v781_v55  ;;  %v784_v45 = vmul.f32 1.442695, %v780_v56  ;;  %v1161_v19 = vadd.f32 %v1157_v50, %v1105_v25  ;;  %v1160_v30 = vadd.f32 %v1155_v27, %v1104_v5 }
 0x2b4   : > { %vm783_vm4 = vcmp.gt.f32.partialorder %v781_v55, 0.0  ;;  %vm782_vm5 = vcmp.gt.f32.partialorder %v780_v56, 0.0 }
 0x2b5   : > { %5875 = vpow2.f32 %v786_v10 }
 0x2b6   : > { %5877 = vpow2.f32 %v784_v45  ;;  %v1877_v33 = vpop.permute.xlu1 %1876  ;;  %v1875_v48 = vpop.permute.xlu0 %1874 }
 0x2b7   : > { %v1881_v58 = vadd.f32 %v1877_v33, %v1849_v46  ;;  %v1880_v8 = vadd.f32 %v1875_v48, %v1848_v39 }
 0x2ba   : > { %v1209_v18 = vpop.permute.xlu1 %1208  ;;  %v1207_v43 = vpop.permute.xlu0 %1206 }
 0x2bb   : > { %v1213_v29 = vadd.f32 %v1209_v18, %v1161_v19  ;;  %v1212_v0 = vadd.f32 %v1207_v43, %v1160_v30 }
 0x2be   : > { %v7329_v32 = vpop.permute.xlu1 %1556  ;;  %v7331_v53 = vpop.permute.xlu0 %1554 }
 0x2bf   : > { %v5876_v52 = vpop.eup %5875  ;;  %v1561_v33 = vadd.f32 %v7329_v32, %v7325_v40  ;;  %v1560_v48 = vadd.f32 %v7331_v53, %v7327_v14 }
 0x2c0   : > { %v5878_v24 = vpop.eup %5877  ;;  %v4731_v57 = vadd.f32 -1.0, %v5876_v52 }
 0x2c1   : > { %v4730_v12 = vadd.f32 -1.0, %v5878_v24 }
 0x2c2   : > { %v791_v6 = vmul.f32 1.6732632, %v4731_v57  ;;  %v1933_v22 = vpop.permute.xlu1 %1932  ;;  %v1931_v44 = vpop.permute.xlu0 %1930  ;;  %v1691_v57 = vstv %s4807_s9 }
 0x2c3   : > { %v790_v26 = vmul.f32 1.6732632, %v4730_v12  ;;  %v1937_v23 = vadd.f32 %v1933_v22, %v1881_v58  ;;  %v1936_v47 = vadd.f32 %v1931_v44, %v1880_v8 }
 0x2c4   : > { %v793_v36 = vsel %vm783_vm4, %v781_v55, %v791_v6 }
 0x2c5   : > { %v795_v46 = vmul.f32 1.050701, %v793_v36  ;;  %v792_v39 = vsel %vm782_vm5, %v780_v56, %v790_v26  ;;  %v7339_v34 = vadd.f32 %v1983_v59, %v1937_v23  ;;  %v7341_v17 = vadd.f32 %v1982_v16, %v1936_v47 }
 0x2c6   : > { %v794_v15 = vmul.f32 1.050701, %v792_v39  ;;  %v1229_v38 = vpop.permute.xlu1 %1228  ;;  %v1227_v28 = vpop.permute.xlu0 %1226 }
 0x2c7   : > { %v2233_v11 = vand.u32 4294901760, %v795_v46  ;;  %v1233_v54 = vadd.f32 %v1229_v38, %v1213_v29  ;;  %v1232_v3 = vadd.f32 %v1227_v28, %v1212_v0 }
 0x2c8   : > { %v2230_v61 = vand.u32 4294901760, %v794_v15 }
 0x2c9   : > { %v2471_v2 = vsub.f32 %v795_v46, %v2233_v11  ;;  %v1237_v63 = vadd.f32 %v1235_v37, %v1233_v54  ;;  %v1236_v49 = vadd.f32 %v1235_v37, %v1232_v3 }
 0x2ca   : > { %v7344_v41 = vpack.c.bf16 %v2233_v11, %v2230_v61  ;;  %v2464_v9 = vsub.f32 %v794_v15, %v2230_v61  ;;  %v1613_v60 = vpop.permute.xlu1 %1612  ;;  %v1611_v4 = vpop.permute.xlu0 %1610 }
 0x2cb   : > { %v1242_v1 = vmul.f32 1.442695, %v1237_v63  ;;  %v1240_v31 = vmul.f32 1.442695, %v1236_v49  ;;  %v2472_v35 = vand.u32 4294901760, %v2471_v2  ;;  %v1617_v52 = vadd.f32 %v1613_v60, %v1561_v33  ;;  %v2167_v33 = vld [vmem:[%s8127_s3 + $0x18] sm:$0xff] }
 0x2cc   : > { %5529 = vmatprep.subr.bf16.mxu0 %v7344_v41  ;;  %v2465_v21 = vand.u32 4294901760, %v2464_v9  ;;  %v7348_v20 = vpack.c.bf16 %v2471_v2, %v2464_v9  ;;  %v1616_v24 = vadd.f32 %v1611_v4, %v1560_v48  ;;  %vm1239_vm6 = vcmp.gt.f32.partialorder %v1237_v63, 0.0 }
 0x2cd   : > { %5879 = vpow2.f32 %v1242_v1  ;;  %5531 = vmatpush3.bf16.msra.mxu0 %v7344_v41  ;;  %v2473_v50 = vsub.f32 %v2471_v2, %v2472_v35  ;;  %vm1238_vm7 = vcmp.gt.f32.partialorder %v1236_v49, 0.0 }
 0x2ce   : > { %5881 = vpow2.f32 %v1240_v31  ;;  %v1665_v13 = vpop.permute.xlu1 %1664  ;;  %v1663_v55 = vpop.permute.xlu0 %1662  ;;  %v2466_v56 = vsub.f32 %v2464_v9, %v2465_v21  ;;  %v7350_v27 = vpack.c.bf16 %v2472_v35, %v2465_v21 }
 0x2cf   : > { %v2474_v45 = vand.u32 4294901760, %v2473_v50  ;;  %v1669_v25 = vadd.f32 %v1665_v13, %v1617_v52  ;;  %v1668_v5 = vadd.f32 %v1663_v55, %v1616_v24 }
 0x2d0   : > { %v2467_v10 = vand.u32 4294901760, %v2466_v56 }
 0x2d2   : > { %v2013_v18 = vpop.permute.xlu1 %2012  ;;  %v2011_v43 = vpop.permute.xlu0 %2010  ;;  %v7356_v62 = vpack.c.bf16 %v2474_v45, %v2467_v10  ;;  %v2166_v10 = vld [vmem:[%s8127_s3 + $0x10] sm:$0xff] }
 0x2d3   : > { %v2017_v47 = vadd.f32 %v2013_v18, %v7339_v34  ;;  %v2016_v46 = vadd.f32 %v2011_v43, %v7341_v17  ;;  %v2165_v34 = vld [vmem:[%s8127_s3 + $0x8] sm:$0xff] }
 0x2d4   : > { %v2185_v21 = vsel %vm2180_vm3, %v2165_v34, 0 }
 0x2d5   : > { %v7393_v24 = vand.u32 4294901760, %v2185_v21 }
 0x2d6   : > { %v1685_v12 = vpop.permute.xlu1 %1684  ;;  %v1683_v58 = vpop.permute.xlu0 %1682 }
 0x2d7   : > { %v5880_v8 = vpop.eup %5879  ;;  %v1689_v59 = vadd.f32 %v1685_v12, %v1669_v25  ;;  %v1688_v6 = vadd.f32 %v1683_v58, %v1668_v5  ;;  %v2188_v58 = vsel %vm2180_vm3, %v2166_v10, 0 }
 0x2d8   : > { %v5882_v19 = vpop.eup %5881  ;;  %v4770_v30 = vadd.f32 -1.0, %v5880_v8 }
 0x2d9   : > { %v4769_v40 = vadd.f32 -1.0, %v5882_v19  ;;  %v7358_v32 = vadd.f32 %v1691_v57, %v1689_v59  ;;  %v7360_v14 = vadd.f32 %v1691_v57, %v1688_v6  ;;  %v2191_v59 = vsel %vm2180_vm3, %v2167_v33, 0  ;;  %v2172_v33 = vld [vmem:[%s8127_s3 + $0x40] sm:$0xff] }
 0x2da   : > { %v1247_v53 = vmul.f32 1.6732632, %v4770_v30  ;;  %v2069_v22 = vpop.permute.xlu1 %2068  ;;  %v2067_v44 = vpop.permute.xlu0 %2066 }
 0x2db   : > { %v1246_v16 = vmul.f32 1.6732632, %v4769_v40  ;;  %v1698_v26 = vmul.f32 1.442695, %v7358_v32  ;;  %v1696_v36 = vmul.f32 1.442695, %v7360_v14  ;;  %v2073_v28 = vadd.f32 %v2069_v22, %v2017_v47 }
 0x2dc   : > { %v1249_v23 = vsel %vm1239_vm6, %v1237_v63, %v1247_v53  ;;  %v2072_v11 = vadd.f32 %v2067_v44, %v2016_v46  ;;  %vm1695_vm8 = vcmp.gt.f32.partialorder %v7358_v32, 0.0  ;;  %v7401_v40 = vsub.f32 %v2185_v21, %v7393_v24 }
 0x2dd   : > { %v1251_v29 = vmul.f32 1.050701, %v1249_v23  ;;  %v1248_v0 = vsel %vm1238_vm7, %v1236_v49, %v1246_v16  ;;  %5883 = vpow2.f32 %v1698_v26  ;;  %v2147_v49 = vstv %s7362_s12 }
 0x2de   : > { %v1250_v39 = vmul.f32 1.050701, %v1248_v0  ;;  %5885 = vpow2.f32 %v1696_v36  ;;  %v2121_v15 = vpop.permute.xlu1 %2120  ;;  %v2119_v37 = vpop.permute.xlu0 %2118  ;;  %v7403_v53 = vand.u32 4294901760, %v2188_v58  ;;  %vm1694_vm9 = vcmp.gt.f32.partialorder %v7360_v14, 0.0  ;;  %v2168_v0 = vld [vmem:[%s8127_s3 + $0x20] sm:$0xff] }
 0x2df   : > { %v2239_v38 = vand.u32 4294901760, %v1251_v29  ;;  %v2125_v61 = vadd.f32 %v2121_v15, %v2073_v28  ;;  %v2124_v2 = vadd.f32 %v2119_v37, %v2072_v11  ;;  %v7407_v44 = vand.u32 4294901760, %v2191_v59  ;;  %v2170_v28 = vld [vmem:[%s8127_s3 + $0x30] sm:$0xff] }
 0x2e0   : > { %v2236_v54 = vand.u32 4294901760, %v1250_v39  ;;  %v2314_v36 = vand.u32 4294901760, %v7401_v40 }
 0x2e1   : > { %v2485_v3 = vsub.f32 %v1251_v29, %v2239_v38  ;;  %v7412_v29 = vsub.f32 %v2188_v58, %v7403_v53 }
 0x2e2   : > { %v7371_v63 = vpack.c.bf16 %v2239_v38, %v2236_v54  ;;  %v2478_v17 = vsub.f32 %v1250_v39, %v2236_v54  ;;  %v2141_v9 = vpop.permute.xlu1 %2140  ;;  %v2139_v60 = vpop.permute.xlu0 %2138  ;;  %v2169_v39 = vld [vmem:[%s8127_s3 + $0x28] sm:$0xff]  ;;  %v2194_v38 = vsel %vm2180_vm3, %v2168_v0, 0  ;;  %v7432_v54 = vsub.f32 %v7401_v40, %v2314_v36 }
 0x2e3   : > { %v2145_v4 = vadd.f32 %v2141_v9, %v2125_v61  ;;  %v2144_v1 = vadd.f32 %v2139_v60, %v2124_v2  ;;  %v2486_v31 = vand.u32 4294901760, %v2485_v3  ;;  %v2197_v2 = vsel %vm2180_vm3, %v2169_v39, 0  ;;  %v2171_v60 = vld [vmem:[%s8127_s3 + $0x38] sm:$0xff] }
 0x2e4   : > { %5533 = vmatprep.subr.bf16.mxu0 %v7371_v63  ;;  %v2479_v35 = vand.u32 4294901760, %v2478_v17  ;;  %v7376_v13 = vpack.c.bf16 %v2485_v3, %v2478_v17  ;;  %v7444_v21 = vand.u32 4294901760, %v2194_v38 }
 0x2e5   : > { %v7378_v55 = vadd.f32 %v2147_v49, %v2145_v4  ;;  %v7380_v56 = vadd.f32 %v2147_v49, %v2144_v1  ;;  %5535 = vmatpush3.bf16.msra.mxu0 %v7371_v63  ;;  %v2487_v50 = vsub.f32 %v2485_v3, %v2486_v31  ;;  %v2324_v3 = vand.u32 4294901760, %v7412_v29 }
 0x2e6   : > { %v2480_v45 = vsub.f32 %v2478_v17, %v2479_v35  ;;  %v7389_v48 = vpack.c.bf16 %v2486_v31, %v2479_v35  ;;  %v2200_v35 = vsel %vm2180_vm3, %v2170_v28, 0 }
 0x2e7   : > { %v5884_v18 = vpop.eup %5883  ;;  %v2154_v43 = vmul.f32 1.442695, %v7378_v55  ;;  %v2152_v52 = vmul.f32 1.442695, %v7380_v56  ;;  %v2488_v12 = vand.u32 4294901760, %v2487_v50  ;;  %vm2151_vm10 = vcmp.gt.f32.partialorder %v7378_v55, 0.0 }
 0x2e8   : > { %v5886_v25 = vpop.eup %5885  ;;  %v4809_v5 = vadd.f32 -1.0, %v5884_v18  ;;  %v2481_v57 = vand.u32 4294901760, %v2480_v45  ;;  %v7447_v45 = vand.u32 4294901760, %v2197_v2  ;;  %vm2150_vm11 = vcmp.gt.f32.partialorder %v7380_v56, 0.0 }
 0x2e9   : > { %v4808_v8 = vadd.f32 -1.0, %v5886_v25  ;;  %5887 = vpow2.f32 %v2154_v43  ;;  %v2203_v25 = vsel %vm2180_vm3, %v2171_v60, 0 }
 0x2ea   : > { %v1703_v6 = vmul.f32 1.6732632, %v4809_v5  ;;  %5889 = vpow2.f32 %v2152_v52  ;;  %v7397_v19 = vpack.c.bf16 %v2488_v12, %v2481_v57  ;;  %v7458_v12 = vand.u32 4294901760, %v2200_v35 }
 0x2eb   : > { %v1702_v30 = vmul.f32 1.6732632, %v4808_v8 }
 0x2ec   : > { %v1705_v22 = vsel %vm1695_vm8, %v7358_v32, %v1703_v6  ;;  %v7418_v32 = vsub.f32 %v2191_v59, %v7407_v44  ;;  %v7462_v59 = vsub.f32 %v2194_v38, %v7444_v21  ;;  %v2206_v6 = vsel %vm2180_vm3, %v2172_v33, 0 }
 0x2ed   : > { %v1707_v16 = vmul.f32 1.050701, %v1705_v22  ;;  %v1704_v26 = vsel %vm1694_vm9, %v7360_v14, %v1702_v30  ;;  %v2173_v30 = vld [vmem:[%s8127_s3 + $0x48] sm:$0xff]  ;;  %v7484_v39 = vand.u32 4294901760, %v2206_v6  ;;  %v2316_v38 = vand.u32 4294901760, %v7432_v54 }
 0x2ee   : > { %v1706_v23 = vmul.f32 1.050701, %v1704_v26  ;;  %v2334_v49 = vand.u32 4294901760, %v7418_v32 }
 0x2ef   : > { %v2245_v47 = vand.u32 4294901760, %v1707_v16  ;;  %v7510_v33 = vsub.f32 %v2206_v6, %v7484_v39 }
 0x2f0   : > { %v2242_v46 = vand.u32 4294901760, %v1706_v23  ;;  %v2335_v28 = vsub.f32 %v7418_v32, %v2334_v49 }
 0x2f1   : > { %v2499_v14 = vsub.f32 %v1707_v16, %v2245_v47 }
 0x2f2   : > { %v7423_v15 = vpack.c.bf16 %v2245_v47, %v2242_v46  ;;  %v2492_v37 = vsub.f32 %v1706_v23, %v2242_v46  ;;  %v7474_v23 = vsub.f32 %v2197_v2, %v7447_v45  ;;  %v2174_v47 = vld [vmem:[%s8127_s3 + $0x50] sm:$0xff]  ;;  %v7482_v46 = vsub.f32 %v2200_v35, %v7458_v12  ;;  %v2176_v35 = vld [vmem:[%s8127_s3 + $0x60] sm:$0xff] }
 0x2f3   : > { %v5888_v11 = vpop.eup %5887  ;;  %v2500_v61 = vand.u32 4294901760, %v2499_v14  ;;  %v2218_v6 = vsel %vm2180_vm3, %v2176_v35, 0 }
 0x2f4   : > { %v5890_v34 = vpop.eup %5889  ;;  %v4848_v17 = vadd.f32 -1.0, %v5888_v11  ;;  %5537 = vmatprep.subr.bf16.mxu0 %v7423_v15  ;;  %v2493_v9 = vand.u32 4294901760, %v2492_v37  ;;  %v7441_v4 = vpack.c.bf16 %v2499_v14, %v2492_v37  ;;  %v2344_v11 = vand.u32 4294901760, %v7462_v59 }
 0x2f5   : > { %v4847_v1 = vadd.f32 -1.0, %v5890_v34  ;;  %5539 = vmatpush3.bf16.msra.mxu0 %v7423_v15  ;;  %v2501_v31 = vsub.f32 %v2499_v14, %v2500_v61  ;;  %v2209_v14 = vsel %vm2180_vm3, %v2173_v30, 0  ;;  %v8134_v60 = vand.u32 4294901760, %v7474_v23  ;;  %v2177_v30 = vld [vmem:[%s8127_s3 + $0x68] sm:$0xff] }
 0x2f6   : > { %v2159_v50 = vmul.f32 1.6732632, %v4848_v17  ;;  %v2494_v10 = vsub.f32 %v2492_v37, %v2493_v9  ;;  %v7452_v18 = vpack.c.bf16 %v2500_v61, %v2493_v9  ;;  %v2212_v17 = vsel %vm2180_vm3, %v2174_v47, 0  ;;  %v2175_v9 = vld [vmem:[%s8127_s3 + $0x58] sm:$0xff] }
 0x2f7   : > { %v2158_v43 = vmul.f32 1.6732632, %v4847_v1  ;;  %v2502_v52 = vand.u32 4294901760, %v2501_v31  ;;  %v7502_v31 = vand.u32 4294901760, %v2209_v14 }
 0x2f8   : > { %v2161_v5 = vsel %vm2151_vm10, %v7378_v55, %v2159_v50  ;;  %v2495_v57 = vand.u32 4294901760, %v2494_v10  ;;  %v2325_v55 = vsub.f32 %v7412_v29, %v2324_v3  ;;  %v8133_v10 = vand.u32 4294901760, %v7482_v46 }
 0x2f9   : > { %v2163_v58 = vmul.f32 1.050701, %v2161_v5  ;;  %v2160_v8 = vsel %vm2150_vm11, %v7380_v56, %v2158_v43  ;;  %v7476_v56 = vand.u32 4294901760, %v2203_v25  ;;  %v7518_v5 = vand.u32 4294901760, %v2212_v17 }
 0x2fa   : > { %v2162_v22 = vmul.f32 1.050701, %v2160_v8  ;;  %v7471_v16 = vpack.c.bf16 %v2502_v52, %v2495_v57  ;;  %v2326_v34 = vand.u32 4294901760, %v2325_v55  ;;  %v2345_v52 = vsub.f32 %v7462_v59, %v2344_v11 }
 0x2fb   : > { %v2251_v26 = vand.u32 4294901760, %v2163_v58  ;;  %v7500_v54 = vsub.f32 %v2203_v25, %v7476_v56  ;;  %v2215_v57 = vsel %vm2180_vm3, %v2175_v9, 0  ;;  %v2355_v55 = vsub.f32 %v7474_v23, %v8134_v60 }
 0x2fc   : > { %v2248_v0 = vand.u32 4294901760, %v2162_v22  ;;  %v8135_v9 = vand.u32 4294901760, %v7510_v33  ;;  %v2346_v35 = vand.u32 4294901760, %v2345_v52 }
 0x2fd   : > { %v2513_v37 = vsub.f32 %v2163_v58, %v2251_v26  ;;  %v2336_v58 = vand.u32 4294901760, %v2335_v28  ;;  %v2374_v47 = vand.u32 4294901760, %v7500_v54  ;;  %v2356_v60 = vand.u32 4294901760, %v2355_v55 }
 0x2fe   : > { %v7492_v61 = vpack.c.bf16 %v2251_v26, %v2248_v0  ;;  %v2506_v2 = vsub.f32 %v2162_v22, %v2248_v0  ;;  %v7533_v0 = vsub.f32 %v2209_v14, %v7502_v31  ;;  %v7546_v14 = vsub.f32 %v2212_v17, %v7518_v5 }
 0x2ff   : > { %v2514_v1 = vand.u32 4294901760, %v2513_v37  ;;  %v2385_v52 = vsub.f32 %v7510_v33, %v8135_v9 }
 0x300   : > { %5541 = vmatprep.subr.bf16.mxu0 %v7492_v61  ;;  %v2507_v50 = vand.u32 4294901760, %v2506_v2  ;;  %v7512_v43 = vpack.c.bf16 %v2513_v37, %v2506_v2  ;;  %v8137_v55 = vand.u32 4294901760, %v7546_v14 }
 0x301   : > { %5543 = vmatpush3.bf16.msra.mxu0 %v7492_v61  ;;  %v2515_v25 = vsub.f32 %v2513_v37, %v2514_v1  ;;  %v2178_v37 = vld [vmem:[%s8127_s3 + $0x70] sm:$0xff] }
 0x302   : > { %5545 = vmatprep.subr.bf16.mxu0 %v7356_v62  ;;  %v2508_v8 = vsub.f32 %v2506_v2, %v2507_v50  ;;  %v7526_v22 = vpack.c.bf16 %v2514_v1, %v2507_v50  ;;  %v2365_v2 = vsub.f32 %v7482_v46, %v8133_v10  ;;  %v7542_v1 = vand.u32 4294901760, %v2215_v57  ;;  %v2179_v10 = vld [vmem:[%s8127_s3 + $0x78] sm:$0xff] }
 0x303   : > { %v2516_v26 = vand.u32 4294901760, %v2515_v25  ;;  %v7548_v50 = vand.u32 4294901760, %v2218_v6 }
 0x304   : > { %5137 = vmatmul.mubr.f32.vlgmr.msra.gmra.mrb[0].mxu0 %v2316_v38  ;;  %v2509_v28 = vand.u32 4294901760, %v2508_v8  ;;  %v2221_v38 = vsel %vm2180_vm3, %v2177_v30, 0  ;;  %v2224_v8 = vsel %vm2180_vm3, %v2178_v37, 0  ;;  %v2366_v17 = vand.u32 4294901760, %v2365_v2 }
 0x305   : > { %5547 = vmatpush3.bf16.msra.mxu0 %v7356_v62  ;;  %5139 = vmatprep.mubr.f32.mxu0 %v2326_v34  ;;  %v2375_v62 = vsub.f32 %v7500_v54, %v2374_v47  ;;  %v8136_v34 = vand.u32 4294901760, %v7533_v0  ;;  %v7564_v30 = vsub.f32 %v2215_v57, %v7542_v1  ;;  %v7571_v37 = vsub.f32 %v2218_v6, %v7548_v50 }
 0x306   : > { %5549 = vmatprep.subr.bf16.mxu0 %v7397_v19  ;;  %v5556_v25 = vpack.c.bf16 %v2516_v26, %v2509_v28  ;;  %v7566_v26 = vand.u32 4294901760, %v2221_v38  ;;  %v7573_v28 = vand.u32 4294901760, %v2224_v8  ;;  %v2386_v6 = vand.u32 4294901760, %v2385_v52 }
 0x307   : > { %v2376_v2 = vand.u32 4294901760, %v2375_v62  ;;  %v2395_v57 = vsub.f32 %v7533_v0, %v8136_v34 }
 0x308   : > { %5140 = vmatmul.mubr.f32.gmra.mrb[2].mxu0 %v2336_v58  ;;  %v2227_v58 = vsel %vm2180_vm3, %v2179_v10, 0  ;;  %v2405_v10 = vsub.f32 %v7546_v14, %v8137_v55  ;;  %v7592_v62 = vsub.f32 %v2224_v8, %v7573_v28 }
 0x309   : > { %5551 = vmatpush3.bf16.msra.mxu0 %v7397_v19  ;;  %5142 = vmatprep.mubr.f32.mxu0 %v2346_v35  ;;  %v2414_v19 = vand.u32 4294901760, %v7564_v30  ;;  %v7582_v35 = vsub.f32 %v2221_v38, %v7566_v26  ;;  %v7584_v9 = vand.u32 4294901760, %v2227_v58  ;;  %v2396_v34 = vand.u32 4294901760, %v2395_v57 }
 0x30a   : > { %5553 = vmatprep.subr.bf16.mxu0 %v7471_v16  ;;  %v2406_v52 = vand.u32 4294901760, %v2405_v10  ;;  %v2444_v55 = vand.u32 4294901760, %v7592_v62 }
 0x30b   : > { %v2415_v38 = vsub.f32 %v7564_v30, %v2414_v19 }
 0x30c   : > { %5143 = vmatmul.mubr.f32.gmra.mrb[4].mxu0 %v2356_v60  ;;  %v8138_v60 = vand.u32 4294901760, %v7571_v37 }
 0x30d   : > { %5555 = vmatpush3.bf16.msra.mxu0 %v7471_v16  ;;  %5145 = vmatprep.mubr.f32.mxu0 %v2366_v17  ;;  %v2434_v16 = vand.u32 4294901760, %v7582_v35  ;;  %v7599_v17 = vsub.f32 %v2227_v58, %v7584_v9 }
 0x30e   : > { %5557 = vmatprep.subr.bf16.mxu0 %v5556_v25  ;;  %v2425_v8 = vsub.f32 %v7571_v37, %v8138_v60 }
 0x30f   : > { %v2435_v57 = vsub.f32 %v7582_v35, %v2434_v16  ;;  %v2454_v58 = vand.u32 4294901760, %v7599_v17 }
 0x310   : > { %5146 = vmatmul.mubr.f32.gmra.mrb[6].mxu0 %v2376_v2  ;;  %v2416_v2 = vand.u32 4294901760, %v2415_v38 }
 0x311   : > { %5559 = vmatpush3.bf16.msra.mxu0 %v5556_v25  ;;  %5148 = vmatprep.mubr.f32.mxu0 %v2386_v6  ;;  %v2426_v25 = vand.u32 4294901760, %v2425_v8  ;;  %v2445_v6 = vsub.f32 %v7592_v62, %v2444_v55  ;;  %v2436_v10 = vand.u32 4294901760, %v2435_v57  ;;  %v2455_v60 = vsub.f32 %v7599_v17, %v2454_v58 }
 0x312   : > { %5561 = vmatprep.subr.bf16.mxu0 %v7348_v20 }
 0x313   : > { %v2456_v38 = vand.u32 4294901760, %v2455_v60 }
 0x314   : > { %5149 = vmatmul.mubr.f32.gmra.mrb[8].mxu0 %v2396_v34  ;;  %v2446_v34 = vand.u32 4294901760, %v2445_v6 }
 0x315   : > { %5151 = vmatprep.mubr.f32.mxu0 %v2406_v52 }
 0x318   : > { %5152 = vmatmul.mubr.f32.gmra.mrb[10].mxu0 %v2416_v2 }
 0x319   : > { %5154 = vmatprep.mubr.f32.mxu0 %v2426_v25 }
 0x31c   : > { %5155 = vmatmul.mubr.f32.gmra.mrb[12].mxu0 %v2436_v10 }
 0x31d   : > { %5157 = vmatprep.mubr.f32.mxu0 %v2446_v34 }
 0x320   : > { %5158 = vmatmul.mubr.f32.gmra.mrb[14].mxu0 %v2456_v38 }
 0x321   : > { %5176 = vmatprep.mubr.f32.mxu0 %v7300_v51 }
 0x324   : > { %5177 = vmatmul.mubr.f32.vlgmr.msra.gmra.mrb[0].mxu0 %v7393_v24 }
 0x325   : > { %5563 = vmatpush3.bf16.msra.mxu0 %v7348_v20  ;;  %5179 = vmatprep.mubr.f32.mxu0 %v7403_v53  ;;  %v8214_v20 = vand.u32 4294901760, %v7510_v33 }
 0x326   : > { %5565 = vmatprep.subr.bf16.mxu0 %v7376_v13 }
 0x328   : > { %5180 = vmatmul.mubr.f32.gmra.mrb[2].mxu0 %v7407_v44 }
 0x329   : > { %5567 = vmatpush3.bf16.msra.mxu0 %v7376_v13  ;;  %5182 = vmatprep.mubr.f32.mxu0 %v7444_v21  ;;  %v8216_v13 = vand.u32 4294901760, %v7546_v14 }
 0x32a   : > { %5569 = vmatprep.subr.bf16.mxu0 %v7441_v4 }
 0x32c   : > { %5183 = vmatmul.mubr.f32.gmra.mrb[4].mxu0 %v7447_v45 }
 0x32d   : > { %5571 = vmatpush3.bf16.msra.mxu0 %v7441_v4  ;;  %5185 = vmatprep.mubr.f32.mxu0 %v7458_v12 }
 0x32e   : > { %5573 = vmatprep.subr.bf16.mxu0 %v7512_v43 }
 0x330   : > { %5186 = vmatmul.mubr.f32.gmra.mrb[6].mxu0 %v7476_v56 }
 0x331   : > { %5575 = vmatpush3.bf16.msra.mxu0 %v7512_v43  ;;  %5188 = vmatprep.mubr.f32.mxu0 %v7484_v39 }
 0x332   : > { %5577 = vmatprep.subr.bf16.mxu0 %v7344_v41 }
 0x334   : > { %5189 = vmatmul.mubr.f32.gmra.mrb[8].mxu0 %v7502_v31 }
 0x335   : > { %5191 = vmatprep.mubr.f32.mxu0 %v7518_v5 }
 0x338   : > { %5192 = vmatmul.mubr.f32.gmra.mrb[10].mxu0 %v7542_v1 }
 0x339   : > { %5194 = vmatprep.mubr.f32.mxu0 %v7548_v50 }
 0x33c   : > { %5195 = vmatmul.mubr.f32.gmra.mrb[12].mxu0 %v7566_v26 }
 0x33d   : > { %5197 = vmatprep.mubr.f32.mxu0 %v7573_v28 }
 0x340   : > { %5198 = vmatmul.mubr.f32.gmra.mrb[14].mxu0 %v7584_v9 }
 0x341   : > { %5216 = vmatprep.mubr.f32.mxu0 %v7303_v7  ;;  %v8212_v7 = vand.u32 4294901760, %v7474_v23 }
 0x344   : > { %5217 = vmatmul.mubr.f32.vlgmr.msra.gmra.mrb[0].mxu0 %v7401_v40 }
 0x345   : > { %5579 = vmatpush3.bf16.msra.mxu0 %v7344_v41  ;;  %5219 = vmatprep.mubr.f32.mxu0 %v7412_v29 }
 0x346   : > { %5581 = vmatprep.subr.bf16.mxu0 %v7371_v63 }
 0x348   : > { %5220 = vmatmul.mubr.f32.gmra.mrb[2].mxu0 %v7418_v32 }
 0x349   : > { %5583 = vmatpush3.bf16.msra.mxu0 %v7371_v63  ;;  %5222 = vmatprep.mubr.f32.mxu0 %v7462_v59 }
 0x34a   : > { %5585 = vmatprep.subr.bf16.mxu0 %v7423_v15 }
 0x34c   : > { %5223 = vmatmul.mubr.f32.gmra.mrb[4].mxu0 %v7474_v23 }
 0x34d   : > { %5587 = vmatpush3.bf16.msra.mxu0 %v7423_v15  ;;  %5225 = vmatprep.mubr.f32.mxu0 %v7482_v46 }
 0x34e   : > { %5589 = vmatprep.subr.bf16.mxu0 %v7492_v61 }
 0x350   : > { %5226 = vmatmul.mubr.f32.gmra.mrb[6].mxu0 %v7500_v54 }
 0x351   : > { %5591 = vmatpush3.bf16.msra.mxu0 %v7492_v61  ;;  %5228 = vmatprep.mubr.f32.mxu0 %v7510_v33 }
 0x352   : > { %5593 = vmatprep.subr.bf16.mxu0 %v7350_v27 }
 0x354   : > { %5229 = vmatmul.mubr.f32.gmra.mrb[8].mxu0 %v7533_v0 }
 0x355   : > { %5231 = vmatprep.mubr.f32.mxu0 %v7546_v14 }
 0x358   : > { %5232 = vmatmul.mubr.f32.gmra.mrb[10].mxu0 %v7564_v30 }
 0x359   : > { %5234 = vmatprep.mubr.f32.mxu0 %v7571_v37 }
 0x35c   : > { %5235 = vmatmul.mubr.f32.gmra.mrb[12].mxu0 %v7582_v35 }
 0x35d   : > { %5237 = vmatprep.mubr.f32.mxu0 %v7592_v62 }
 0x360   : > { %5238 = vmatmul.mubr.f32.gmra.mrb[14].mxu0 %v7599_v17 }
 0x361   : > { %5256 = vmatprep.mubr.f32.mxu0 %v2304_v42  ;;  %v8213_v42 = vand.u32 4294901760, %v7482_v46 }
 0x364   : > { %5257 = vmatmul.mubr.f32.vlgmr.msra.gmra.mrb[0].mxu0 %v2314_v36 }
 0x365   : > { %5595 = vmatpush3.bf16.msra.mxu0 %v7350_v27  ;;  %5259 = vmatprep.mubr.f32.mxu0 %v2324_v3  ;;  %v8215_v27 = vand.u32 4294901760, %v7533_v0 }
 0x366   : > { %5597 = vmatprep.subr.bf16.mxu0 %v7389_v48 }
 0x368   : > { %5260 = vmatmul.mubr.f32.gmra.mrb[2].mxu0 %v2334_v49 }
 0x369   : > { %5599 = vmatpush3.bf16.msra.mxu0 %v7389_v48  ;;  %5262 = vmatprep.mubr.f32.mxu0 %v2344_v11  ;;  %v8217_v48 = vand.u32 4294901760, %v7571_v37 }
 0x36a   : > { %5601 = vmatprep.subr.bf16.mxu0 %v7452_v18 }
 0x36c   : > { %5263 = vmatmul.mubr.f32.gmra.mrb[4].mxu0 %v8212_v7 }
 0x36d   : > { %5603 = vmatpush3.bf16.msra.mxu0 %v7452_v18  ;;  %5265 = vmatprep.mubr.f32.mxu0 %v8213_v42 }
 0x36e   : > { %5605 = vmatprep.subr.bf16.mxu0 %v7526_v22 }
 0x370   : > { %5266 = vmatmul.mubr.f32.gmra.mrb[6].mxu0 %v2374_v47 }
 0x371   : > { %5607 = vmatpush3.bf16.msra.mxu0 %v7526_v22  ;;  %5268 = vmatprep.mubr.f32.mxu0 %v8214_v20 }
 0x372   : > { %5609 = vmatprep.subr.bf16.mxu0 %v7344_v41 }
 0x374   : > { %5269 = vmatmul.mubr.f32.gmra.mrb[8].mxu0 %v8215_v27 }
 0x375   : > { %5271 = vmatprep.mubr.f32.mxu0 %v8216_v13 }
 0x378   : > { %5272 = vmatmul.mubr.f32.gmra.mrb[10].mxu0 %v2414_v19 }
 0x379   : > { %5274 = vmatprep.mubr.f32.mxu0 %v8217_v48 }
 0x37c   : > { %5275 = vmatmul.mubr.f32.gmra.mrb[12].mxu0 %v2434_v16 }
 0x37d   : > { %5277 = vmatprep.mubr.f32.mxu0 %v2444_v55 }
 0x380   : > { %5278 = vmatmul.mubr.f32.gmra.mrb[14].mxu0 %v2454_v58 }
 0x381   : > { %5296 = vmatprep.mubr.f32.mxu0 %v7300_v51 }
 0x384   : > { %5297 = vmatmul.mubr.f32.vlgmr.msra.gmra.mrb[0].mxu0 %v7393_v24 }
 0x385   : > { %5611 = vmatpush3.bf16.msra.mxu0 %v7344_v41  ;;  %5299 = vmatprep.mubr.f32.mxu0 %v7403_v53  ;;  %v3412_v41 = vld [vmem:[%s8128_s4 + $0x8] sm:$0xff] }
 0x386   : > { %5613 = vmatprep.subr.bf16.mxu0 %v7371_v63 }
 0x388   : > { %5300 = vmatmul.mubr.f32.gmra.mrb[2].mxu0 %v7407_v44 }
 0x389   : > { %5615 = vmatpush3.bf16.msra.mxu0 %v7371_v63  ;;  %5302 = vmatprep.mubr.f32.mxu0 %v7444_v21 }
 0x38a   : > { %5617 = vmatprep.subr.bf16.mxu0 %v7423_v15 }
 0x38c   : > { %5303 = vmatmul.mubr.f32.gmra.mrb[4].mxu0 %v7447_v45 }
 0x38d   : > { %5619 = vmatpush3.bf16.msra.mxu0 %v7423_v15  ;;  %5305 = vmatprep.mubr.f32.mxu0 %v7458_v12 }
 0x38e   : > { %5621 = vmatprep.subr.bf16.mxu0 %v7492_v61 }
 0x390   : > { %5306 = vmatmul.mubr.f32.gmra.mrb[6].mxu0 %v7476_v56 }
 0x391   : > { %5623 = vmatpush3.bf16.msra.mxu0 %v7492_v61  ;;  %5308 = vmatprep.mubr.f32.mxu0 %v7484_v39 }
 0x394   : > { %5309 = vmatmul.mubr.f32.gmra.mrb[8].mxu0 %v7502_v31 }
 0x395   : > { %5311 = vmatprep.mubr.f32.mxu0 %v7518_v5 }
 0x398   : > { %5312 = vmatmul.mubr.f32.gmra.mrb[10].mxu0 %v7542_v1 }
 0x399   : > { %5314 = vmatprep.mubr.f32.mxu0 %v7548_v50 }
 0x39c   : > { %5315 = vmatmul.mubr.f32.gmra.mrb[12].mxu0 %v7566_v26 }
 0x39d   : > { %5317 = vmatprep.mubr.f32.mxu0 %v7573_v28 }
 0x3a0   : > { %5318 = vmatmul.mubr.f32.gmra.mrb[14].mxu0 %v7584_v9 }
 0x3a1   : > { %5336 = vmatprep.mubr.f32.mxu0 %v7300_v51  ;;  %v3411_v51 = vld [vmem:[%s8128_s4] sm:$0xff] }
 0x3a2   : > { %v3463_v63 = vand.u32 4294901760, %v3411_v51 }
 0x3a4   : > { %5337 = vmatmul.mubr.f32.vlgmr.msra.gmra.mrb[0].mxu0 %v7393_v24  ;;  %v3466_v24 = vand.u32 4294901760, %v3412_v41 }
 0x3a5   : > { %5339 = vmatprep.mubr.f32.mxu0 %v7403_v53  ;;  %v7751_v53 = vsub.f32 %v3411_v51, %v3463_v63 }
 0x3a6   : > { %v7749_v40 = vpack.c.bf16 %v3466_v24, %v3463_v63 }
 0x3a7   : > { %v3692_v36 = vand.u32 4294901760, %v7751_v53 }
 0x3a8   : > { %5340 = vmatmul.mubr.f32.gmra.mrb[2].mxu0 %v7407_v44  ;;  %v7753_v44 = vsub.f32 %v3412_v41, %v3466_v24  ;;  %5625 = vmatprep.subr.bf16.mxu1 %v7749_v40 }
 0x3a9   : > { %5342 = vmatprep.mubr.f32.mxu0 %v7444_v21  ;;  %5627 = vmatpush3.bf16.msra.mxu1 %v7749_v40  ;;  %v3693_v32 = vsub.f32 %v7751_v53, %v3692_v36 }
 0x3aa   : > { %v3699_v29 = vand.u32 4294901760, %v7753_v44  ;;  %v7767_v21 = vpack.c.bf16 %v7753_v44, %v7751_v53 }
 0x3ab   : > { %v3694_v3 = vand.u32 4294901760, %v3693_v32 }
 0x3ac   : > { %5343 = vmatmul.mubr.f32.gmra.mrb[4].mxu0 %v7447_v45  ;;  %v3700_v15 = vsub.f32 %v7753_v44, %v3699_v29 }
 0x3ad   : > { %5345 = vmatprep.mubr.f32.mxu0 %v7458_v12 }
 0x3ae   : > { %v3701_v49 = vand.u32 4294901760, %v3700_v15 }
 0x3b0   : > { %5346 = vmatmul.mubr.f32.gmra.mrb[6].mxu0 %v7476_v56  ;;  %v5628_v4 = vpack.c.bf16 %v3701_v49, %v3694_v3 }
 0x3b1   : > { %5348 = vmatprep.mubr.f32.mxu0 %v7484_v39 }
 0x3b2   : > { %5629 = vmatprep.subr.bf16.mxu1 %v5628_v4 }
 0x3b4   : > { %5349 = vmatmul.mubr.f32.gmra.mrb[8].mxu0 %v7502_v31 }
 0x3b5   : > { %5351 = vmatprep.mubr.f32.mxu0 %v7518_v5 }
 0x3b8   : > { %5352 = vmatmul.mubr.f32.gmra.mrb[10].mxu0 %v7542_v1 }
 0x3b9   : > { %5354 = vmatprep.mubr.f32.mxu0 %v7548_v50 }
 0x3bc   : > { %5355 = vmatmul.mubr.f32.gmra.mrb[12].mxu0 %v7566_v26 }
 0x3bd   : > { %5357 = vmatprep.mubr.f32.mxu0 %v7573_v28 }
 0x3c0   : > { %5358 = vmatmul.mubr.f32.gmra.mrb[14].mxu0 %v7584_v9 }
 0x477   : > { %v5338_v45 = vpop.f32.mrb[0].mxu0 }
 0x478   : > { %v3418_v18 = vsel %vm3413_vm12, %v5338_v45, 0  ;;  %v3317_v12 = vpop.f32.mrb[1].mxu0 }
 0x479   : > { %v7770_v59 = vand.u32 4294901760, %v3418_v18  ;;  %v3415_v23 = vsel %vm3413_vm12, %v3317_v12, 0 }
 0x47a   : > { %v7773_v56 = vand.u32 4294901760, %v3415_v23 }
 0x47b   : > { %v7776_v46 = vsub.f32 %v3418_v18, %v7770_v59  ;;  %v5341_v39 = vpop.f32.mrb[2].mxu0 }
 0x47c   : > { %v7779_v11 = vsub.f32 %v3415_v23, %v7773_v56  ;;  %v3424_v61 = vsel %vm3413_vm12, %v5341_v39, 0  ;;  %v3329_v54 = vpop.f32.mrb[3].mxu0 }
 0x47d   : > { %v3541_v31 = vand.u32 4294901760, %v7776_v46  ;;  %v7783_v33 = vand.u32 4294901760, %v3424_v61  ;;  %v3421_v43 = vsel %vm3413_vm12, %v3329_v54, 0 }
 0x47e   : > { %v7786_v5 = vand.u32 4294901760, %v3421_v43  ;;  %v3531_v22 = vand.u32 4294901760, %v7779_v11 }
 0x47f   : > { %v7790_v47 = vsub.f32 %v3424_v61, %v7783_v33  ;;  %v5344_v0 = vpop.f32.mrb[4].mxu0  ;;  %v3542_v9 = vsub.f32 %v7776_v46, %v3541_v31 }
 0x480   : > { %v7796_v1 = vsub.f32 %v3421_v43, %v7786_v5  ;;  %v3430_v14 = vsel %vm3413_vm12, %v5344_v0, 0  ;;  %v3341_v50 = vpop.f32.mrb[5].mxu0  ;;  %v3532_v30 = vsub.f32 %v7779_v11, %v3531_v22 }
 0x481   : > { %v3561_v26 = vand.u32 4294901760, %v7790_v47  ;;  %v7803_v55 = vand.u32 4294901760, %v3430_v14  ;;  %v3427_v37 = vsel %vm3413_vm12, %v3341_v50, 0  ;;  %v3543_v16 = vand.u32 4294901760, %v3542_v9 }
 0x482   : > { %v3551_v28 = vand.u32 4294901760, %v7796_v1  ;;  %v7807_v19 = vand.u32 4294901760, %v3427_v37  ;;  %v3533_v35 = vand.u32 4294901760, %v3532_v30 }
 0x483   : > { %v7810_v60 = vsub.f32 %v3430_v14, %v7803_v55  ;;  %v5347_v62 = vpop.f32.mrb[6].mxu0  ;;  %v3562_v17 = vsub.f32 %v7790_v47, %v3561_v26 }
 0x484   : > { %v7816_v52 = vsub.f32 %v3427_v37, %v7807_v19  ;;  %v3436_v8 = vsel %vm3413_vm12, %v5347_v62, 0  ;;  %v3353_v2 = vpop.f32.mrb[7].mxu0  ;;  %5364 = vmatprep.mubr.f32.mxu1 %v3533_v35  ;;  %v3552_v57 = vsub.f32 %v7796_v1, %v3551_v28 }
 0x485   : > { %v3581_v58 = vand.u32 4294901760, %v7810_v60  ;;  %v7823_v25 = vand.u32 4294901760, %v3436_v8  ;;  %v3433_v6 = vsel %vm3413_vm12, %v3353_v2, 0  ;;  %5365 = vmatmul.mubr.f32.vlgmr.msra.gmra.mrb[0].mxu1 %v3543_v16  ;;  %v3563_v20 = vand.u32 4294901760, %v3562_v17 }
 0x486   : > { %v3571_v10 = vand.u32 4294901760, %v7816_v52  ;;  %v7827_v34 = vand.u32 4294901760, %v3433_v6  ;;  %5631 = vmatpush3.bf16.msra.mxu1 %v5628_v4  ;;  %v3553_v38 = vand.u32 4294901760, %v3552_v57 }
 0x487   : > { %v7830_v7 = vsub.f32 %v3436_v8, %v7823_v25  ;;  %v5350_v42 = vpop.f32.mrb[8].mxu0  ;;  %v3582_v27 = vsub.f32 %v7810_v60, %v3581_v58  ;;  %5633 = vmatprep.subr.bf16.mxu1 %v7767_v21 }
 0x488   : > { %v7837_v13 = vsub.f32 %v3433_v6, %v7827_v34  ;;  %v3442_v48 = vsel %vm3413_vm12, %v5350_v42, 0  ;;  %v3365_v51 = vpop.f32.mrb[9].mxu0  ;;  %5367 = vmatprep.mubr.f32.mxu1 %v3553_v38  ;;  %v3572_v41 = vsub.f32 %v7816_v52, %v3571_v10 }
 0x489   : > { %v3601_v63 = vand.u32 4294901760, %v7830_v7  ;;  %v7844_v24 = vand.u32 4294901760, %v3442_v48  ;;  %v3439_v32 = vsel %vm3413_vm12, %v3365_v51, 0  ;;  %5368 = vmatmul.mubr.f32.gmra.mrb[2].mxu1 %v3563_v20  ;;  %v3583_v18 = vand.u32 4294901760, %v3582_v27 }
 0x48a   : > { %v3591_v15 = vand.u32 4294901760, %v7837_v13  ;;  %v7848_v3 = vand.u32 4294901760, %v3439_v32  ;;  %v3573_v49 = vand.u32 4294901760, %v3572_v41 }
 0x48b   : > { %v7851_v4 = vsub.f32 %v3442_v48, %v7844_v24  ;;  %v5353_v45 = vpop.f32.mrb[10].mxu0  ;;  %v3602_v12 = vsub.f32 %v7830_v7, %v3601_v63 }
 0x48c   : > { %v7857_v23 = vsub.f32 %v3439_v32, %v7848_v3  ;;  %v3448_v39 = vsel %vm3413_vm12, %v5353_v45, 0  ;;  %v3377_v61 = vpop.f32.mrb[11].mxu0  ;;  %5370 = vmatprep.mubr.f32.mxu1 %v3573_v49  ;;  %v3592_v54 = vsub.f32 %v7837_v13, %v3591_v15 }
 0x48d   : > { %v3621_v43 = vand.u32 4294901760, %v7851_v4  ;;  %v7864_v0 = vand.u32 4294901760, %v3448_v39  ;;  %v3445_v9 = vsel %vm3413_vm12, %v3377_v61, 0  ;;  %5371 = vmatmul.mubr.f32.gmra.mrb[4].mxu1 %v3583_v18  ;;  %v3603_v62 = vand.u32 4294901760, %v3602_v12 }
 0x48e   : > { %v3611_v14 = vand.u32 4294901760, %v7857_v23  ;;  %v7868_v50 = vand.u32 4294901760, %v3445_v9  ;;  %v3593_v30 = vand.u32 4294901760, %v3592_v54 }
 0x48f   : > { %v7871_v37 = vsub.f32 %v3448_v39, %v7864_v0  ;;  %v5356_v35 = vpop.f32.mrb[12].mxu0  ;;  %v3622_v16 = vsub.f32 %v7851_v4, %v3621_v43 }
 0x490   : > { %v7877_v17 = vsub.f32 %v3445_v9, %v7868_v50  ;;  %v3454_v8 = vsel %vm3413_vm12, %v5356_v35, 0  ;;  %v3389_v2 = vpop.f32.mrb[13].mxu0  ;;  %5373 = vmatprep.mubr.f32.mxu1 %v3593_v30  ;;  %v3612_v57 = vsub.f32 %v7857_v23, %v3611_v14 }
 0x491   : > { %v3641_v6 = vand.u32 4294901760, %v7871_v37  ;;  %v7884_v38 = vand.u32 4294901760, %v3454_v8  ;;  %v3451_v42 = vsel %vm3413_vm12, %v3389_v2, 0  ;;  %5374 = vmatmul.mubr.f32.gmra.mrb[6].mxu1 %v3603_v62  ;;  %v3623_v32 = vand.u32 4294901760, %v3622_v16 }
 0x492   : > { %v3631_v20 = vand.u32 4294901760, %v7877_v17  ;;  %v7888_v27 = vand.u32 4294901760, %v3451_v42  ;;  %v3613_v48 = vand.u32 4294901760, %v3612_v57 }
 0x493   : > { %v7891_v51 = vsub.f32 %v3454_v8, %v7884_v38  ;;  %v5359_v41 = vpop.f32.mrb[14].mxu0  ;;  %v3642_v49 = vsub.f32 %v7871_v37, %v3641_v6 }
 0x494   : > { %v7897_v45 = vsub.f32 %v3451_v42, %v7888_v27  ;;  %v3460_v18 = vsel %vm3413_vm12, %v5359_v41, 0  ;;  %v3401_v12 = vpop.f32.mrb[15].mxu0  ;;  %5376 = vmatprep.mubr.f32.mxu1 %v3613_v48  ;;  %v3632_v39 = vsub.f32 %v7877_v17, %v3631_v20 }
 0x495   : > { %v3661_v61 = vand.u32 4294901760, %v7891_v51  ;;  %v7904_v54 = vand.u32 4294901760, %v3460_v18  ;;  %v3457_v9 = vsel %vm3413_vm12, %v3401_v12, 0  ;;  %5377 = vmatmul.mubr.f32.gmra.mrb[8].mxu1 %v3623_v32  ;;  %v3643_v8 = vand.u32 4294901760, %v3642_v49 }
 0x496   : > { %v3651_v30 = vand.u32 4294901760, %v7897_v45  ;;  %v7908_v35 = vand.u32 4294901760, %v3457_v9  ;;  %v3633_v62 = vand.u32 4294901760, %v3632_v39 }
 0x497   : > { %v7911_v16 = vsub.f32 %v3460_v18, %v7904_v54  ;;  %v3662_v2 = vsub.f32 %v7891_v51, %v3661_v61 }
 0x498   : > { %v7917_v57 = vsub.f32 %v3457_v9, %v7908_v35  ;;  %5379 = vmatprep.mubr.f32.mxu1 %v3633_v62  ;;  %v3652_v42 = vsub.f32 %v7897_v45, %v3651_v30 }
 0x499   : > { %v3681_v48 = vand.u32 4294901760, %v7911_v16  ;;  %5380 = vmatmul.mubr.f32.gmra.mrb[10].mxu1 %v3643_v8  ;;  %v3663_v18 = vand.u32 4294901760, %v3662_v2 }
 0x49a   : > { %v3671_v41 = vand.u32 4294901760, %v7917_v57  ;;  %v3653_v32 = vand.u32 4294901760, %v3652_v42 }
 0x49b   : > { %v3682_v49 = vsub.f32 %v7911_v16, %v3681_v48 }
 0x49c   : > { %5382 = vmatprep.mubr.f32.mxu1 %v3653_v32  ;;  %v3672_v12 = vsub.f32 %v7917_v57, %v3671_v41 }
 0x49d   : > { %5383 = vmatmul.mubr.f32.gmra.mrb[12].mxu1 %v3663_v18  ;;  %v3683_v9 = vand.u32 4294901760, %v3682_v49 }
 0x49e   : > { %v3673_v39 = vand.u32 4294901760, %v3672_v12 }
 0x4a0   : > { %5385 = vmatprep.mubr.f32.mxu1 %v3673_v39 }
 0x4a1   : > { %5386 = vmatmul.mubr.f32.gmra.mrb[14].mxu1 %v3683_v9 }
 0x4a2   : > { %5392 = vmatprep.mubr.f32.mxu1 %v7773_v56 }
 0x4a5   : > { %5393 = vmatmul.mubr.f32.vlgmr.msra.gmra.mrb[0].mxu1 %v7770_v59 }
 0x4a6   : > { %5395 = vmatprep.mubr.f32.mxu1 %v7786_v5  ;;  %5635 = vmatpush3.bf16.msra.mxu1 %v7767_v21  ;;  %v5640_v21 = vpack.c.bf16 %v3699_v29, %v3692_v36 }
 0x4a7   : > { %5637 = vmatprep.subr.bf16.mxu1 %v7749_v40 }
 0x4a9   : > { %5396 = vmatmul.mubr.f32.gmra.mrb[2].mxu1 %v7783_v33 }
 0x4aa   : > { %5398 = vmatprep.mubr.f32.mxu1 %v7807_v19 }
 0x4ad   : > { %5399 = vmatmul.mubr.f32.gmra.mrb[4].mxu1 %v7803_v55 }
 0x4ae   : > { %5401 = vmatprep.mubr.f32.mxu1 %v7827_v34 }
 0x4b1   : > { %5402 = vmatmul.mubr.f32.gmra.mrb[6].mxu1 %v7823_v25 }
 0x4b2   : > { %5404 = vmatprep.mubr.f32.mxu1 %v7848_v3 }
 0x4b5   : > { %5405 = vmatmul.mubr.f32.gmra.mrb[8].mxu1 %v7844_v24 }
 0x4b6   : > { %5407 = vmatprep.mubr.f32.mxu1 %v7868_v50 }
 0x4b9   : > { %5408 = vmatmul.mubr.f32.gmra.mrb[10].mxu1 %v7864_v0 }
 0x4ba   : > { %5410 = vmatprep.mubr.f32.mxu1 %v7888_v27 }
 0x4bd   : > { %5411 = vmatmul.mubr.f32.gmra.mrb[12].mxu1 %v7884_v38 }
 0x4be   : > { %5413 = vmatprep.mubr.f32.mxu1 %v7908_v35 }
 0x4c1   : > { %5414 = vmatmul.mubr.f32.gmra.mrb[14].mxu1 %v7904_v54 }
 0x4c2   : > { %5420 = vmatprep.mubr.f32.mxu1 %v7779_v11 }
 0x4c5   : > { %5421 = vmatmul.mubr.f32.vlgmr.msra.gmra.mrb[0].mxu1 %v7776_v46 }
 0x4c6   : > { %5423 = vmatprep.mubr.f32.mxu1 %v7796_v1  ;;  %5639 = vmatpush3.bf16.msra.mxu1 %v7749_v40 }
 0x4c7   : > { %5641 = vmatprep.subr.bf16.mxu1 %v5640_v21 }
 0x4c9   : > { %5424 = vmatmul.mubr.f32.gmra.mrb[2].mxu1 %v7790_v47 }
 0x4ca   : > { %5426 = vmatprep.mubr.f32.mxu1 %v7816_v52 }
 0x4cd   : > { %5427 = vmatmul.mubr.f32.gmra.mrb[4].mxu1 %v7810_v60 }
 0x4ce   : > { %5429 = vmatprep.mubr.f32.mxu1 %v7837_v13 }
 0x4d1   : > { %5430 = vmatmul.mubr.f32.gmra.mrb[6].mxu1 %v7830_v7 }
 0x4d2   : > { %5432 = vmatprep.mubr.f32.mxu1 %v7857_v23 }
 0x4d5   : > { %5433 = vmatmul.mubr.f32.gmra.mrb[8].mxu1 %v7851_v4 }
 0x4d6   : > { %5435 = vmatprep.mubr.f32.mxu1 %v7877_v17 }
 0x4d9   : > { %5436 = vmatmul.mubr.f32.gmra.mrb[10].mxu1 %v7871_v37 }
 0x4da   : > { %5438 = vmatprep.mubr.f32.mxu1 %v7897_v45 }
 0x4dd   : > { %5439 = vmatmul.mubr.f32.gmra.mrb[12].mxu1 %v7891_v51 }
 0x4de   : > { %5441 = vmatprep.mubr.f32.mxu1 %v7917_v57 }
 0x4e1   : > { %5442 = vmatmul.mubr.f32.gmra.mrb[14].mxu1 %v7911_v16 }
 0x4e2   : > { %5448 = vmatprep.mubr.f32.mxu1 %v3531_v22 }
 0x4e5   : > { %5449 = vmatmul.mubr.f32.vlgmr.msra.gmra.mrb[0].mxu1 %v3541_v31 }
 0x4e6   : > { %5451 = vmatprep.mubr.f32.mxu1 %v3551_v28  ;;  %5643 = vmatpush3.bf16.msra.mxu1 %v5640_v21 }
 0x4e7   : > { %5645 = vmatprep.subr.bf16.mxu1 %v7749_v40 }
 0x4e9   : > { %5452 = vmatmul.mubr.f32.gmra.mrb[2].mxu1 %v3561_v26 }
 0x4ea   : > { %5454 = vmatprep.mubr.f32.mxu1 %v3571_v10 }
 0x4ed   : > { %5455 = vmatmul.mubr.f32.gmra.mrb[4].mxu1 %v3581_v58 }
 0x4ee   : > { %5457 = vmatprep.mubr.f32.mxu1 %v3591_v15 }
 0x4f1   : > { %5458 = vmatmul.mubr.f32.gmra.mrb[6].mxu1 %v3601_v63 }
 0x4f2   : > { %5460 = vmatprep.mubr.f32.mxu1 %v3611_v14 }
 0x4f5   : > { %5461 = vmatmul.mubr.f32.gmra.mrb[8].mxu1 %v3621_v43 }
 0x4f6   : > { %5463 = vmatprep.mubr.f32.mxu1 %v3631_v20 }
 0x4f9   : > { %5464 = vmatmul.mubr.f32.gmra.mrb[10].mxu1 %v3641_v6 }
 0x4fa   : > { %5466 = vmatprep.mubr.f32.mxu1 %v3651_v30 }
 0x4fd   : > { %5467 = vmatmul.mubr.f32.gmra.mrb[12].mxu1 %v3661_v61 }
 0x4fe   : > { %5469 = vmatprep.mubr.f32.mxu1 %v3671_v41 }
 0x501   : > { %5470 = vmatmul.mubr.f32.gmra.mrb[14].mxu1 %v3681_v48 }
 0x502   : > { %5476 = vmatprep.mubr.f32.mxu1 %v7773_v56 }
 0x505   : > { %5477 = vmatmul.mubr.f32.vlgmr.msra.gmra.mrb[0].mxu1 %v7770_v59 }
 0x506   : > { %5479 = vmatprep.mubr.f32.mxu1 %v7786_v5  ;;  %5647 = vmatpush3.bf16.msra.mxu1 %v7749_v40 }
 0x509   : > { %5480 = vmatmul.mubr.f32.gmra.mrb[2].mxu1 %v7783_v33 }
 0x50a   : > { %5482 = vmatprep.mubr.f32.mxu1 %v7807_v19 }
 0x50d   : > { %5483 = vmatmul.mubr.f32.gmra.mrb[4].mxu1 %v7803_v55 }
 0x50e   : > { %5485 = vmatprep.mubr.f32.mxu1 %v7827_v34 }
 0x511   : > { %5486 = vmatmul.mubr.f32.gmra.mrb[6].mxu1 %v7823_v25 }
 0x512   : > { %5488 = vmatprep.mubr.f32.mxu1 %v7848_v3 }
 0x515   : > { %5489 = vmatmul.mubr.f32.gmra.mrb[8].mxu1 %v7844_v24 }
 0x516   : > { %5491 = vmatprep.mubr.f32.mxu1 %v7868_v50 }
 0x519   : > { %5492 = vmatmul.mubr.f32.gmra.mrb[10].mxu1 %v7864_v0 }
 0x51a   : > { %5494 = vmatprep.mubr.f32.mxu1 %v7888_v27 }
 0x51d   : > { %5495 = vmatmul.mubr.f32.gmra.mrb[12].mxu1 %v7884_v38 }
 0x51e   : > { %5497 = vmatprep.mubr.f32.mxu1 %v7908_v35 }
 0x521   : > { %5498 = vmatmul.mubr.f32.gmra.mrb[14].mxu1 %v7904_v54 }
 0x522   : > { %5504 = vmatprep.mubr.f32.mxu1 %v7773_v56 }
 0x525   : > { %5505 = vmatmul.mubr.f32.vlgmr.msra.gmra.mrb[0].mxu1 %v7770_v59 }
 0x526   : > { %5507 = vmatprep.mubr.f32.mxu1 %v7786_v5 }
 0x529   : > { %5508 = vmatmul.mubr.f32.gmra.mrb[2].mxu1 %v7783_v33 }
 0x52a   : > { %5510 = vmatprep.mubr.f32.mxu1 %v7807_v19 }
 0x52d   : > { %5511 = vmatmul.mubr.f32.gmra.mrb[4].mxu1 %v7803_v55 }
 0x52e   : > { %5513 = vmatprep.mubr.f32.mxu1 %v7827_v34 }
 0x531   : > { %5514 = vmatmul.mubr.f32.gmra.mrb[6].mxu1 %v7823_v25 }
 0x532   : > { %5516 = vmatprep.mubr.f32.mxu1 %v7848_v3 }
 0x535   : > { %5517 = vmatmul.mubr.f32.gmra.mrb[8].mxu1 %v7844_v24 }
 0x536   : > { %5519 = vmatprep.mubr.f32.mxu1 %v7868_v50 }
 0x539   : > { %5520 = vmatmul.mubr.f32.gmra.mrb[10].mxu1 %v7864_v0 }
 0x53a   : > { %5522 = vmatprep.mubr.f32.mxu1 %v7888_v27 }
 0x53d   : > { %5523 = vmatmul.mubr.f32.gmra.mrb[12].mxu1 %v7884_v38 }
 0x53e   : > { %5525 = vmatprep.mubr.f32.mxu1 %v7908_v35 }
 0x541   : > { %5526 = vmatmul.mubr.f32.gmra.mrb[14].mxu1 %v7904_v54 }
 0x5f8   : > { %v5506_v40 = vpop.f32.mrb[0].mxu1 }
 0x5f9   : > { %4568 = vst.msk [vmem:[%s8038_s13 + $0x8] sm:$0xff] %vm4566_vm13, %v5506_v40  ;;  %v4472_v53 = vpop.f32.mrb[1].mxu1 }
 0x5fa   : > { %4567 = vst.msk [vmem:[%s8038_s13] sm:$0xff] %vm4566_vm13, %v4472_v53 }
 0x5fc   : > { %v5509_v44 = vpop.f32.mrb[2].mxu1 }
 0x5fd   : > { %4570 = vst.msk [vmem:[%s8038_s13 + $0x18] sm:$0xff] %vm4566_vm13, %v5509_v44  ;;  %v4484_v36 = vpop.f32.mrb[3].mxu1 }
 0x5fe   : > { %4569 = vst.msk [vmem:[%s8038_s13 + $0x10] sm:$0xff] %vm4566_vm13, %v4484_v36 }
 0x600   : > { %v5512_v29 = vpop.f32.mrb[4].mxu1 }
 0x601   : > { %4850 = vst.msk [vmem:[%s8038_s13 + $0x28] sm:$0xff] %vm4566_vm13, %v5512_v29  ;;  %v4496_v59 = vpop.f32.mrb[5].mxu1 }
 0x602   : > { %4849 = vst.msk [vmem:[%s8038_s13 + $0x20] sm:$0xff] %vm4566_vm13, %v4496_v59 }
 0x604   : > { %v5515_v56 = vpop.f32.mrb[6].mxu1 }
 0x605   : > { %4852 = vst.msk [vmem:[%s8038_s13 + $0x38] sm:$0xff] %vm4566_vm13, %v5515_v56  ;;  %v4508_v46 = vpop.f32.mrb[7].mxu1 }
 0x606   : > { %4851 = vst.msk [vmem:[%s8038_s13 + $0x30] sm:$0xff] %vm4566_vm13, %v4508_v46 }
 0x608   : > { %v5518_v11 = vpop.f32.mrb[8].mxu1 }
 0x609   : > { %4854 = vst.msk [vmem:[%s8038_s13 + $0x48] sm:$0xff] %vm4566_vm13, %v5518_v11  ;;  %v4520_v31 = vpop.f32.mrb[9].mxu1 }
 0x60a   : > { %4853 = vst.msk [vmem:[%s8038_s13 + $0x40] sm:$0xff] %vm4566_vm13, %v4520_v31 }
 0x60c   : > { %v5521_v33 = vpop.f32.mrb[10].mxu1 }
 0x60d   : > { %4856 = vst.msk [vmem:[%s8038_s13 + $0x58] sm:$0xff] %vm4566_vm13, %v5521_v33  ;;  %v4532_v5 = vpop.f32.mrb[11].mxu1 }
 0x60e   : > { %4855 = vst.msk [vmem:[%s8038_s13 + $0x50] sm:$0xff] %vm4566_vm13, %v4532_v5 }
 0x610   : > { %v5524_v22 = vpop.f32.mrb[12].mxu1 }
 0x611   : > { %4858 = vst.msk [vmem:[%s8038_s13 + $0x68] sm:$0xff] %vm4566_vm13, %v5524_v22  ;;  %v4544_v47 = vpop.f32.mrb[13].mxu1 }
 0x612   : > { %4857 = vst.msk [vmem:[%s8038_s13 + $0x60] sm:$0xff] %vm4566_vm13, %v4544_v47 }
 0x614   : > { %v5527_v1 = vpop.f32.mrb[14].mxu1 }
 0x615   : > { %4860 = vst.msk [vmem:[%s8038_s13 + $0x78] sm:$0xff] %vm4566_vm13, %v5527_v1  ;;  %v4556_v26 = vpop.f32.mrb[15].mxu1 }
 0x616   : > { %4859 = vst.msk [vmem:[%s8038_s13 + $0x70] sm:$0xff] %vm4566_vm13, %v4556_v26 }
 0x617   : > { %5952 = shalt.err (!%p5949_p1)
}
 0x618   : > { %s5953_s9 = scalar_lea.hbm %s8073_s30, 2048  ;;  %s5957_s15 = scalar_lea.hbm %s8129_s5, 4096 }
 0x619   : > { %p5954_p2 = scmp.ne.s32.totalorder %s8073_s30, %s5953_s9  ;;  %p5958_p9 = scmp.lt.u32.totalorder %s8073_s30, %s8129_s5 }
 0x61a   : > { %p5959_p5 = scmp.lt.u32.totalorder %s5957_s15, %s5953_s9  ;;  %p5961_p10 = scmp.lt.u32.totalorder %s5953_s9, %s8073_s30 }
 0x61b   : > { %p5955_p3 = pnand %p5954_p2, %p8218_p12 }
 0x61c   : > { %p5960_p6 = por %p5959_p5, %p5958_p9 }
 0x61d   : > { %p5956_p4 = pneg %p5955_p3 }
 0x61e   : > { %p5962_p0 = por %p5961_p10, %p5960_p6 }
 0x620   : > { %p5963_p7 = pnand %p5962_p0, %p5956_p4 }
 0x622   : > { %5966 = shalt.err (!%p5963_p7)
}
 0x623   : > { %s6019_s13 = smov 128   ;;  %s6020_s17 = smov 8  }
 0x624   : > { %5816 = dma.vmem_to_hbm [thread:$0]  (%p8218_p12), %s8075_s23, 2048, %s8073_s30, %s8083_s22, %s6019_s13, %s6019_s13, %s6020_s17  }
 0x625 PF: > { %p5833_p8 = scmp.ge.s32.totalorder %s6009_s21, 2  ;;  %s4615_s25 = sand.u32 1, %s5997_s18  }
 0x626   : > { %p8219_p11 = scmp.ne.s32.totalorder %s8140_s29, 0  ;;  %s4616_s26 = scalar_lea.sflag [#allocation4], %s4615_s25 }
 0x628   : > { %p5826_p13 = pnand %p5833_p8, %p8219_p11 }
 0x62a   : > { %5992 = dma.done.wait (!%p5826_p13), %s4616_s26, 2048  }
 0x62b   : > { %5994 = vsyncadd (!%p5826_p13), %s4616_s26, 4294965248  ;;  %p17_p1 = scmp.ge.s32.totalorder %s6076_s24, 4   ;;  %s8220_s18 = smov %s6001_s19 }
 0x62c   : > { %s8221_s19 = smov %s6005_s20  ;;  %s8222_s20 = smov %s6087_s27 }
 0x62d   : > { %s8223_s21 = smov %s6076_s24  ;;  %19 = sbr.rel (!%p17_p1) target bundleno = 5 (0x5), region = 90 }
 0x634   :  { %4621 = vsyncpa [#allocation4], 1 }
 0x635   :  { %4623 = vsyncpa [#allocation4 + $0x1], 1 }
 0x636   :  { %4624 = vsyncpa [#allocation5], 1 }
 0x637   :  { %4626 = vsyncpa [#allocation5 + $0x1], 1 }
 0x638   :  { %4627 = vsyncpa [#allocation7], 1 }

</bundles_post_ra>
